<compile_context>
chip_gen: v6e
topology: v6e:2x2x1
jax: 0.10.0
libtpu: 0.0.40
codegen_flags: <defaults>
</compile_context>

<pallas_src>
import math

import jax
import jax.numpy as jnp
from jax.experimental import pallas as pl
from jax.experimental.pallas import tpu as pltpu

# small, TPU-friendly sizes
B = 2          # batch
T_ENC = 8      # encoder timesteps (== max(x_lens), as the torch code implies)
T_DEC = 8      # decoder timesteps
VOCAB = 32     # vocab size
EMB = 16       # embedding dim
HID = 32       # hidden dim  (4*HID = 128 -> one full lane tile)


def _lstm_gates(gate_pre, c):
    """PyTorch LSTM cell activation. gate_pre = x@W_ih + h@W_hh + b, gates [i,f,g,o]."""
    i = jax.nn.sigmoid(gate_pre[:, 0 * HID:1 * HID])
    f = jax.nn.sigmoid(gate_pre[:, 1 * HID:2 * HID])
    g = jnp.tanh(gate_pre[:, 2 * HID:3 * HID])
    o = jax.nn.sigmoid(gate_pre[:, 3 * HID:4 * HID])
    c_new = f * c + i * g
    h_new = o * jnp.tanh(c_new)
    return h_new, c_new


# ---------------------------------------------------------------------------
# fully fused forward kernel: encoder loop + decoder loop (attention+projection)
# ---------------------------------------------------------------------------
def seq2seq_kernel(enc_xw0_ref, dec_xw0_ref, xlens_ref,
                   enc_whh0_ref, enc_w1_ref, enc_b1_ref,
                   dec_whh0_ref, dec_w1_ref, dec_b1_ref,
                   proj_w_ref, proj_b_ref,
                   logp_ref,
                   enc_out_s, cat_s):
    f32 = jnp.float32
    bf16 = jnp.bfloat16

    # hoisted weight/bias loads (live for the whole forward)
    enc_whh0 = enc_whh0_ref[...]
    enc_w1 = enc_w1_ref[...]
    enc_b1 = enc_b1_ref[...]
    dec_whh0 = dec_whh0_ref[...]
    dec_w1 = dec_w1_ref[...]
    dec_b1 = dec_b1_ref[...]
    proj_w = proj_w_ref[...]
    proj_b = proj_b_ref[...]

    def cat2(a, b):
        # concat([a, b], axis=-1) assembled through a small VMEM scratch
        cat_s[:, 0:HID] = a
        cat_s[:, HID:2 * HID] = b
        return cat_s[...]

    zeros = jnp.zeros((B, HID), f32)
    h0 = c0 = h1 = c1 = zeros

    # ---------------- encoder (statically unrolled over time) ----------------
    for t in range(T_ENC):
        # layer 0: x@W_ih precomputed (enc_xw0 includes b0); only recurrent dot here
        g0 = enc_xw0_ref[t] + jnp.dot(h0.astype(bf16), enc_whh0,
                                      preferred_element_type=f32)
        h0, c0 = _lstm_gates(g0, c0)
        # layer 1: single fused dot over concat([h0_new, h1_prev])
        g1 = jnp.dot(cat2(h0, h1).astype(bf16), enc_w1,
                     preferred_element_type=f32) + enc_b1
        h1, c1 = _lstm_gates(g1, c1)
        enc_out_s[:, t, :] = h1                                    # (B, T, H) layout

    # attention constants, hoisted out of the decoder loop
    enc = enc_out_s[...]                                           # (B, T_enc, H)
    pos = jax.lax.broadcasted_iota(jnp.int32, (B, T_ENC), 1)       # (B, T_enc)
    mask = pos < xlens_ref[...]                                    # (B,1) -> (B,T_enc)
    neg_big = jnp.float32(-1e30)   # finite: no NaN even if a row were fully masked

    # ---------------- decoder (teacher forcing, statically unrolled) ---------
    for t in range(T_DEC):
        g0 = dec_xw0_ref[t] + jnp.dot(h0.astype(bf16), dec_whh0,
                                      preferred_element_type=f32)
        h0, c0 = _lstm_gates(g0, c0)
        g1 = jnp.dot(cat2(h0, h1).astype(bf16), dec_w1,
                     preferred_element_type=f32) + dec_b1
        h1, c1 = _lstm_gates(g1, c1)

        # masked dot-product attention over encoder outputs
        energi = jnp.sum(enc * h1[:, None, :], axis=-1)            # (B, T_enc)
        energi = jnp.where(mask, energi, neg_big)
        m = jnp.max(energi, axis=1, keepdims=True)
        e = jnp.exp(energi - m)
        denom = jnp.sum(e, axis=1, keepdims=True)
        attn = e * pl.reciprocal(denom, approx=True)               # softmax over time
        context = jnp.sum(attn[:, :, None] * enc, axis=1)          # (B, H)

        # projection over concat([h1, context]) + log_softmax
        logits = jnp.dot(cat2(h1, context).astype(bf16), proj_w,
                         preferred_element_type=f32) + proj_b      # (B, V)
        mm = jnp.max(logits, axis=-1, keepdims=True)
        lse = mm + jnp.log(jnp.sum(jnp.exp(logits - mm), axis=-1, keepdims=True))
        logp_ref[:, t, :] = logits - lse


# ---------------------------------------------------------------------------
# wrapper: embedding gathers + hoisted layer-0 input projections + one pallas_call
# ---------------------------------------------------------------------------
@jax.jit
def seq2seq_forward(params, x_tokens, x_lens, y_tokens):
    emb = params["emb"]

    # embedding lookups (XLA gather) and hoisted layer-0 input projections:
    # one batched matmul per LSTM stack instead of one tiny matmul per timestep.
    enc_emb = emb[x_tokens]                                        # (B, T_enc, E)
    dec_emb = emb[y_tokens]                                        # (B, T_dec, E) teacher forcing
    enc_xw0 = jnp.einsum("bte,eg->tbg", enc_emb, params["enc_wih0"]) + params["enc_b0"]
    dec_xw0 = jnp.einsum("bte,eg->tbg", dec_emb, params["dec_wih0"]) + params["dec_b0"]

    bf = lambda a: a.astype(jnp.bfloat16)   # bf16 matmul operands, f32 accumulation
    vm = pl.BlockSpec(memory_space=pltpu.MemorySpace.VMEM)

    return pl.pallas_call(
        seq2seq_kernel,
        in_specs=[vm] * 11,
        out_specs=vm,
        out_shape=jax.ShapeDtypeStruct((B, T_DEC, VOCAB), jnp.float32),
        scratch_shapes=[
            pltpu.VMEM((B, T_ENC, HID), jnp.float32),   # encoder outputs, VMEM-resident
            pltpu.VMEM((B, 2 * HID), jnp.float32),      # concat-assembly buffer
        ],
    )(enc_xw0, dec_xw0, x_lens.reshape(B, 1).astype(jnp.int32),
      bf(params["enc_whh0"]), bf(params["enc_w1"]), params["enc_b1"],
      bf(params["dec_whh0"]), bf(params["dec_w1"]), params["dec_b1"],
      bf(params["proj_w"]), params["proj_b"])


# ---------------------------------------------------------------------------
# deterministic parameter init (synthetic; mirrors the module's shapes)
# ---------------------------------------------------------------------------
def init_params(key):
    ks = jax.random.split(key, 16)

    def u(k, shape, scale):
        return jax.random.uniform(k, shape, jnp.float32, -scale, scale)

    s_lstm = 1.0 / math.sqrt(HID)
    s_proj = 1.0 / math.sqrt(2 * HID)
    # NOTE: each LSTM bias below represents b_ih + b_hh of the PyTorch layer.
    return {
        "emb": jax.random.normal(ks[0], (VOCAB, EMB), jnp.float32),
        # encoder 2-layer LSTM (layer-1 [W_ih; W_hh] pre-concatenated along rows)
        "enc_wih0": u(ks[1], (EMB, 4 * HID), s_lstm),
        "enc_whh0": u(ks[2], (HID, 4 * HID), s_lstm),
        "enc_b0":   u(ks[3], (1, 4 * HID), s_lstm),
        "enc_w1":   u(ks[4], (2 * HID, 4 * HID), s_lstm),
        "enc_b1":   u(ks[5], (1, 4 * HID), s_lstm),
        # decoder 2-layer LSTM
        "dec_wih0": u(ks[6], (EMB, 4 * HID), s_lstm),
        "dec_whh0": u(ks[7], (HID, 4 * HID), s_lstm),
        "dec_b0":   u(ks[8], (1, 4 * HID), s_lstm),
        "dec_w1":   u(ks[9], (2 * HID, 4 * HID), s_lstm),
        "dec_b1":   u(ks[10], (1, 4 * HID), s_lstm),
        # projection Linear(2H -> V): rows [0:H] multiply h1, rows [H:2H] multiply context
        "proj_w":   u(ks[11], (2 * HID, VOCAB), s_proj),
        "proj_b":   u(ks[12], (1, VOCAB), s_proj),
    }


if __name__ == "__main__":
    key = jax.random.PRNGKey(0)
    pkey, xkey, ykey = jax.random.split(key, 3)
    params = init_params(pkey)

    x = jax.random.randint(xkey, (B, T_ENC), 0, VOCAB, dtype=jnp.int32)
    y = jax.random.randint(ykey, (B, T_DEC), 0, VOCAB, dtype=jnp.int32)
    x_lens = jnp.array([T_ENC, 5], dtype=jnp.int32)  # max(x_lens) == T_ENC as torch code implies

    out = seq2seq_forward(params, x, x_lens, y)
    out = jax.block_until_ready(out)
    assert out.shape == (B, T_DEC, VOCAB), out.shape
    assert bool(jnp.all(jnp.isfinite(out))), "non-finite log-probs"
    print("KERNEL_OK")
</pallas_src>

<mosaic_0001>
module attributes {stable_mosaic.version = 11 : i64} {
  func.func @seq2seq_kernel(%arg0: memref<8x2x128xf32, #tpu.memory_space<vmem>>, %arg1: memref<8x2x128xf32, #tpu.memory_space<vmem>>, %arg2: memref<2x1xi32, #tpu.memory_space<vmem>>, %arg3: memref<32x128xbf16, #tpu.memory_space<vmem>>, %arg4: memref<64x128xbf16, #tpu.memory_space<vmem>>, %arg5: memref<1x128xf32, #tpu.memory_space<vmem>>, %arg6: memref<32x128xbf16, #tpu.memory_space<vmem>>, %arg7: memref<64x128xbf16, #tpu.memory_space<vmem>>, %arg8: memref<1x128xf32, #tpu.memory_space<vmem>>, %arg9: memref<64x32xbf16, #tpu.memory_space<vmem>>, %arg10: memref<1x32xf32, #tpu.memory_space<vmem>>, %arg11: memref<2x8x32xf32, #tpu.memory_space<vmem>>, %arg12: memref<2x8x32xf32, #tpu.memory_space<vmem>>, %arg13: memref<2x64xf32, #tpu.memory_space<vmem>>) attributes {dimension_semantics = [], scalar_prefetch = 0 : i64, scratch_operands = 2 : i64, tpu.core_type = #tpu.core_type<tc>} {
    %c0 = arith.constant 0 : index
    %c0_0 = arith.constant 0 : index
    %0 = vector.load %arg3[%c0, %c0_0] : memref<32x128xbf16, #tpu.memory_space<vmem>>, vector<32x128xbf16>
    %c0_1 = arith.constant 0 : index
    %c0_2 = arith.constant 0 : index
    %1 = vector.load %arg4[%c0_1, %c0_2] : memref<64x128xbf16, #tpu.memory_space<vmem>>, vector<64x128xbf16>
    %c0_3 = arith.constant 0 : index
    %c0_4 = arith.constant 0 : index
    %2 = vector.load %arg5[%c0_3, %c0_4] : memref<1x128xf32, #tpu.memory_space<vmem>>, vector<1x128xf32>
    %c0_5 = arith.constant 0 : index
    %c0_6 = arith.constant 0 : index
    %3 = vector.load %arg6[%c0_5, %c0_6] : memref<32x128xbf16, #tpu.memory_space<vmem>>, vector<32x128xbf16>
    %c0_7 = arith.constant 0 : index
    %c0_8 = arith.constant 0 : index
    %4 = vector.load %arg7[%c0_7, %c0_8] : memref<64x128xbf16, #tpu.memory_space<vmem>>, vector<64x128xbf16>
    %c0_9 = arith.constant 0 : index
    %c0_10 = arith.constant 0 : index
    %5 = vector.load %arg8[%c0_9, %c0_10] : memref<1x128xf32, #tpu.memory_space<vmem>>, vector<1x128xf32>
    %c0_11 = arith.constant 0 : index
    %c0_12 = arith.constant 0 : index
    %6 = vector.load %arg9[%c0_11, %c0_12] : memref<64x32xbf16, #tpu.memory_space<vmem>>, vector<64x32xbf16>
    %c0_13 = arith.constant 0 : index
    %c0_14 = arith.constant 0 : index
    %7 = vector.load %arg10[%c0_13, %c0_14] : memref<1x32xf32, #tpu.memory_space<vmem>>, vector<1x32xf32>
    %cst = arith.constant 0.000000e+00 : f32
    %8 = vector.broadcast %cst : f32 to vector<2x32xf32>
    %c0_15 = arith.constant 0 : index
    %c0_16 = arith.constant 0 : index
    %c0_17 = arith.constant 0 : index
    %9 = vector.load %arg0[%c0_15, %c0_16, %c0_17] : memref<8x2x128xf32, #tpu.memory_space<vmem>>, vector<1x2x128xf32>
    %10 = vector.shape_cast %9 : vector<1x2x128xf32> to vector<2x128xf32>
    %11 = arith.truncf %8 : vector<2x32xf32> to vector<2x32xbf16>
    %cst_18 = arith.constant dense<0.000000e+00> : vector<2x128xf32>
    %12 = tpu.matmul %11, %0, %cst_18 {dimension_numbers = #tpu.dot_dimension_numbers<[1], [0], [0], [1], [0, 0, 1, 1], [], []>} : vector<2x32xbf16>, vector<32x128xbf16>, vector<2x128xf32> -> vector<2x128xf32>
    %13 = arith.addf %10, %12 : vector<2x128xf32>
    %14 = vector.extract_strided_slice %13 {offsets = [0, 0], sizes = [2, 32], strides = [1, 1]} : vector<2x128xf32> to vector<2x32xf32>
    %15 = arith.negf %14 : vector<2x32xf32>
    %16 = math.exp %15 : vector<2x32xf32>
    %cst_19 = arith.constant 1.000000e+00 : f32
    %17 = vector.broadcast %cst_19 : f32 to vector<2x32xf32>
    %18 = arith.addf %17, %16 : vector<2x32xf32>
    %19 = arith.divf %17, %18 : vector<2x32xf32>
    %20 = vector.extract_strided_slice %13 {offsets = [0, 32], sizes = [2, 32], strides = [1, 1]} : vector<2x128xf32> to vector<2x32xf32>
    %21 = arith.negf %20 : vector<2x32xf32>
    %22 = math.exp %21 : vector<2x32xf32>
    %cst_20 = arith.constant 1.000000e+00 : f32
    %23 = vector.broadcast %cst_20 : f32 to vector<2x32xf32>
    %24 = arith.addf %23, %22 : vector<2x32xf32>
    %25 = arith.divf %23, %24 : vector<2x32xf32>
    %26 = vector.extract_strided_slice %13 {offsets = [0, 64], sizes = [2, 32], strides = [1, 1]} : vector<2x128xf32> to vector<2x32xf32>
    %27 = math.tanh %26 : vector<2x32xf32>
    %28 = vector.extract_strided_slice %13 {offsets = [0, 96], sizes = [2, 32], strides = [1, 1]} : vector<2x128xf32> to vector<2x32xf32>
    %29 = arith.negf %28 : vector<2x32xf32>
    %30 = math.exp %29 : vector<2x32xf32>
    %cst_21 = arith.constant 1.000000e+00 : f32
    %31 = vector.broadcast %cst_21 : f32 to vector<2x32xf32>
    %32 = arith.addf %31, %30 : vector<2x32xf32>
    %33 = arith.divf %31, %32 : vector<2x32xf32>
    %34 = arith.mulf %25, %8 : vector<2x32xf32>
    %35 = arith.mulf %19, %27 : vector<2x32xf32>
    %36 = arith.addf %34, %35 : vector<2x32xf32>
    %37 = math.tanh %36 : vector<2x32xf32>
    %38 = arith.mulf %33, %37 : vector<2x32xf32>
    %c0_22 = arith.constant 0 : index
    %c0_23 = arith.constant 0 : index
    %39 = vector.load %arg13[%c0_22, %c0_23] : memref<2x64xf32, #tpu.memory_space<vmem>>, vector<2x32xf32>
    tpu.vector_store %arg13[%c0_22, %c0_23], %38 {strides = array<i32>} : memref<2x64xf32, #tpu.memory_space<vmem>>, vector<2x32xf32>,
    %c0_24 = arith.constant 0 : index
    %c32 = arith.constant 32 : index
    %40 = vector.load %arg13[%c0_24, %c32] : memref<2x64xf32, #tpu.memory_space<vmem>>, vector<2x32xf32>
    tpu.vector_store %arg13[%c0_24, %c32], %8 {strides = array<i32>} : memref<2x64xf32, #tpu.memory_space<vmem>>, vector<2x32xf32>,
    %c0_25 = arith.constant 0 : index
    %c0_26 = arith.constant 0 : index
    %41 = vector.load %arg13[%c0_25, %c0_26] : memref<2x64xf32, #tpu.memory_space<vmem>>, vector<2x64xf32>
    %42 = arith.truncf %41 : vector<2x64xf32> to vector<2x64xbf16>
    %cst_27 = arith.constant dense<0.000000e+00> : vector<2x128xf32>
    %43 = tpu.matmul %42, %1, %cst_27 {dimension_numbers = #tpu.dot_dimension_numbers<[1], [0], [0], [1], [0, 0, 1, 1], [], []>} : vector<2x64xbf16>, vector<64x128xbf16>, vector<2x128xf32> -> vector<2x128xf32>
    %44 = vector.broadcast %2 : vector<1x128xf32> to vector<2x128xf32>
    %45 = arith.addf %43, %44 : vector<2x128xf32>
    %46 = vector.extract_strided_slice %45 {offsets = [0, 0], sizes = [2, 32], strides = [1, 1]} : vector<2x128xf32> to vector<2x32xf32>
    %47 = arith.negf %46 : vector<2x32xf32>
    %48 = math.exp %47 : vector<2x32xf32>
    %cst_28 = arith.constant 1.000000e+00 : f32
    %49 = vector.broadcast %cst_28 : f32 to vector<2x32xf32>
    %50 = arith.addf %49, %48 : vector<2x32xf32>
    %51 = arith.divf %49, %50 : vector<2x32xf32>
    %52 = vector.extract_strided_slice %45 {offsets = [0, 32], sizes = [2, 32], strides = [1, 1]} : vector<2x128xf32> to vector<2x32xf32>
    %53 = arith.negf %52 : vector<2x32xf32>
    %54 = math.exp %53 : vector<2x32xf32>
    %cst_29 = arith.constant 1.000000e+00 : f32
    %55 = vector.broadcast %cst_29 : f32 to vector<2x32xf32>
    %56 = arith.addf %55, %54 : vector<2x32xf32>
    %57 = arith.divf %55, %56 : vector<2x32xf32>
    %58 = vector.extract_strided_slice %45 {offsets = [0, 64], sizes = [2, 32], strides = [1, 1]} : vector<2x128xf32> to vector<2x32xf32>
    %59 = math.tanh %58 : vector<2x32xf32>
    %60 = vector.extract_strided_slice %45 {offsets = [0, 96], sizes = [2, 32], strides = [1, 1]} : vector<2x128xf32> to vector<2x32xf32>
    %61 = arith.negf %60 : vector<2x32xf32>
    %62 = math.exp %61 : vector<2x32xf32>
    %cst_30 = arith.constant 1.000000e+00 : f32
    %63 = vector.broadcast %cst_30 : f32 to vector<2x32xf32>
    %64 = arith.addf %63, %62 : vector<2x32xf32>
    %65 = arith.divf %63, %64 : vector<2x32xf32>
    %66 = arith.mulf %57, %8 : vector<2x32xf32>
    %67 = arith.mulf %51, %59 : vector<2x32xf32>
    %68 = arith.addf %66, %67 : vector<2x32xf32>
    %69 = math.tanh %68 : vector<2x32xf32>
    %70 = arith.mulf %65, %69 : vector<2x32xf32>
    %c0_31 = arith.constant 0 : index
    %c0_32 = arith.constant 0 : index
    %c0_33 = arith.constant 0 : index
    %71 = vector.load %arg12[%c0_31, %c0_32, %c0_33] : memref<2x8x32xf32, #tpu.memory_space<vmem>>, vector<2x1x32xf32>
    %72 = vector.shape_cast %71 : vector<2x1x32xf32> to vector<2x32xf32>
    %73 = vector.shape_cast %70 : vector<2x32xf32> to vector<2x1x32xf32>
    tpu.vector_store %arg12[%c0_31, %c0_32, %c0_33], %73 {strides = array<i32>} : memref<2x8x32xf32, #tpu.memory_space<vmem>>, vector<2x1x32xf32>,
    %c1 = arith.constant 1 : index
    %c0_34 = arith.constant 0 : index
    %c0_35 = arith.constant 0 : index
    %74 = vector.load %arg0[%c1, %c0_34, %c0_35] : memref<8x2x128xf32, #tpu.memory_space<vmem>>, vector<1x2x128xf32>
    %75 = vector.shape_cast %74 : vector<1x2x128xf32> to vector<2x128xf32>
    %76 = arith.truncf %38 : vector<2x32xf32> to vector<2x32xbf16>
    %cst_36 = arith.constant dense<0.000000e+00> : vector<2x128xf32>
    %77 = tpu.matmul %76, %0, %cst_36 {dimension_numbers = #tpu.dot_dimension_numbers<[1], [0], [0], [1], [0, 0, 1, 1], [], []>} : vector<2x32xbf16>, vector<32x128xbf16>, vector<2x128xf32> -> vector<2x128xf32>
    %78 = arith.addf %75, %77 : vector<2x128xf32>
    %79 = vector.extract_strided_slice %78 {offsets = [0, 0], sizes = [2, 32], strides = [1, 1]} : vector<2x128xf32> to vector<2x32xf32>
    %80 = arith.negf %79 : vector<2x32xf32>
    %81 = math.exp %80 : vector<2x32xf32>
    %cst_37 = arith.constant 1.000000e+00 : f32
    %82 = vector.broadcast %cst_37 : f32 to vector<2x32xf32>
    %83 = arith.addf %82, %81 : vector<2x32xf32>
    %84 = arith.divf %82, %83 : vector<2x32xf32>
    %85 = vector.extract_strided_slice %78 {offsets = [0, 32], sizes = [2, 32], strides = [1, 1]} : vector<2x128xf32> to vector<2x32xf32>
    %86 = arith.negf %85 : vector<2x32xf32>
    %87 = math.exp %86 : vector<2x32xf32>
    %cst_38 = arith.constant 1.000000e+00 : f32
    %88 = vector.broadcast %cst_38 : f32 to vector<2x32xf32>
    %89 = arith.addf %88, %87 : vector<2x32xf32>
    %90 = arith.divf %88, %89 : vector<2x32xf32>
    %91 = vector.extract_strided_slice %78 {offsets = [0, 64], sizes = [2, 32], strides = [1, 1]} : vector<2x128xf32> to vector<2x32xf32>
    %92 = math.tanh %91 : vector<2x32xf32>
    %93 = vector.extract_strided_slice %78 {offsets = [0, 96], sizes = [2, 32], strides = [1, 1]} : vector<2x128xf32> to vector<2x32xf32>
    %94 = arith.negf %93 : vector<2x32xf32>
    %95 = math.exp %94 : vector<2x32xf32>
    %cst_39 = arith.constant 1.000000e+00 : f32
    %96 = vector.broadcast %cst_39 : f32 to vector<2x32xf32>
    %97 = arith.addf %96, %95 : vector<2x32xf32>
    %98 = arith.divf %96, %97 : vector<2x32xf32>
    %99 = arith.mulf %90, %36 : vector<2x32xf32>
    %100 = arith.mulf %84, %92 : vector<2x32xf32>
    %101 = arith.addf %99, %100 : vector<2x32xf32>
    %102 = math.tanh %101 : vector<2x32xf32>
    %103 = arith.mulf %98, %102 : vector<2x32xf32>
    %c0_40 = arith.constant 0 : index
    %c0_41 = arith.constant 0 : index
    %104 = vector.load %arg13[%c0_40, %c0_41] : memref<2x64xf32, #tpu.memory_space<vmem>>, vector<2x32xf32>
    tpu.vector_store %arg13[%c0_40, %c0_41], %103 {strides = array<i32>} : memref<2x64xf32, #tpu.memory_space<vmem>>, vector<2x32xf32>,
    %c0_42 = arith.constant 0 : index
    %c32_43 = arith.constant 32 : index
    %105 = vector.load %arg13[%c0_42, %c32_43] : memref<2x64xf32, #tpu.memory_space<vmem>>, vector<2x32xf32>
    tpu.vector_store %arg13[%c0_42, %c32_43], %70 {strides = array<i32>} : memref<2x64xf32, #tpu.memory_space<vmem>>, vector<2x32xf32>,
    %c0_44 = arith.constant 0 : index
    %c0_45 = arith.constant 0 : index
    %106 = vector.load %arg13[%c0_44, %c0_45] : memref<2x64xf32, #tpu.memory_space<vmem>>, vector<2x64xf32>
    %107 = arith.truncf %106 : vector<2x64xf32> to vector<2x64xbf16>
    %cst_46 = arith.constant dense<0.000000e+00> : vector<2x128xf32>
    %108 = tpu.matmul %107, %1, %cst_46 {dimension_numbers = #tpu.dot_dimension_numbers<[1], [0], [0], [1], [0, 0, 1, 1], [], []>} : vector<2x64xbf16>, vector<64x128xbf16>, vector<2x128xf32> -> vector<2x128xf32>
    %109 = vector.broadcast %2 : vector<1x128xf32> to vector<2x128xf32>
    %110 = arith.addf %108, %109 : vector<2x128xf32>
    %111 = vector.extract_strided_slice %110 {offsets = [0, 0], sizes = [2, 32], strides = [1, 1]} : vector<2x128xf32> to vector<2x32xf32>
    %112 = arith.negf %111 : vector<2x32xf32>
    %113 = math.exp %112 : vector<2x32xf32>
    %cst_47 = arith.constant 1.000000e+00 : f32
    %114 = vector.broadcast %cst_47 : f32 to vector<2x32xf32>
    %115 = arith.addf %114, %113 : vector<2x32xf32>
    %116 = arith.divf %114, %115 : vector<2x32xf32>
    %117 = vector.extract_strided_slice %110 {offsets = [0, 32], sizes = [2, 32], strides = [1, 1]} : vector<2x128xf32> to vector<2x32xf32>
    %118 = arith.negf %117 : vector<2x32xf32>
    %119 = math.exp %118 : vector<2x32xf32>
    %cst_48 = arith.constant 1.000000e+00 : f32
    %120 = vector.broadcast %cst_48 : f32 to vector<2x32xf32>
    %121 = arith.addf %120, %119 : vector<2x32xf32>
    %122 = arith.divf %120, %121 : vector<2x32xf32>
    %123 = vector.extract_strided_slice %110 {offsets = [0, 64], sizes = [2, 32], strides = [1, 1]} : vector<2x128xf32> to vector<2x32xf32>
    %124 = math.tanh %123 : vector<2x32xf32>
    %125 = vector.extract_strided_slice %110 {offsets = [0, 96], sizes = [2, 32], strides = [1, 1]} : vector<2x128xf32> to vector<2x32xf32>
    %126 = arith.negf %125 : vector<2x32xf32>
    %127 = math.exp %126 : vector<2x32xf32>
    %cst_49 = arith.constant 1.000000e+00 : f32
    %128 = vector.broadcast %cst_49 : f32 to vector<2x32xf32>
    %129 = arith.addf %128, %127 : vector<2x32xf32>
    %130 = arith.divf %128, %129 : vector<2x32xf32>
    %131 = arith.mulf %122, %68 : vector<2x32xf32>
    %132 = arith.mulf %116, %124 : vector<2x32xf32>
    %133 = arith.addf %131, %132 : vector<2x32xf32>
    %134 = math.tanh %133 : vector<2x32xf32>
    %135 = arith.mulf %130, %134 : vector<2x32xf32>
    %c0_50 = arith.constant 0 : index
    %c1_51 = arith.constant 1 : index
    %c0_52 = arith.constant 0 : index
    %136 = vector.load %arg12[%c0_50, %c1_51, %c0_52] : memref<2x8x32xf32, #tpu.memory_space<vmem>>, vector<2x1x32xf32>
    %137 = vector.shape_cast %136 : vector<2x1x32xf32> to vector<2x32xf32>
    %138 = vector.shape_cast %135 : vector<2x32xf32> to vector<2x1x32xf32>
    tpu.vector_store %arg12[%c0_50, %c1_51, %c0_52], %138 {strides = array<i32>} : memref<2x8x32xf32, #tpu.memory_space<vmem>>, vector<2x1x32xf32>,
    %c2 = arith.constant 2 : index
    %c0_53 = arith.constant 0 : index
    %c0_54 = arith.constant 0 : index
    %139 = vector.load %arg0[%c2, %c0_53, %c0_54] : memref<8x2x128xf32, #tpu.memory_space<vmem>>, vector<1x2x128xf32>
    %140 = vector.shape_cast %139 : vector<1x2x128xf32> to vector<2x128xf32>
    %141 = arith.truncf %103 : vector<2x32xf32> to vector<2x32xbf16>
    %cst_55 = arith.constant dense<0.000000e+00> : vector<2x128xf32>
    %142 = tpu.matmul %141, %0, %cst_55 {dimension_numbers = #tpu.dot_dimension_numbers<[1], [0], [0], [1], [0, 0, 1, 1], [], []>} : vector<2x32xbf16>, vector<32x128xbf16>, vector<2x128xf32> -> vector<2x128xf32>
    %143 = arith.addf %140, %142 : vector<2x128xf32>
    %144 = vector.extract_strided_slice %143 {offsets = [0, 0], sizes = [2, 32], strides = [1, 1]} : vector<2x128xf32> to vector<2x32xf32>
    %145 = arith.negf %144 : vector<2x32xf32>
    %146 = math.exp %145 : vector<2x32xf32>
    %cst_56 = arith.constant 1.000000e+00 : f32
    %147 = vector.broadcast %cst_56 : f32 to vector<2x32xf32>
    %148 = arith.addf %147, %146 : vector<2x32xf32>
    %149 = arith.divf %147, %148 : vector<2x32xf32>
    %150 = vector.extract_strided_slice %143 {offsets = [0, 32], sizes = [2, 32], strides = [1, 1]} : vector<2x128xf32> to vector<2x32xf32>
    %151 = arith.negf %150 : vector<2x32xf32>
    %152 = math.exp %151 : vector<2x32xf32>
    %cst_57 = arith.constant 1.000000e+00 : f32
    %153 = vector.broadcast %cst_57 : f32 to vector<2x32xf32>
    %154 = arith.addf %153, %152 : vector<2x32xf32>
    %155 = arith.divf %153, %154 : vector<2x32xf32>
    %156 = vector.extract_strided_slice %143 {offsets = [0, 64], sizes = [2, 32], strides = [1, 1]} : vector<2x128xf32> to vector<2x32xf32>
    %157 = math.tanh %156 : vector<2x32xf32>
    %158 = vector.extract_strided_slice %143 {offsets = [0, 96], sizes = [2, 32], strides = [1, 1]} : vector<2x128xf32> to vector<2x32xf32>
    %159 = arith.negf %158 : vector<2x32xf32>
    %160 = math.exp %159 : vector<2x32xf32>
    %cst_58 = arith.constant 1.000000e+00 : f32
    %161 = vector.broadcast %cst_58 : f32 to vector<2x32xf32>
    %162 = arith.addf %161, %160 : vector<2x32xf32>
    %163 = arith.divf %161, %162 : vector<2x32xf32>
    %164 = arith.mulf %155, %101 : vector<2x32xf32>
    %165 = arith.mulf %149, %157 : vector<2x32xf32>
    %166 = arith.addf %164, %165 : vector<2x32xf32>
    %167 = math.tanh %166 : vector<2x32xf32>
    %168 = arith.mulf %163, %167 : vector<2x32xf32>
    %c0_59 = arith.constant 0 : index
    %c0_60 = arith.constant 0 : index
    %169 = vector.load %arg13[%c0_59, %c0_60] : memref<2x64xf32, #tpu.memory_space<vmem>>, vector<2x32xf32>
    tpu.vector_store %arg13[%c0_59, %c0_60], %168 {strides = array<i32>} : memref<2x64xf32, #tpu.memory_space<vmem>>, vector<2x32xf32>,
    %c0_61 = arith.constant 0 : index
    %c32_62 = arith.constant 32 : index
    %170 = vector.load %arg13[%c0_61, %c32_62] : memref<2x64xf32, #tpu.memory_space<vmem>>, vector<2x32xf32>
    tpu.vector_store %arg13[%c0_61, %c32_62], %135 {strides = array<i32>} : memref<2x64xf32, #tpu.memory_space<vmem>>, vector<2x32xf32>,
    %c0_63 = arith.constant 0 : index
    %c0_64 = arith.constant 0 : index
    %171 = vector.load %arg13[%c0_63, %c0_64] : memref<2x64xf32, #tpu.memory_space<vmem>>, vector<2x64xf32>
    %172 = arith.truncf %171 : vector<2x64xf32> to vector<2x64xbf16>
    %cst_65 = arith.constant dense<0.000000e+00> : vector<2x128xf32>
    %173 = tpu.matmul %172, %1, %cst_65 {dimension_numbers = #tpu.dot_dimension_numbers<[1], [0], [0], [1], [0, 0, 1, 1], [], []>} : vector<2x64xbf16>, vector<64x128xbf16>, vector<2x128xf32> -> vector<2x128xf32>
    %174 = vector.broadcast %2 : vector<1x128xf32> to vector<2x128xf32>
    %175 = arith.addf %173, %174 : vector<2x128xf32>
    %176 = vector.extract_strided_slice %175 {offsets = [0, 0], sizes = [2, 32], strides = [1, 1]} : vector<2x128xf32> to vector<2x32xf32>
    %177 = arith.negf %176 : vector<2x32xf32>
    %178 = math.exp %177 : vector<2x32xf32>
    %cst_66 = arith.constant 1.000000e+00 : f32
    %179 = vector.broadcast %cst_66 : f32 to vector<2x32xf32>
    %180 = arith.addf %179, %178 : vector<2x32xf32>
    %181 = arith.divf %179, %180 : vector<2x32xf32>
    %182 = vector.extract_strided_slice %175 {offsets = [0, 32], sizes = [2, 32], strides = [1, 1]} : vector<2x128xf32> to vector<2x32xf32>
    %183 = arith.negf %182 : vector<2x32xf32>
    %184 = math.exp %183 : vector<2x32xf32>
    %cst_67 = arith.constant 1.000000e+00 : f32
    %185 = vector.broadcast %cst_67 : f32 to vector<2x32xf32>
    %186 = arith.addf %185, %184 : vector<2x32xf32>
    %187 = arith.divf %185, %186 : vector<2x32xf32>
    %188 = vector.extract_strided_slice %175 {offsets = [0, 64], sizes = [2, 32], strides = [1, 1]} : vector<2x128xf32> to vector<2x32xf32>
    %189 = math.tanh %188 : vector<2x32xf32>
    %190 = vector.extract_strided_slice %175 {offsets = [0, 96], sizes = [2, 32], strides = [1, 1]} : vector<2x128xf32> to vector<2x32xf32>
    %191 = arith.negf %190 : vector<2x32xf32>
    %192 = math.exp %191 : vector<2x32xf32>
    %cst_68 = arith.constant 1.000000e+00 : f32
    %193 = vector.broadcast %cst_68 : f32 to vector<2x32xf32>
    %194 = arith.addf %193, %192 : vector<2x32xf32>
    %195 = arith.divf %193, %194 : vector<2x32xf32>
    %196 = arith.mulf %187, %133 : vector<2x32xf32>
    %197 = arith.mulf %181, %189 : vector<2x32xf32>
    %198 = arith.addf %196, %197 : vector<2x32xf32>
    %199 = math.tanh %198 : vector<2x32xf32>
    %200 = arith.mulf %195, %199 : vector<2x32xf32>
    %c0_69 = arith.constant 0 : index
    %c2_70 = arith.constant 2 : index
    %c0_71 = arith.constant 0 : index
    %201 = vector.load %arg12[%c0_69, %c2_70, %c0_71] : memref<2x8x32xf32, #tpu.memory_space<vmem>>, vector<2x1x32xf32>
    %202 = vector.shape_cast %201 : vector<2x1x32xf32> to vector<2x32xf32>
    %203 = vector.shape_cast %200 : vector<2x32xf32> to vector<2x1x32xf32>
    tpu.vector_store %arg12[%c0_69, %c2_70, %c0_71], %203 {strides = array<i32>} : memref<2x8x32xf32, #tpu.memory_space<vmem>>, vector<2x1x32xf32>,
    %c3 = arith.constant 3 : index
    %c0_72 = arith.constant 0 : index
    %c0_73 = arith.constant 0 : index
    %204 = vector.load %arg0[%c3, %c0_72, %c0_73] : memref<8x2x128xf32, #tpu.memory_space<vmem>>, vector<1x2x128xf32>
    %205 = vector.shape_cast %204 : vector<1x2x128xf32> to vector<2x128xf32>
    %206 = arith.truncf %168 : vector<2x32xf32> to vector<2x32xbf16>
    %cst_74 = arith.constant dense<0.000000e+00> : vector<2x128xf32>
    %207 = tpu.matmul %206, %0, %cst_74 {dimension_numbers = #tpu.dot_dimension_numbers<[1], [0], [0], [1], [0, 0, 1, 1], [], []>} : vector<2x32xbf16>, vector<32x128xbf16>, vector<2x128xf32> -> vector<2x128xf32>
    %208 = arith.addf %205, %207 : vector<2x128xf32>
    %209 = vector.extract_strided_slice %208 {offsets = [0, 0], sizes = [2, 32], strides = [1, 1]} : vector<2x128xf32> to vector<2x32xf32>
    %210 = arith.negf %209 : vector<2x32xf32>
    %211 = math.exp %210 : vector<2x32xf32>
    %cst_75 = arith.constant 1.000000e+00 : f32
    %212 = vector.broadcast %cst_75 : f32 to vector<2x32xf32>
    %213 = arith.addf %212, %211 : vector<2x32xf32>
    %214 = arith.divf %212, %213 : vector<2x32xf32>
    %215 = vector.extract_strided_slice %208 {offsets = [0, 32], sizes = [2, 32], strides = [1, 1]} : vector<2x128xf32> to vector<2x32xf32>
    %216 = arith.negf %215 : vector<2x32xf32>
    %217 = math.exp %216 : vector<2x32xf32>
    %cst_76 = arith.constant 1.000000e+00 : f32
    %218 = vector.broadcast %cst_76 : f32 to vector<2x32xf32>
    %219 = arith.addf %218, %217 : vector<2x32xf32>
    %220 = arith.divf %218, %219 : vector<2x32xf32>
    %221 = vector.extract_strided_slice %208 {offsets = [0, 64], sizes = [2, 32], strides = [1, 1]} : vector<2x128xf32> to vector<2x32xf32>
    %222 = math.tanh %221 : vector<2x32xf32>
    %223 = vector.extract_strided_slice %208 {offsets = [0, 96], sizes = [2, 32], strides = [1, 1]} : vector<2x128xf32> to vector<2x32xf32>
    %224 = arith.negf %223 : vector<2x32xf32>
    %225 = math.exp %224 : vector<2x32xf32>
    %cst_77 = arith.constant 1.000000e+00 : f32
    %226 = vector.broadcast %cst_77 : f32 to vector<2x32xf32>
    %227 = arith.addf %226, %225 : vector<2x32xf32>
    %228 = arith.divf %226, %227 : vector<2x32xf32>
    %229 = arith.mulf %220, %166 : vector<2x32xf32>
    %230 = arith.mulf %214, %222 : vector<2x32xf32>
    %231 = arith.addf %229, %230 : vector<2x32xf32>
    %232 = math.tanh %231 : vector<2x32xf32>
    %233 = arith.mulf %228, %232 : vector<2x32xf32>
    %c0_78 = arith.constant 0 : index
    %c0_79 = arith.constant 0 : index
    %234 = vector.load %arg13[%c0_78, %c0_79] : memref<2x64xf32, #tpu.memory_space<vmem>>, vector<2x32xf32>
    tpu.vector_store %arg13[%c0_78, %c0_79], %233 {strides = array<i32>} : memref<2x64xf32, #tpu.memory_space<vmem>>, vector<2x32xf32>,
    %c0_80 = arith.constant 0 : index
    %c32_81 = arith.constant 32 : index
    %235 = vector.load %arg13[%c0_80, %c32_81] : memref<2x64xf32, #tpu.memory_space<vmem>>, vector<2x32xf32>
    tpu.vector_store %arg13[%c0_80, %c32_81], %200 {strides = array<i32>} : memref<2x64xf32, #tpu.memory_space<vmem>>, vector<2x32xf32>,
    %c0_82 = arith.constant 0 : index
    %c0_83 = arith.constant 0 : index
    %236 = vector.load %arg13[%c0_82, %c0_83] : memref<2x64xf32, #tpu.memory_space<vmem>>, vector<2x64xf32>
    %237 = arith.truncf %236 : vector<2x64xf32> to vector<2x64xbf16>
    %cst_84 = arith.constant dense<0.000000e+00> : vector<2x128xf32>
    %238 = tpu.matmul %237, %1, %cst_84 {dimension_numbers = #tpu.dot_dimension_numbers<[1], [0], [0], [1], [0, 0, 1, 1], [], []>} : vector<2x64xbf16>, vector<64x128xbf16>, vector<2x128xf32> -> vector<2x128xf32>
    %239 = vector.broadcast %2 : vector<1x128xf32> to vector<2x128xf32>
    %240 = arith.addf %238, %239 : vector<2x128xf32>
    %241 = vector.extract_strided_slice %240 {offsets = [0, 0], sizes = [2, 32], strides = [1, 1]} : vector<2x128xf32> to vector<2x32xf32>
    %242 = arith.negf %241 : vector<2x32xf32>
    %243 = math.exp %242 : vector<2x32xf32>
    %cst_85 = arith.constant 1.000000e+00 : f32
    %244 = vector.broadcast %cst_85 : f32 to vector<2x32xf32>
    %245 = arith.addf %244, %243 : vector<2x32xf32>
    %246 = arith.divf %244, %245 : vector<2x32xf32>
    %247 = vector.extract_strided_slice %240 {offsets = [0, 32], sizes = [2, 32], strides = [1, 1]} : vector<2x128xf32> to vector<2x32xf32>
    %248 = arith.negf %247 : vector<2x32xf32>
    %249 = math.exp %248 : vector<2x32xf32>
    %cst_86 = arith.constant 1.000000e+00 : f32
    %250 = vector.broadcast %cst_86 : f32 to vector<2x32xf32>
    %251 = arith.addf %250, %249 : vector<2x32xf32>
    %252 = arith.divf %250, %251 : vector<2x32xf32>
    %253 = vector.extract_strided_slice %240 {offsets = [0, 64], sizes = [2, 32], strides = [1, 1]} : vector<2x128xf32> to vector<2x32xf32>
    %254 = math.tanh %253 : vector<2x32xf32>
    %255 = vector.extract_strided_slice %240 {offsets = [0, 96], sizes = [2, 32], strides = [1, 1]} : vector<2x128xf32> to vector<2x32xf32>
    %256 = arith.negf %255 : vector<2x32xf32>
    %257 = math.exp %256 : vector<2x32xf32>
    %cst_87 = arith.constant 1.000000e+00 : f32
    %258 = vector.broadcast %cst_87 : f32 to vector<2x32xf32>
    %259 = arith.addf %258, %257 : vector<2x32xf32>
    %260 = arith.divf %258, %259 : vector<2x32xf32>
    %261 = arith.mulf %252, %198 : vector<2x32xf32>
    %262 = arith.mulf %246, %254 : vector<2x32xf32>
    %263 = arith.addf %261, %262 : vector<2x32xf32>
    %264 = math.tanh %263 : vector<2x32xf32>
    %265 = arith.mulf %260, %264 : vector<2x32xf32>
    %c0_88 = arith.constant 0 : index
    %c3_89 = arith.constant 3 : index
    %c0_90 = arith.constant 0 : index
    %266 = vector.load %arg12[%c0_88, %c3_89, %c0_90] : memref<2x8x32xf32, #tpu.memory_space<vmem>>, vector<2x1x32xf32>
    %267 = vector.shape_cast %266 : vector<2x1x32xf32> to vector<2x32xf32>
    %268 = vector.shape_cast %265 : vector<2x32xf32> to vector<2x1x32xf32>
    tpu.vector_store %arg12[%c0_88, %c3_89, %c0_90], %268 {strides = array<i32>} : memref<2x8x32xf32, #tpu.memory_space<vmem>>, vector<2x1x32xf32>,
    %c4 = arith.constant 4 : index
    %c0_91 = arith.constant 0 : index
    %c0_92 = arith.constant 0 : index
    %269 = vector.load %arg0[%c4, %c0_91, %c0_92] : memref<8x2x128xf32, #tpu.memory_space<vmem>>, vector<1x2x128xf32>
    %270 = vector.shape_cast %269 : vector<1x2x128xf32> to vector<2x128xf32>
    %271 = arith.truncf %233 : vector<2x32xf32> to vector<2x32xbf16>
    %cst_93 = arith.constant dense<0.000000e+00> : vector<2x128xf32>
    %272 = tpu.matmul %271, %0, %cst_93 {dimension_numbers = #tpu.dot_dimension_numbers<[1], [0], [0], [1], [0, 0, 1, 1], [], []>} : vector<2x32xbf16>, vector<32x128xbf16>, vector<2x128xf32> -> vector<2x128xf32>
    %273 = arith.addf %270, %272 : vector<2x128xf32>
    %274 = vector.extract_strided_slice %273 {offsets = [0, 0], sizes = [2, 32], strides = [1, 1]} : vector<2x128xf32> to vector<2x32xf32>
    %275 = arith.negf %274 : vector<2x32xf32>
    %276 = math.exp %275 : vector<2x32xf32>
    %cst_94 = arith.constant 1.000000e+00 : f32
    %277 = vector.broadcast %cst_94 : f32 to vector<2x32xf32>
    %278 = arith.addf %277, %276 : vector<2x32xf32>
    %279 = arith.divf %277, %278 : vector<2x32xf32>
    %280 = vector.extract_strided_slice %273 {offsets = [0, 32], sizes = [2, 32], strides = [1, 1]} : vector<2x128xf32> to vector<2x32xf32>
    %281 = arith.negf %280 : vector<2x32xf32>
    %282 = math.exp %281 : vector<2x32xf32>
    %cst_95 = arith.constant 1.000000e+00 : f32
    %283 = vector.broadcast %cst_95 : f32 to vector<2x32xf32>
    %284 = arith.addf %283, %282 : vector<2x32xf32>
    %285 = arith.divf %283, %284 : vector<2x32xf32>
    %286 = vector.extract_strided_slice %273 {offsets = [0, 64], sizes = [2, 32], strides = [1, 1]} : vector<2x128xf32> to vector<2x32xf32>
    %287 = math.tanh %286 : vector<2x32xf32>
    %288 = vector.extract_strided_slice %273 {offsets = [0, 96], sizes = [2, 32], strides = [1, 1]} : vector<2x128xf32> to vector<2x32xf32>
    %289 = arith.negf %288 : vector<2x32xf32>
    %290 = math.exp %289 : vector<2x32xf32>
    %cst_96 = arith.constant 1.000000e+00 : f32
    %291 = vector.broadcast %cst_96 : f32 to vector<2x32xf32>
    %292 = arith.addf %291, %290 : vector<2x32xf32>
    %293 = arith.divf %291, %292 : vector<2x32xf32>
    %294 = arith.mulf %285, %231 : vector<2x32xf32>
    %295 = arith.mulf %279, %287 : vector<2x32xf32>
    %296 = arith.addf %294, %295 : vector<2x32xf32>
    %297 = math.tanh %296 : vector<2x32xf32>
    %298 = arith.mulf %293, %297 : vector<2x32xf32>
    %c0_97 = arith.constant 0 : index
    %c0_98 = arith.constant 0 : index
    %299 = vector.load %arg13[%c0_97, %c0_98] : memref<2x64xf32, #tpu.memory_space<vmem>>, vector<2x32xf32>
    tpu.vector_store %arg13[%c0_97, %c0_98], %298 {strides = array<i32>} : memref<2x64xf32, #tpu.memory_space<vmem>>, vector<2x32xf32>,
    %c0_99 = arith.constant 0 : index
    %c32_100 = arith.constant 32 : index
    %300 = vector.load %arg13[%c0_99, %c32_100] : memref<2x64xf32, #tpu.memory_space<vmem>>, vector<2x32xf32>
    tpu.vector_store %arg13[%c0_99, %c32_100], %265 {strides = array<i32>} : memref<2x64xf32, #tpu.memory_space<vmem>>, vector<2x32xf32>,
    %c0_101 = arith.constant 0 : index
    %c0_102 = arith.constant 0 : index
    %301 = vector.load %arg13[%c0_101, %c0_102] : memref<2x64xf32, #tpu.memory_space<vmem>>, vector<2x64xf32>
    %302 = arith.truncf %301 : vector<2x64xf32> to vector<2x64xbf16>
    %cst_103 = arith.constant dense<0.000000e+00> : vector<2x128xf32>
    %303 = tpu.matmul %302, %1, %cst_103 {dimension_numbers = #tpu.dot_dimension_numbers<[1], [0], [0], [1], [0, 0, 1, 1], [], []>} : vector<2x64xbf16>, vector<64x128xbf16>, vector<2x128xf32> -> vector<2x128xf32>
    %304 = vector.broadcast %2 : vector<1x128xf32> to vector<2x128xf32>
    %305 = arith.addf %303, %304 : vector<2x128xf32>
    %306 = vector.extract_strided_slice %305 {offsets = [0, 0], sizes = [2, 32], strides = [1, 1]} : vector<2x128xf32> to vector<2x32xf32>
    %307 = arith.negf %306 : vector<2x32xf32>
    %308 = math.exp %307 : vector<2x32xf32>
    %cst_104 = arith.constant 1.000000e+00 : f32
    %309 = vector.broadcast %cst_104 : f32 to vector<2x32xf32>
    %310 = arith.addf %309, %308 : vector<2x32xf32>
    %311 = arith.divf %309, %310 : vector<2x32xf32>
    %312 = vector.extract_strided_slice %305 {offsets = [0, 32], sizes = [2, 32], strides = [1, 1]} : vector<2x128xf32> to vector<2x32xf32>
    %313 = arith.negf %312 : vector<2x32xf32>
    %314 = math.exp %313 : vector<2x32xf32>
    %cst_105 = arith.constant 1.000000e+00 : f32
    %315 = vector.broadcast %cst_105 : f32 to vector<2x32xf32>
    %316 = arith.addf %315, %314 : vector<2x32xf32>
    %317 = arith.divf %315, %316 : vector<2x32xf32>
    %318 = vector.extract_strided_slice %305 {offsets = [0, 64], sizes = [2, 32], strides = [1, 1]} : vector<2x128xf32> to vector<2x32xf32>
    %319 = math.tanh %318 : vector<2x32xf32>
    %320 = vector.extract_strided_slice %305 {offsets = [0, 96], sizes = [2, 32], strides = [1, 1]} : vector<2x128xf32> to vector<2x32xf32>
    %321 = arith.negf %320 : vector<2x32xf32>
    %322 = math.exp %321 : vector<2x32xf32>
    %cst_106 = arith.constant 1.000000e+00 : f32
    %323 = vector.broadcast %cst_106 : f32 to vector<2x32xf32>
    %324 = arith.addf %323, %322 : vector<2x32xf32>
    %325 = arith.divf %323, %324 : vector<2x32xf32>
    %326 = arith.mulf %317, %263 : vector<2x32xf32>
    %327 = arith.mulf %311, %319 : vector<2x32xf32>
    %328 = arith.addf %326, %327 : vector<2x32xf32>
    %329 = math.tanh %328 : vector<2x32xf32>
    %330 = arith.mulf %325, %329 : vector<2x32xf32>
    %c0_107 = arith.constant 0 : index
    %c4_108 = arith.constant 4 : index
    %c0_109 = arith.constant 0 : index
    %331 = vector.load %arg12[%c0_107, %c4_108, %c0_109] : memref<2x8x32xf32, #tpu.memory_space<vmem>>, vector<2x1x32xf32>
    %332 = vector.shape_cast %331 : vector<2x1x32xf32> to vector<2x32xf32>
    %333 = vector.shape_cast %330 : vector<2x32xf32> to vector<2x1x32xf32>
    tpu.vector_store %arg12[%c0_107, %c4_108, %c0_109], %333 {strides = array<i32>} : memref<2x8x32xf32, #tpu.memory_space<vmem>>, vector<2x1x32xf32>,
    %c5 = arith.constant 5 : index
    %c0_110 = arith.constant 0 : index
    %c0_111 = arith.constant 0 : index
    %334 = vector.load %arg0[%c5, %c0_110, %c0_111] : memref<8x2x128xf32, #tpu.memory_space<vmem>>, vector<1x2x128xf32>
    %335 = vector.shape_cast %334 : vector<1x2x128xf32> to vector<2x128xf32>
    %336 = arith.truncf %298 : vector<2x32xf32> to vector<2x32xbf16>
    %cst_112 = arith.constant dense<0.000000e+00> : vector<2x128xf32>
    %337 = tpu.matmul %336, %0, %cst_112 {dimension_numbers = #tpu.dot_dimension_numbers<[1], [0], [0], [1], [0, 0, 1, 1], [], []>} : vector<2x32xbf16>, vector<32x128xbf16>, vector<2x128xf32> -> vector<2x128xf32>
    %338 = arith.addf %335, %337 : vector<2x128xf32>
    %339 = vector.extract_strided_slice %338 {offsets = [0, 0], sizes = [2, 32], strides = [1, 1]} : vector<2x128xf32> to vector<2x32xf32>
    %340 = arith.negf %339 : vector<2x32xf32>
    %341 = math.exp %340 : vector<2x32xf32>
    %cst_113 = arith.constant 1.000000e+00 : f32
    %342 = vector.broadcast %cst_113 : f32 to vector<2x32xf32>
    %343 = arith.addf %342, %341 : vector<2x32xf32>
    %344 = arith.divf %342, %343 : vector<2x32xf32>
    %345 = vector.extract_strided_slice %338 {offsets = [0, 32], sizes = [2, 32], strides = [1, 1]} : vector<2x128xf32> to vector<2x32xf32>
    %346 = arith.negf %345 : vector<2x32xf32>
    %347 = math.exp %346 : vector<2x32xf32>
    %cst_114 = arith.constant 1.000000e+00 : f32
    %348 = vector.broadcast %cst_114 : f32 to vector<2x32xf32>
    %349 = arith.addf %348, %347 : vector<2x32xf32>
    %350 = arith.divf %348, %349 : vector<2x32xf32>
    %351 = vector.extract_strided_slice %338 {offsets = [0, 64], sizes = [2, 32], strides = [1, 1]} : vector<2x128xf32> to vector<2x32xf32>
    %352 = math.tanh %351 : vector<2x32xf32>
    %353 = vector.extract_strided_slice %338 {offsets = [0, 96], sizes = [2, 32], strides = [1, 1]} : vector<2x128xf32> to vector<2x32xf32>
    %354 = arith.negf %353 : vector<2x32xf32>
    %355 = math.exp %354 : vector<2x32xf32>
    %cst_115 = arith.constant 1.000000e+00 : f32
    %356 = vector.broadcast %cst_115 : f32 to vector<2x32xf32>
    %357 = arith.addf %356, %355 : vector<2x32xf32>
    %358 = arith.divf %356, %357 : vector<2x32xf32>
    %359 = arith.mulf %350, %296 : vector<2x32xf32>
    %360 = arith.mulf %344, %352 : vector<2x32xf32>
    %361 = arith.addf %359, %360 : vector<2x32xf32>
    %362 = math.tanh %361 : vector<2x32xf32>
    %363 = arith.mulf %358, %362 : vector<2x32xf32>
    %c0_116 = arith.constant 0 : index
    %c0_117 = arith.constant 0 : index
    %364 = vector.load %arg13[%c0_116, %c0_117] : memref<2x64xf32, #tpu.memory_space<vmem>>, vector<2x32xf32>
    tpu.vector_store %arg13[%c0_116, %c0_117], %363 {strides = array<i32>} : memref<2x64xf32, #tpu.memory_space<vmem>>, vector<2x32xf32>,
    %c0_118 = arith.constant 0 : index
    %c32_119 = arith.constant 32 : index
    %365 = vector.load %arg13[%c0_118, %c32_119] : memref<2x64xf32, #tpu.memory_space<vmem>>, vector<2x32xf32>
    tpu.vector_store %arg13[%c0_118, %c32_119], %330 {strides = array<i32>} : memref<2x64xf32, #tpu.memory_space<vmem>>, vector<2x32xf32>,
    %c0_120 = arith.constant 0 : index
    %c0_121 = arith.constant 0 : index
    %366 = vector.load %arg13[%c0_120, %c0_121] : memref<2x64xf32, #tpu.memory_space<vmem>>, vector<2x64xf32>
    %367 = arith.truncf %366 : vector<2x64xf32> to vector<2x64xbf16>
    %cst_122 = arith.constant dense<0.000000e+00> : vector<2x128xf32>
    %368 = tpu.matmul %367, %1, %cst_122 {dimension_numbers = #tpu.dot_dimension_numbers<[1], [0], [0], [1], [0, 0, 1, 1], [], []>} : vector<2x64xbf16>, vector<64x128xbf16>, vector<2x128xf32> -> vector<2x128xf32>
    %369 = vector.broadcast %2 : vector<1x128xf32> to vector<2x128xf32>
    %370 = arith.addf %368, %369 : vector<2x128xf32>
    %371 = vector.extract_strided_slice %370 {offsets = [0, 0], sizes = [2, 32], strides = [1, 1]} : vector<2x128xf32> to vector<2x32xf32>
    %372 = arith.negf %371 : vector<2x32xf32>
    %373 = math.exp %372 : vector<2x32xf32>
    %cst_123 = arith.constant 1.000000e+00 : f32
    %374 = vector.broadcast %cst_123 : f32 to vector<2x32xf32>
    %375 = arith.addf %374, %373 : vector<2x32xf32>
    %376 = arith.divf %374, %375 : vector<2x32xf32>
    %377 = vector.extract_strided_slice %370 {offsets = [0, 32], sizes = [2, 32], strides = [1, 1]} : vector<2x128xf32> to vector<2x32xf32>
    %378 = arith.negf %377 : vector<2x32xf32>
    %379 = math.exp %378 : vector<2x32xf32>
    %cst_124 = arith.constant 1.000000e+00 : f32
    %380 = vector.broadcast %cst_124 : f32 to vector<2x32xf32>
    %381 = arith.addf %380, %379 : vector<2x32xf32>
    %382 = arith.divf %380, %381 : vector<2x32xf32>
    %383 = vector.extract_strided_slice %370 {offsets = [0, 64], sizes = [2, 32], strides = [1, 1]} : vector<2x128xf32> to vector<2x32xf32>
    %384 = math.tanh %383 : vector<2x32xf32>
    %385 = vector.extract_strided_slice %370 {offsets = [0, 96], sizes = [2, 32], strides = [1, 1]} : vector<2x128xf32> to vector<2x32xf32>
    %386 = arith.negf %385 : vector<2x32xf32>
    %387 = math.exp %386 : vector<2x32xf32>
    %cst_125 = arith.constant 1.000000e+00 : f32
    %388 = vector.broadcast %cst_125 : f32 to vector<2x32xf32>
    %389 = arith.addf %388, %387 : vector<2x32xf32>
    %390 = arith.divf %388, %389 : vector<2x32xf32>
    %391 = arith.mulf %382, %328 : vector<2x32xf32>
    %392 = arith.mulf %376, %384 : vector<2x32xf32>
    %393 = arith.addf %391, %392 : vector<2x32xf32>
    %394 = math.tanh %393 : vector<2x32xf32>
    %395 = arith.mulf %390, %394 : vector<2x32xf32>
    %c0_126 = arith.constant 0 : index
    %c5_127 = arith.constant 5 : index
    %c0_128 = arith.constant 0 : index
    %396 = vector.load %arg12[%c0_126, %c5_127, %c0_128] : memref<2x8x32xf32, #tpu.memory_space<vmem>>, vector<2x1x32xf32>
    %397 = vector.shape_cast %396 : vector<2x1x32xf32> to vector<2x32xf32>
    %398 = vector.shape_cast %395 : vector<2x32xf32> to vector<2x1x32xf32>
    tpu.vector_store %arg12[%c0_126, %c5_127, %c0_128], %398 {strides = array<i32>} : memref<2x8x32xf32, #tpu.memory_space<vmem>>, vector<2x1x32xf32>,
    %c6 = arith.constant 6 : index
    %c0_129 = arith.constant 0 : index
    %c0_130 = arith.constant 0 : index
    %399 = vector.load %arg0[%c6, %c0_129, %c0_130] : memref<8x2x128xf32, #tpu.memory_space<vmem>>, vector<1x2x128xf32>
    %400 = vector.shape_cast %399 : vector<1x2x128xf32> to vector<2x128xf32>
    %401 = arith.truncf %363 : vector<2x32xf32> to vector<2x32xbf16>
    %cst_131 = arith.constant dense<0.000000e+00> : vector<2x128xf32>
    %402 = tpu.matmul %401, %0, %cst_131 {dimension_numbers = #tpu.dot_dimension_numbers<[1], [0], [0], [1], [0, 0, 1, 1], [], []>} : vector<2x32xbf16>, vector<32x128xbf16>, vector<2x128xf32> -> vector<2x128xf32>
    %403 = arith.addf %400, %402 : vector<2x128xf32>
    %404 = vector.extract_strided_slice %403 {offsets = [0, 0], sizes = [2, 32], strides = [1, 1]} : vector<2x128xf32> to vector<2x32xf32>
    %405 = arith.negf %404 : vector<2x32xf32>
    %406 = math.exp %405 : vector<2x32xf32>
    %cst_132 = arith.constant 1.000000e+00 : f32
    %407 = vector.broadcast %cst_132 : f32 to vector<2x32xf32>
    %408 = arith.addf %407, %406 : vector<2x32xf32>
    %409 = arith.divf %407, %408 : vector<2x32xf32>
    %410 = vector.extract_strided_slice %403 {offsets = [0, 32], sizes = [2, 32], strides = [1, 1]} : vector<2x128xf32> to vector<2x32xf32>
    %411 = arith.negf %410 : vector<2x32xf32>
    %412 = math.exp %411 : vector<2x32xf32>
    %cst_133 = arith.constant 1.000000e+00 : f32
    %413 = vector.broadcast %cst_133 : f32 to vector<2x32xf32>
    %414 = arith.addf %413, %412 : vector<2x32xf32>
    %415 = arith.divf %413, %414 : vector<2x32xf32>
    %416 = vector.extract_strided_slice %403 {offsets = [0, 64], sizes = [2, 32], strides = [1, 1]} : vector<2x128xf32> to vector<2x32xf32>
    %417 = math.tanh %416 : vector<2x32xf32>
    %418 = vector.extract_strided_slice %403 {offsets = [0, 96], sizes = [2, 32], strides = [1, 1]} : vector<2x128xf32> to vector<2x32xf32>
    %419 = arith.negf %418 : vector<2x32xf32>
    %420 = math.exp %419 : vector<2x32xf32>
    %cst_134 = arith.constant 1.000000e+00 : f32
    %421 = vector.broadcast %cst_134 : f32 to vector<2x32xf32>
    %422 = arith.addf %421, %420 : vector<2x32xf32>
    %423 = arith.divf %421, %422 : vector<2x32xf32>
    %424 = arith.mulf %415, %361 : vector<2x32xf32>
    %425 = arith.mulf %409, %417 : vector<2x32xf32>
    %426 = arith.addf %424, %425 : vector<2x32xf32>
    %427 = math.tanh %426 : vector<2x32xf32>
    %428 = arith.mulf %423, %427 : vector<2x32xf32>
    %c0_135 = arith.constant 0 : index
    %c0_136 = arith.constant 0 : index
    %429 = vector.load %arg13[%c0_135, %c0_136] : memref<2x64xf32, #tpu.memory_space<vmem>>, vector<2x32xf32>
    tpu.vector_store %arg13[%c0_135, %c0_136], %428 {strides = array<i32>} : memref<2x64xf32, #tpu.memory_space<vmem>>, vector<2x32xf32>,
    %c0_137 = arith.constant 0 : index
    %c32_138 = arith.constant 32 : index
    %430 = vector.load %arg13[%c0_137, %c32_138] : memref<2x64xf32, #tpu.memory_space<vmem>>, vector<2x32xf32>
    tpu.vector_store %arg13[%c0_137, %c32_138], %395 {strides = array<i32>} : memref<2x64xf32, #tpu.memory_space<vmem>>, vector<2x32xf32>,
    %c0_139 = arith.constant 0 : index
    %c0_140 = arith.constant 0 : index
    %431 = vector.load %arg13[%c0_139, %c0_140] : memref<2x64xf32, #tpu.memory_space<vmem>>, vector<2x64xf32>
    %432 = arith.truncf %431 : vector<2x64xf32> to vector<2x64xbf16>
    %cst_141 = arith.constant dense<0.000000e+00> : vector<2x128xf32>
    %433 = tpu.matmul %432, %1, %cst_141 {dimension_numbers = #tpu.dot_dimension_numbers<[1], [0], [0], [1], [0, 0, 1, 1], [], []>} : vector<2x64xbf16>, vector<64x128xbf16>, vector<2x128xf32> -> vector<2x128xf32>
    %434 = vector.broadcast %2 : vector<1x128xf32> to vector<2x128xf32>
    %435 = arith.addf %433, %434 : vector<2x128xf32>
    %436 = vector.extract_strided_slice %435 {offsets = [0, 0], sizes = [2, 32], strides = [1, 1]} : vector<2x128xf32> to vector<2x32xf32>
    %437 = arith.negf %436 : vector<2x32xf32>
    %438 = math.exp %437 : vector<2x32xf32>
    %cst_142 = arith.constant 1.000000e+00 : f32
    %439 = vector.broadcast %cst_142 : f32 to vector<2x32xf32>
    %440 = arith.addf %439, %438 : vector<2x32xf32>
    %441 = arith.divf %439, %440 : vector<2x32xf32>
    %442 = vector.extract_strided_slice %435 {offsets = [0, 32], sizes = [2, 32], strides = [1, 1]} : vector<2x128xf32> to vector<2x32xf32>
    %443 = arith.negf %442 : vector<2x32xf32>
    %444 = math.exp %443 : vector<2x32xf32>
    %cst_143 = arith.constant 1.000000e+00 : f32
    %445 = vector.broadcast %cst_143 : f32 to vector<2x32xf32>
    %446 = arith.addf %445, %444 : vector<2x32xf32>
    %447 = arith.divf %445, %446 : vector<2x32xf32>
    %448 = vector.extract_strided_slice %435 {offsets = [0, 64], sizes = [2, 32], strides = [1, 1]} : vector<2x128xf32> to vector<2x32xf32>
    %449 = math.tanh %448 : vector<2x32xf32>
    %450 = vector.extract_strided_slice %435 {offsets = [0, 96], sizes = [2, 32], strides = [1, 1]} : vector<2x128xf32> to vector<2x32xf32>
    %451 = arith.negf %450 : vector<2x32xf32>
    %452 = math.exp %451 : vector<2x32xf32>
    %cst_144 = arith.constant 1.000000e+00 : f32
    %453 = vector.broadcast %cst_144 : f32 to vector<2x32xf32>
    %454 = arith.addf %453, %452 : vector<2x32xf32>
    %455 = arith.divf %453, %454 : vector<2x32xf32>
    %456 = arith.mulf %447, %393 : vector<2x32xf32>
    %457 = arith.mulf %441, %449 : vector<2x32xf32>
    %458 = arith.addf %456, %457 : vector<2x32xf32>
    %459 = math.tanh %458 : vector<2x32xf32>
    %460 = arith.mulf %455, %459 : vector<2x32xf32>
    %c0_145 = arith.constant 0 : index
    %c6_146 = arith.constant 6 : index
    %c0_147 = arith.constant 0 : index
    %461 = vector.load %arg12[%c0_145, %c6_146, %c0_147] : memref<2x8x32xf32, #tpu.memory_space<vmem>>, vector<2x1x32xf32>
    %462 = vector.shape_cast %461 : vector<2x1x32xf32> to vector<2x32xf32>
    %463 = vector.shape_cast %460 : vector<2x32xf32> to vector<2x1x32xf32>
    tpu.vector_store %arg12[%c0_145, %c6_146, %c0_147], %463 {strides = array<i32>} : memref<2x8x32xf32, #tpu.memory_space<vmem>>, vector<2x1x32xf32>,
    %c7 = arith.constant 7 : index
    %c0_148 = arith.constant 0 : index
    %c0_149 = arith.constant 0 : index
    %464 = vector.load %arg0[%c7, %c0_148, %c0_149] : memref<8x2x128xf32, #tpu.memory_space<vmem>>, vector<1x2x128xf32>
    %465 = vector.shape_cast %464 : vector<1x2x128xf32> to vector<2x128xf32>
    %466 = arith.truncf %428 : vector<2x32xf32> to vector<2x32xbf16>
    %cst_150 = arith.constant dense<0.000000e+00> : vector<2x128xf32>
    %467 = tpu.matmul %466, %0, %cst_150 {dimension_numbers = #tpu.dot_dimension_numbers<[1], [0], [0], [1], [0, 0, 1, 1], [], []>} : vector<2x32xbf16>, vector<32x128xbf16>, vector<2x128xf32> -> vector<2x128xf32>
    %468 = arith.addf %465, %467 : vector<2x128xf32>
    %469 = vector.extract_strided_slice %468 {offsets = [0, 0], sizes = [2, 32], strides = [1, 1]} : vector<2x128xf32> to vector<2x32xf32>
    %470 = arith.negf %469 : vector<2x32xf32>
    %471 = math.exp %470 : vector<2x32xf32>
    %cst_151 = arith.constant 1.000000e+00 : f32
    %472 = vector.broadcast %cst_151 : f32 to vector<2x32xf32>
    %473 = arith.addf %472, %471 : vector<2x32xf32>
    %474 = arith.divf %472, %473 : vector<2x32xf32>
    %475 = vector.extract_strided_slice %468 {offsets = [0, 32], sizes = [2, 32], strides = [1, 1]} : vector<2x128xf32> to vector<2x32xf32>
    %476 = arith.negf %475 : vector<2x32xf32>
    %477 = math.exp %476 : vector<2x32xf32>
    %cst_152 = arith.constant 1.000000e+00 : f32
    %478 = vector.broadcast %cst_152 : f32 to vector<2x32xf32>
    %479 = arith.addf %478, %477 : vector<2x32xf32>
    %480 = arith.divf %478, %479 : vector<2x32xf32>
    %481 = vector.extract_strided_slice %468 {offsets = [0, 64], sizes = [2, 32], strides = [1, 1]} : vector<2x128xf32> to vector<2x32xf32>
    %482 = math.tanh %481 : vector<2x32xf32>
    %483 = vector.extract_strided_slice %468 {offsets = [0, 96], sizes = [2, 32], strides = [1, 1]} : vector<2x128xf32> to vector<2x32xf32>
    %484 = arith.negf %483 : vector<2x32xf32>
    %485 = math.exp %484 : vector<2x32xf32>
    %cst_153 = arith.constant 1.000000e+00 : f32
    %486 = vector.broadcast %cst_153 : f32 to vector<2x32xf32>
    %487 = arith.addf %486, %485 : vector<2x32xf32>
    %488 = arith.divf %486, %487 : vector<2x32xf32>
    %489 = arith.mulf %480, %426 : vector<2x32xf32>
    %490 = arith.mulf %474, %482 : vector<2x32xf32>
    %491 = arith.addf %489, %490 : vector<2x32xf32>
    %492 = math.tanh %491 : vector<2x32xf32>
    %493 = arith.mulf %488, %492 : vector<2x32xf32>
    %c0_154 = arith.constant 0 : index
    %c0_155 = arith.constant 0 : index
    %494 = vector.load %arg13[%c0_154, %c0_155] : memref<2x64xf32, #tpu.memory_space<vmem>>, vector<2x32xf32>
    tpu.vector_store %arg13[%c0_154, %c0_155], %493 {strides = array<i32>} : memref<2x64xf32, #tpu.memory_space<vmem>>, vector<2x32xf32>,
    %c0_156 = arith.constant 0 : index
    %c32_157 = arith.constant 32 : index
    %495 = vector.load %arg13[%c0_156, %c32_157] : memref<2x64xf32, #tpu.memory_space<vmem>>, vector<2x32xf32>
    tpu.vector_store %arg13[%c0_156, %c32_157], %460 {strides = array<i32>} : memref<2x64xf32, #tpu.memory_space<vmem>>, vector<2x32xf32>,
    %c0_158 = arith.constant 0 : index
    %c0_159 = arith.constant 0 : index
    %496 = vector.load %arg13[%c0_158, %c0_159] : memref<2x64xf32, #tpu.memory_space<vmem>>, vector<2x64xf32>
    %497 = arith.truncf %496 : vector<2x64xf32> to vector<2x64xbf16>
    %cst_160 = arith.constant dense<0.000000e+00> : vector<2x128xf32>
    %498 = tpu.matmul %497, %1, %cst_160 {dimension_numbers = #tpu.dot_dimension_numbers<[1], [0], [0], [1], [0, 0, 1, 1], [], []>} : vector<2x64xbf16>, vector<64x128xbf16>, vector<2x128xf32> -> vector<2x128xf32>
    %499 = vector.broadcast %2 : vector<1x128xf32> to vector<2x128xf32>
    %500 = arith.addf %498, %499 : vector<2x128xf32>
    %501 = vector.extract_strided_slice %500 {offsets = [0, 0], sizes = [2, 32], strides = [1, 1]} : vector<2x128xf32> to vector<2x32xf32>
    %502 = arith.negf %501 : vector<2x32xf32>
    %503 = math.exp %502 : vector<2x32xf32>
    %cst_161 = arith.constant 1.000000e+00 : f32
    %504 = vector.broadcast %cst_161 : f32 to vector<2x32xf32>
    %505 = arith.addf %504, %503 : vector<2x32xf32>
    %506 = arith.divf %504, %505 : vector<2x32xf32>
    %507 = vector.extract_strided_slice %500 {offsets = [0, 32], sizes = [2, 32], strides = [1, 1]} : vector<2x128xf32> to vector<2x32xf32>
    %508 = arith.negf %507 : vector<2x32xf32>
    %509 = math.exp %508 : vector<2x32xf32>
    %cst_162 = arith.constant 1.000000e+00 : f32
    %510 = vector.broadcast %cst_162 : f32 to vector<2x32xf32>
    %511 = arith.addf %510, %509 : vector<2x32xf32>
    %512 = arith.divf %510, %511 : vector<2x32xf32>
    %513 = vector.extract_strided_slice %500 {offsets = [0, 64], sizes = [2, 32], strides = [1, 1]} : vector<2x128xf32> to vector<2x32xf32>
    %514 = math.tanh %513 : vector<2x32xf32>
    %515 = vector.extract_strided_slice %500 {offsets = [0, 96], sizes = [2, 32], strides = [1, 1]} : vector<2x128xf32> to vector<2x32xf32>
    %516 = arith.negf %515 : vector<2x32xf32>
    %517 = math.exp %516 : vector<2x32xf32>
    %cst_163 = arith.constant 1.000000e+00 : f32
    %518 = vector.broadcast %cst_163 : f32 to vector<2x32xf32>
    %519 = arith.addf %518, %517 : vector<2x32xf32>
    %520 = arith.divf %518, %519 : vector<2x32xf32>
    %521 = arith.mulf %512, %458 : vector<2x32xf32>
    %522 = arith.mulf %506, %514 : vector<2x32xf32>
    %523 = arith.addf %521, %522 : vector<2x32xf32>
    %524 = math.tanh %523 : vector<2x32xf32>
    %525 = arith.mulf %520, %524 : vector<2x32xf32>
    %c0_164 = arith.constant 0 : index
    %c7_165 = arith.constant 7 : index
    %c0_166 = arith.constant 0 : index
    %526 = vector.load %arg12[%c0_164, %c7_165, %c0_166] : memref<2x8x32xf32, #tpu.memory_space<vmem>>, vector<2x1x32xf32>
    %527 = vector.shape_cast %526 : vector<2x1x32xf32> to vector<2x32xf32>
    %528 = vector.shape_cast %525 : vector<2x32xf32> to vector<2x1x32xf32>
    tpu.vector_store %arg12[%c0_164, %c7_165, %c0_166], %528 {strides = array<i32>} : memref<2x8x32xf32, #tpu.memory_space<vmem>>, vector<2x1x32xf32>,
    %c0_167 = arith.constant 0 : index
    %c0_168 = arith.constant 0 : index
    %c0_169 = arith.constant 0 : index
    %529 = vector.load %arg12[%c0_167, %c0_168, %c0_169] : memref<2x8x32xf32, #tpu.memory_space<vmem>>, vector<2x8x32xf32>
    %530 = tpu.iota {dimensions = array<i32: 1>} : vector<2x8xi32>
    %c0_170 = arith.constant 0 : index
    %c0_171 = arith.constant 0 : index
    %531 = vector.load %arg2[%c0_170, %c0_171] : memref<2x1xi32, #tpu.memory_space<vmem>>, vector<2x1xi32>
    %532 = vector.broadcast %531 : vector<2x1xi32> to vector<2x8xi32>
    %533 = arith.cmpi slt, %530, %532 : vector<2x8xi32>
    %c0_172 = arith.constant 0 : index
    %c0_173 = arith.constant 0 : index
    %c0_174 = arith.constant 0 : index
    %534 = vector.load %arg1[%c0_172, %c0_173, %c0_174] : memref<8x2x128xf32, #tpu.memory_space<vmem>>, vector<1x2x128xf32>
    %535 = vector.shape_cast %534 : vector<1x2x128xf32> to vector<2x128xf32>
    %536 = arith.truncf %493 : vector<2x32xf32> to vector<2x32xbf16>
    %cst_175 = arith.constant dense<0.000000e+00> : vector<2x128xf32>
    %537 = tpu.matmul %536, %3, %cst_175 {dimension_numbers = #tpu.dot_dimension_numbers<[1], [0], [0], [1], [0, 0, 1, 1], [], []>} : vector<2x32xbf16>, vector<32x128xbf16>, vector<2x128xf32> -> vector<2x128xf32>
    %538 = arith.addf %535, %537 : vector<2x128xf32>
    %539 = vector.extract_strided_slice %538 {offsets = [0, 0], sizes = [2, 32], strides = [1, 1]} : vector<2x128xf32> to vector<2x32xf32>
    %540 = arith.negf %539 : vector<2x32xf32>
    %541 = math.exp %540 : vector<2x32xf32>
    %cst_176 = arith.constant 1.000000e+00 : f32
    %542 = vector.broadcast %cst_176 : f32 to vector<2x32xf32>
    %543 = arith.addf %542, %541 : vector<2x32xf32>
    %544 = arith.divf %542, %543 : vector<2x32xf32>
    %545 = vector.extract_strided_slice %538 {offsets = [0, 32], sizes = [2, 32], strides = [1, 1]} : vector<2x128xf32> to vector<2x32xf32>
    %546 = arith.negf %545 : vector<2x32xf32>
    %547 = math.exp %546 : vector<2x32xf32>
    %cst_177 = arith.constant 1.000000e+00 : f32
    %548 = vector.broadcast %cst_177 : f32 to vector<2x32xf32>
    %549 = arith.addf %548, %547 : vector<2x32xf32>
    %550 = arith.divf %548, %549 : vector<2x32xf32>
    %551 = vector.extract_strided_slice %538 {offsets = [0, 64], sizes = [2, 32], strides = [1, 1]} : vector<2x128xf32> to vector<2x32xf32>
    %552 = math.tanh %551 : vector<2x32xf32>
    %553 = vector.extract_strided_slice %538 {offsets = [0, 96], sizes = [2, 32], strides = [1, 1]} : vector<2x128xf32> to vector<2x32xf32>
    %554 = arith.negf %553 : vector<2x32xf32>
    %555 = math.exp %554 : vector<2x32xf32>
    %cst_178 = arith.constant 1.000000e+00 : f32
    %556 = vector.broadcast %cst_178 : f32 to vector<2x32xf32>
    %557 = arith.addf %556, %555 : vector<2x32xf32>
    %558 = arith.divf %556, %557 : vector<2x32xf32>
    %559 = arith.mulf %550, %491 : vector<2x32xf32>
    %560 = arith.mulf %544, %552 : vector<2x32xf32>
    %561 = arith.addf %559, %560 : vector<2x32xf32>
    %562 = math.tanh %561 : vector<2x32xf32>
    %563 = arith.mulf %558, %562 : vector<2x32xf32>
    %c0_179 = arith.constant 0 : index
    %c0_180 = arith.constant 0 : index
    %564 = vector.load %arg13[%c0_179, %c0_180] : memref<2x64xf32, #tpu.memory_space<vmem>>, vector<2x32xf32>
    tpu.vector_store %arg13[%c0_179, %c0_180], %563 {strides = array<i32>} : memref<2x64xf32, #tpu.memory_space<vmem>>, vector<2x32xf32>,
    %c0_181 = arith.constant 0 : index
    %c32_182 = arith.constant 32 : index
    %565 = vector.load %arg13[%c0_181, %c32_182] : memref<2x64xf32, #tpu.memory_space<vmem>>, vector<2x32xf32>
    tpu.vector_store %arg13[%c0_181, %c32_182], %525 {strides = array<i32>} : memref<2x64xf32, #tpu.memory_space<vmem>>, vector<2x32xf32>,
    %c0_183 = arith.constant 0 : index
    %c0_184 = arith.constant 0 : index
    %566 = vector.load %arg13[%c0_183, %c0_184] : memref<2x64xf32, #tpu.memory_space<vmem>>, vector<2x64xf32>
    %567 = arith.truncf %566 : vector<2x64xf32> to vector<2x64xbf16>
    %cst_185 = arith.constant dense<0.000000e+00> : vector<2x128xf32>
    %568 = tpu.matmul %567, %4, %cst_185 {dimension_numbers = #tpu.dot_dimension_numbers<[1], [0], [0], [1], [0, 0, 1, 1], [], []>} : vector<2x64xbf16>, vector<64x128xbf16>, vector<2x128xf32> -> vector<2x128xf32>
    %569 = vector.broadcast %5 : vector<1x128xf32> to vector<2x128xf32>
    %570 = arith.addf %568, %569 : vector<2x128xf32>
    %571 = vector.extract_strided_slice %570 {offsets = [0, 0], sizes = [2, 32], strides = [1, 1]} : vector<2x128xf32> to vector<2x32xf32>
    %572 = arith.negf %571 : vector<2x32xf32>
    %573 = math.exp %572 : vector<2x32xf32>
    %cst_186 = arith.constant 1.000000e+00 : f32
    %574 = vector.broadcast %cst_186 : f32 to vector<2x32xf32>
    %575 = arith.addf %574, %573 : vector<2x32xf32>
    %576 = arith.divf %574, %575 : vector<2x32xf32>
    %577 = vector.extract_strided_slice %570 {offsets = [0, 32], sizes = [2, 32], strides = [1, 1]} : vector<2x128xf32> to vector<2x32xf32>
    %578 = arith.negf %577 : vector<2x32xf32>
    %579 = math.exp %578 : vector<2x32xf32>
    %cst_187 = arith.constant 1.000000e+00 : f32
    %580 = vector.broadcast %cst_187 : f32 to vector<2x32xf32>
    %581 = arith.addf %580, %579 : vector<2x32xf32>
    %582 = arith.divf %580, %581 : vector<2x32xf32>
    %583 = vector.extract_strided_slice %570 {offsets = [0, 64], sizes = [2, 32], strides = [1, 1]} : vector<2x128xf32> to vector<2x32xf32>
    %584 = math.tanh %583 : vector<2x32xf32>
    %585 = vector.extract_strided_slice %570 {offsets = [0, 96], sizes = [2, 32], strides = [1, 1]} : vector<2x128xf32> to vector<2x32xf32>
    %586 = arith.negf %585 : vector<2x32xf32>
    %587 = math.exp %586 : vector<2x32xf32>
    %cst_188 = arith.constant 1.000000e+00 : f32
    %588 = vector.broadcast %cst_188 : f32 to vector<2x32xf32>
    %589 = arith.addf %588, %587 : vector<2x32xf32>
    %590 = arith.divf %588, %589 : vector<2x32xf32>
    %591 = arith.mulf %582, %523 : vector<2x32xf32>
    %592 = arith.mulf %576, %584 : vector<2x32xf32>
    %593 = arith.addf %591, %592 : vector<2x32xf32>
    %594 = math.tanh %593 : vector<2x32xf32>
    %595 = arith.mulf %590, %594 : vector<2x32xf32>
    %596 = vector.shape_cast %595 : vector<2x32xf32> to vector<2x1x32xf32>
    %597 = vector.broadcast %596 : vector<2x1x32xf32> to vector<2x8x32xf32>
    %598 = arith.mulf %529, %597 : vector<2x8x32xf32>
    %cst_189 = arith.constant dense<0.000000e+00> : vector<2x8xf32>
    %599 = vector.multi_reduction <add>, %598, %cst_189 [2] : vector<2x8x32xf32> to vector<2x8xf32>
    %cst_190 = arith.constant -1.000000e+30 : f32
    %600 = vector.broadcast %cst_190 : f32 to vector<2x8xf32>
    %601 = arith.select %533, %599, %600 : vector<2x8xi1>, vector<2x8xf32>
    %cst_191 = arith.constant dense<0xFF800000> : vector<2xf32>
    %602 = vector.multi_reduction <maximumf>, %601, %cst_191 [1] : vector<2x8xf32> to vector<2xf32>
    %603 = vector.shape_cast %602 : vector<2xf32> to vector<2x1xf32>
    %604 = vector.broadcast %603 : vector<2x1xf32> to vector<2x8xf32>
    %605 = arith.subf %601, %604 : vector<2x8xf32>
    %606 = math.exp %605 : vector<2x8xf32>
    %cst_192 = arith.constant dense<0.000000e+00> : vector<2xf32>
    %607 = vector.multi_reduction <add>, %606, %cst_192 [1] : vector<2x8xf32> to vector<2xf32>
    %608 = vector.shape_cast %607 : vector<2xf32> to vector<2x1xf32>
    %609 = tpu.reciprocal %608 {approx = true} : vector<2x1xf32> -> vector<2x1xf32>
    %610 = vector.broadcast %609 : vector<2x1xf32> to vector<2x8xf32>
    %611 = arith.mulf %606, %610 : vector<2x8xf32>
    %612 = vector.shape_cast %611 : vector<2x8xf32> to vector<2x8x1xf32>
    %613 = vector.broadcast %612 : vector<2x8x1xf32> to vector<2x8x32xf32>
    %614 = arith.mulf %613, %529 : vector<2x8x32xf32>
    %cst_193 = arith.constant dense<0.000000e+00> : vector<2x32xf32>
    %615 = vector.multi_reduction <add>, %614, %cst_193 [1] : vector<2x8x32xf32> to vector<2x32xf32>
    %c0_194 = arith.constant 0 : index
    %c0_195 = arith.constant 0 : index
    %616 = vector.load %arg13[%c0_194, %c0_195] : memref<2x64xf32, #tpu.memory_space<vmem>>, vector<2x32xf32>
    tpu.vector_store %arg13[%c0_194, %c0_195], %595 {strides = array<i32>} : memref<2x64xf32, #tpu.memory_space<vmem>>, vector<2x32xf32>,
    %c0_196 = arith.constant 0 : index
    %c32_197 = arith.constant 32 : index
    %617 = vector.load %arg13[%c0_196, %c32_197] : memref<2x64xf32, #tpu.memory_space<vmem>>, vector<2x32xf32>
    tpu.vector_store %arg13[%c0_196, %c32_197], %615 {strides = array<i32>} : memref<2x64xf32, #tpu.memory_space<vmem>>, vector<2x32xf32>,
    %c0_198 = arith.constant 0 : index
    %c0_199 = arith.constant 0 : index
    %618 = vector.load %arg13[%c0_198, %c0_199] : memref<2x64xf32, #tpu.memory_space<vmem>>, vector<2x64xf32>
    %619 = arith.truncf %618 : vector<2x64xf32> to vector<2x64xbf16>
    %cst_200 = arith.constant dense<0.000000e+00> : vector<2x32xf32>
    %620 = tpu.matmul %619, %6, %cst_200 {dimension_numbers = #tpu.dot_dimension_numbers<[1], [0], [0], [1], [0, 0, 1, 1], [], []>} : vector<2x64xbf16>, vector<64x32xbf16>, vector<2x32xf32> -> vector<2x32xf32>
    %621 = vector.broadcast %7 : vector<1x32xf32> to vector<2x32xf32>
    %622 = arith.addf %620, %621 : vector<2x32xf32>
    %cst_201 = arith.constant dense<0xFF800000> : vector<2xf32>
    %623 = vector.multi_reduction <maximumf>, %622, %cst_201 [1] : vector<2x32xf32> to vector<2xf32>
    %624 = vector.shape_cast %623 : vector<2xf32> to vector<2x1xf32>
    %625 = vector.broadcast %624 : vector<2x1xf32> to vector<2x32xf32>
    %626 = arith.subf %622, %625 : vector<2x32xf32>
    %627 = math.exp %626 : vector<2x32xf32>
    %cst_202 = arith.constant dense<0.000000e+00> : vector<2xf32>
    %628 = vector.multi_reduction <add>, %627, %cst_202 [1] : vector<2x32xf32> to vector<2xf32>
    %629 = vector.shape_cast %628 : vector<2xf32> to vector<2x1xf32>
    %630 = math.log %629 : vector<2x1xf32>
    %631 = arith.addf %624, %630 : vector<2x1xf32>
    %632 = vector.broadcast %631 : vector<2x1xf32> to vector<2x32xf32>
    %633 = arith.subf %622, %632 : vector<2x32xf32>
    %c0_203 = arith.constant 0 : index
    %c0_204 = arith.constant 0 : index
    %c0_205 = arith.constant 0 : index
    %634 = vector.load %arg11[%c0_203, %c0_204, %c0_205] : memref<2x8x32xf32, #tpu.memory_space<vmem>>, vector<2x1x32xf32>
    %635 = vector.shape_cast %634 : vector<2x1x32xf32> to vector<2x32xf32>
    %636 = vector.shape_cast %633 : vector<2x32xf32> to vector<2x1x32xf32>
    tpu.vector_store %arg11[%c0_203, %c0_204, %c0_205], %636 {strides = array<i32>} : memref<2x8x32xf32, #tpu.memory_space<vmem>>, vector<2x1x32xf32>,
    %c1_206 = arith.constant 1 : index
    %c0_207 = arith.constant 0 : index
    %c0_208 = arith.constant 0 : index
    %637 = vector.load %arg1[%c1_206, %c0_207, %c0_208] : memref<8x2x128xf32, #tpu.memory_space<vmem>>, vector<1x2x128xf32>
    %638 = vector.shape_cast %637 : vector<1x2x128xf32> to vector<2x128xf32>
    %639 = arith.truncf %563 : vector<2x32xf32> to vector<2x32xbf16>
    %cst_209 = arith.constant dense<0.000000e+00> : vector<2x128xf32>
    %640 = tpu.matmul %639, %3, %cst_209 {dimension_numbers = #tpu.dot_dimension_numbers<[1], [0], [0], [1], [0, 0, 1, 1], [], []>} : vector<2x32xbf16>, vector<32x128xbf16>, vector<2x128xf32> -> vector<2x128xf32>
    %641 = arith.addf %638, %640 : vector<2x128xf32>
    %642 = vector.extract_strided_slice %641 {offsets = [0, 0], sizes = [2, 32], strides = [1, 1]} : vector<2x128xf32> to vector<2x32xf32>
    %643 = arith.negf %642 : vector<2x32xf32>
    %644 = math.exp %643 : vector<2x32xf32>
    %cst_210 = arith.constant 1.000000e+00 : f32
    %645 = vector.broadcast %cst_210 : f32 to vector<2x32xf32>
    %646 = arith.addf %645, %644 : vector<2x32xf32>
    %647 = arith.divf %645, %646 : vector<2x32xf32>
    %648 = vector.extract_strided_slice %641 {offsets = [0, 32], sizes = [2, 32], strides = [1, 1]} : vector<2x128xf32> to vector<2x32xf32>
    %649 = arith.negf %648 : vector<2x32xf32>
    %650 = math.exp %649 : vector<2x32xf32>
    %cst_211 = arith.constant 1.000000e+00 : f32
    %651 = vector.broadcast %cst_211 : f32 to vector<2x32xf32>
    %652 = arith.addf %651, %650 : vector<2x32xf32>
    %653 = arith.divf %651, %652 : vector<2x32xf32>
    %654 = vector.extract_strided_slice %641 {offsets = [0, 64], sizes = [2, 32], strides = [1, 1]} : vector<2x128xf32> to vector<2x32xf32>
    %655 = math.tanh %654 : vector<2x32xf32>
    %656 = vector.extract_strided_slice %641 {offsets = [0, 96], sizes = [2, 32], strides = [1, 1]} : vector<2x128xf32> to vector<2x32xf32>
    %657 = arith.negf %656 : vector<2x32xf32>
    %658 = math.exp %657 : vector<2x32xf32>
    %cst_212 = arith.constant 1.000000e+00 : f32
    %659 = vector.broadcast %cst_212 : f32 to vector<2x32xf32>
    %660 = arith.addf %659, %658 : vector<2x32xf32>
    %661 = arith.divf %659, %660 : vector<2x32xf32>
    %662 = arith.mulf %653, %561 : vector<2x32xf32>
    %663 = arith.mulf %647, %655 : vector<2x32xf32>
    %664 = arith.addf %662, %663 : vector<2x32xf32>
    %665 = math.tanh %664 : vector<2x32xf32>
    %666 = arith.mulf %661, %665 : vector<2x32xf32>
    %c0_213 = arith.constant 0 : index
    %c0_214 = arith.constant 0 : index
    %667 = vector.load %arg13[%c0_213, %c0_214] : memref<2x64xf32, #tpu.memory_space<vmem>>, vector<2x32xf32>
    tpu.vector_store %arg13[%c0_213, %c0_214], %666 {strides = array<i32>} : memref<2x64xf32, #tpu.memory_space<vmem>>, vector<2x32xf32>,
    %c0_215 = arith.constant 0 : index
    %c32_216 = arith.constant 32 : index
    %668 = vector.load %arg13[%c0_215, %c32_216] : memref<2x64xf32, #tpu.memory_space<vmem>>, vector<2x32xf32>
    tpu.vector_store %arg13[%c0_215, %c32_216], %595 {strides = array<i32>} : memref<2x64xf32, #tpu.memory_space<vmem>>, vector<2x32xf32>,
    %c0_217 = arith.constant 0 : index
    %c0_218 = arith.constant 0 : index
    %669 = vector.load %arg13[%c0_217, %c0_218] : memref<2x64xf32, #tpu.memory_space<vmem>>, vector<2x64xf32>
    %670 = arith.truncf %669 : vector<2x64xf32> to vector<2x64xbf16>
    %cst_219 = arith.constant dense<0.000000e+00> : vector<2x128xf32>
    %671 = tpu.matmul %670, %4, %cst_219 {dimension_numbers = #tpu.dot_dimension_numbers<[1], [0], [0], [1], [0, 0, 1, 1], [], []>} : vector<2x64xbf16>, vector<64x128xbf16>, vector<2x128xf32> -> vector<2x128xf32>
    %672 = vector.broadcast %5 : vector<1x128xf32> to vector<2x128xf32>
    %673 = arith.addf %671, %672 : vector<2x128xf32>
    %674 = vector.extract_strided_slice %673 {offsets = [0, 0], sizes = [2, 32], strides = [1, 1]} : vector<2x128xf32> to vector<2x32xf32>
    %675 = arith.negf %674 : vector<2x32xf32>
    %676 = math.exp %675 : vector<2x32xf32>
    %cst_220 = arith.constant 1.000000e+00 : f32
    %677 = vector.broadcast %cst_220 : f32 to vector<2x32xf32>
    %678 = arith.addf %677, %676 : vector<2x32xf32>
    %679 = arith.divf %677, %678 : vector<2x32xf32>
    %680 = vector.extract_strided_slice %673 {offsets = [0, 32], sizes = [2, 32], strides = [1, 1]} : vector<2x128xf32> to vector<2x32xf32>
    %681 = arith.negf %680 : vector<2x32xf32>
    %682 = math.exp %681 : vector<2x32xf32>
    %cst_221 = arith.constant 1.000000e+00 : f32
    %683 = vector.broadcast %cst_221 : f32 to vector<2x32xf32>
    %684 = arith.addf %683, %682 : vector<2x32xf32>
    %685 = arith.divf %683, %684 : vector<2x32xf32>
    %686 = vector.extract_strided_slice %673 {offsets = [0, 64], sizes = [2, 32], strides = [1, 1]} : vector<2x128xf32> to vector<2x32xf32>
    %687 = math.tanh %686 : vector<2x32xf32>
    %688 = vector.extract_strided_slice %673 {offsets = [0, 96], sizes = [2, 32], strides = [1, 1]} : vector<2x128xf32> to vector<2x32xf32>
    %689 = arith.negf %688 : vector<2x32xf32>
    %690 = math.exp %689 : vector<2x32xf32>
    %cst_222 = arith.constant 1.000000e+00 : f32
    %691 = vector.broadcast %cst_222 : f32 to vector<2x32xf32>
    %692 = arith.addf %691, %690 : vector<2x32xf32>
    %693 = arith.divf %691, %692 : vector<2x32xf32>
    %694 = arith.mulf %685, %593 : vector<2x32xf32>
    %695 = arith.mulf %679, %687 : vector<2x32xf32>
    %696 = arith.addf %694, %695 : vector<2x32xf32>
    %697 = math.tanh %696 : vector<2x32xf32>
    %698 = arith.mulf %693, %697 : vector<2x32xf32>
    %699 = vector.shape_cast %698 : vector<2x32xf32> to vector<2x1x32xf32>
    %700 = vector.broadcast %699 : vector<2x1x32xf32> to vector<2x8x32xf32>
    %701 = arith.mulf %529, %700 : vector<2x8x32xf32>
    %cst_223 = arith.constant dense<0.000000e+00> : vector<2x8xf32>
    %702 = vector.multi_reduction <add>, %701, %cst_223 [2] : vector<2x8x32xf32> to vector<2x8xf32>
    %cst_224 = arith.constant -1.000000e+30 : f32
    %703 = vector.broadcast %cst_224 : f32 to vector<2x8xf32>
    %704 = arith.select %533, %702, %703 : vector<2x8xi1>, vector<2x8xf32>
    %cst_225 = arith.constant dense<0xFF800000> : vector<2xf32>
    %705 = vector.multi_reduction <maximumf>, %704, %cst_225 [1] : vector<2x8xf32> to vector<2xf32>
    %706 = vector.shape_cast %705 : vector<2xf32> to vector<2x1xf32>
    %707 = vector.broadcast %706 : vector<2x1xf32> to vector<2x8xf32>
    %708 = arith.subf %704, %707 : vector<2x8xf32>
    %709 = math.exp %708 : vector<2x8xf32>
    %cst_226 = arith.constant dense<0.000000e+00> : vector<2xf32>
    %710 = vector.multi_reduction <add>, %709, %cst_226 [1] : vector<2x8xf32> to vector<2xf32>
    %711 = vector.shape_cast %710 : vector<2xf32> to vector<2x1xf32>
    %712 = tpu.reciprocal %711 {approx = true} : vector<2x1xf32> -> vector<2x1xf32>
    %713 = vector.broadcast %712 : vector<2x1xf32> to vector<2x8xf32>
    %714 = arith.mulf %709, %713 : vector<2x8xf32>
    %715 = vector.shape_cast %714 : vector<2x8xf32> to vector<2x8x1xf32>
    %716 = vector.broadcast %715 : vector<2x8x1xf32> to vector<2x8x32xf32>
    %717 = arith.mulf %716, %529 : vector<2x8x32xf32>
    %cst_227 = arith.constant dense<0.000000e+00> : vector<2x32xf32>
    %718 = vector.multi_reduction <add>, %717, %cst_227 [1] : vector<2x8x32xf32> to vector<2x32xf32>
    %c0_228 = arith.constant 0 : index
    %c0_229 = arith.constant 0 : index
    %719 = vector.load %arg13[%c0_228, %c0_229] : memref<2x64xf32, #tpu.memory_space<vmem>>, vector<2x32xf32>
    tpu.vector_store %arg13[%c0_228, %c0_229], %698 {strides = array<i32>} : memref<2x64xf32, #tpu.memory_space<vmem>>, vector<2x32xf32>,
    %c0_230 = arith.constant 0 : index
    %c32_231 = arith.constant 32 : index
    %720 = vector.load %arg13[%c0_230, %c32_231] : memref<2x64xf32, #tpu.memory_space<vmem>>, vector<2x32xf32>
    tpu.vector_store %arg13[%c0_230, %c32_231], %718 {strides = array<i32>} : memref<2x64xf32, #tpu.memory_space<vmem>>, vector<2x32xf32>,
    %c0_232 = arith.constant 0 : index
    %c0_233 = arith.constant 0 : index
    %721 = vector.load %arg13[%c0_232, %c0_233] : memref<2x64xf32, #tpu.memory_space<vmem>>, vector<2x64xf32>
    %722 = arith.truncf %721 : vector<2x64xf32> to vector<2x64xbf16>
    %cst_234 = arith.constant dense<0.000000e+00> : vector<2x32xf32>
    %723 = tpu.matmul %722, %6, %cst_234 {dimension_numbers = #tpu.dot_dimension_numbers<[1], [0], [0], [1], [0, 0, 1, 1], [], []>} : vector<2x64xbf16>, vector<64x32xbf16>, vector<2x32xf32> -> vector<2x32xf32>
    %724 = vector.broadcast %7 : vector<1x32xf32> to vector<2x32xf32>
    %725 = arith.addf %723, %724 : vector<2x32xf32>
    %cst_235 = arith.constant dense<0xFF800000> : vector<2xf32>
    %726 = vector.multi_reduction <maximumf>, %725, %cst_235 [1] : vector<2x32xf32> to vector<2xf32>
    %727 = vector.shape_cast %726 : vector<2xf32> to vector<2x1xf32>
    %728 = vector.broadcast %727 : vector<2x1xf32> to vector<2x32xf32>
    %729 = arith.subf %725, %728 : vector<2x32xf32>
    %730 = math.exp %729 : vector<2x32xf32>
    %cst_236 = arith.constant dense<0.000000e+00> : vector<2xf32>
    %731 = vector.multi_reduction <add>, %730, %cst_236 [1] : vector<2x32xf32> to vector<2xf32>
    %732 = vector.shape_cast %731 : vector<2xf32> to vector<2x1xf32>
    %733 = math.log %732 : vector<2x1xf32>
    %734 = arith.addf %727, %733 : vector<2x1xf32>
    %735 = vector.broadcast %734 : vector<2x1xf32> to vector<2x32xf32>
    %736 = arith.subf %725, %735 : vector<2x32xf32>
    %c0_237 = arith.constant 0 : index
    %c1_238 = arith.constant 1 : index
    %c0_239 = arith.constant 0 : index
    %737 = vector.load %arg11[%c0_237, %c1_238, %c0_239] : memref<2x8x32xf32, #tpu.memory_space<vmem>>, vector<2x1x32xf32>
    %738 = vector.shape_cast %737 : vector<2x1x32xf32> to vector<2x32xf32>
    %739 = vector.shape_cast %736 : vector<2x32xf32> to vector<2x1x32xf32>
    tpu.vector_store %arg11[%c0_237, %c1_238, %c0_239], %739 {strides = array<i32>} : memref<2x8x32xf32, #tpu.memory_space<vmem>>, vector<2x1x32xf32>,
    %c2_240 = arith.constant 2 : index
    %c0_241 = arith.constant 0 : index
    %c0_242 = arith.constant 0 : index
    %740 = vector.load %arg1[%c2_240, %c0_241, %c0_242] : memref<8x2x128xf32, #tpu.memory_space<vmem>>, vector<1x2x128xf32>
    %741 = vector.shape_cast %740 : vector<1x2x128xf32> to vector<2x128xf32>
    %742 = arith.truncf %666 : vector<2x32xf32> to vector<2x32xbf16>
    %cst_243 = arith.constant dense<0.000000e+00> : vector<2x128xf32>
    %743 = tpu.matmul %742, %3, %cst_243 {dimension_numbers = #tpu.dot_dimension_numbers<[1], [0], [0], [1], [0, 0, 1, 1], [], []>} : vector<2x32xbf16>, vector<32x128xbf16>, vector<2x128xf32> -> vector<2x128xf32>
    %744 = arith.addf %741, %743 : vector<2x128xf32>
    %745 = vector.extract_strided_slice %744 {offsets = [0, 0], sizes = [2, 32], strides = [1, 1]} : vector<2x128xf32> to vector<2x32xf32>
    %746 = arith.negf %745 : vector<2x32xf32>
    %747 = math.exp %746 : vector<2x32xf32>
    %cst_244 = arith.constant 1.000000e+00 : f32
    %748 = vector.broadcast %cst_244 : f32 to vector<2x32xf32>
    %749 = arith.addf %748, %747 : vector<2x32xf32>
    %750 = arith.divf %748, %749 : vector<2x32xf32>
    %751 = vector.extract_strided_slice %744 {offsets = [0, 32], sizes = [2, 32], strides = [1, 1]} : vector<2x128xf32> to vector<2x32xf32>
    %752 = arith.negf %751 : vector<2x32xf32>
    %753 = math.exp %752 : vector<2x32xf32>
    %cst_245 = arith.constant 1.000000e+00 : f32
    %754 = vector.broadcast %cst_245 : f32 to vector<2x32xf32>
    %755 = arith.addf %754, %753 : vector<2x32xf32>
    %756 = arith.divf %754, %755 : vector<2x32xf32>
    %757 = vector.extract_strided_slice %744 {offsets = [0, 64], sizes = [2, 32], strides = [1, 1]} : vector<2x128xf32> to vector<2x32xf32>
    %758 = math.tanh %757 : vector<2x32xf32>
    %759 = vector.extract_strided_slice %744 {offsets = [0, 96], sizes = [2, 32], strides = [1, 1]} : vector<2x128xf32> to vector<2x32xf32>
    %760 = arith.negf %759 : vector<2x32xf32>
    %761 = math.exp %760 : vector<2x32xf32>
    %cst_246 = arith.constant 1.000000e+00 : f32
    %762 = vector.broadcast %cst_246 : f32 to vector<2x32xf32>
    %763 = arith.addf %762, %761 : vector<2x32xf32>
    %764 = arith.divf %762, %763 : vector<2x32xf32>
    %765 = arith.mulf %756, %664 : vector<2x32xf32>
    %766 = arith.mulf %750, %758 : vector<2x32xf32>
    %767 = arith.addf %765, %766 : vector<2x32xf32>
    %768 = math.tanh %767 : vector<2x32xf32>
    %769 = arith.mulf %764, %768 : vector<2x32xf32>
    %c0_247 = arith.constant 0 : index
    %c0_248 = arith.constant 0 : index
    %770 = vector.load %arg13[%c0_247, %c0_248] : memref<2x64xf32, #tpu.memory_space<vmem>>, vector<2x32xf32>
    tpu.vector_store %arg13[%c0_247, %c0_248], %769 {strides = array<i32>} : memref<2x64xf32, #tpu.memory_space<vmem>>, vector<2x32xf32>,
    %c0_249 = arith.constant 0 : index
    %c32_250 = arith.constant 32 : index
    %771 = vector.load %arg13[%c0_249, %c32_250] : memref<2x64xf32, #tpu.memory_space<vmem>>, vector<2x32xf32>
    tpu.vector_store %arg13[%c0_249, %c32_250], %698 {strides = array<i32>} : memref<2x64xf32, #tpu.memory_space<vmem>>, vector<2x32xf32>,
    %c0_251 = arith.constant 0 : index
    %c0_252 = arith.constant 0 : index
    %772 = vector.load %arg13[%c0_251, %c0_252] : memref<2x64xf32, #tpu.memory_space<vmem>>, vector<2x64xf32>
    %773 = arith.truncf %772 : vector<2x64xf32> to vector<2x64xbf16>
    %cst_253 = arith.constant dense<0.000000e+00> : vector<2x128xf32>
    %774 = tpu.matmul %773, %4, %cst_253 {dimension_numbers = #tpu.dot_dimension_numbers<[1], [0], [0], [1], [0, 0, 1, 1], [], []>} : vector<2x64xbf16>, vector<64x128xbf16>, vector<2x128xf32> -> vector<2x128xf32>
    %775 = vector.broadcast %5 : vector<1x128xf32> to vector<2x128xf32>
    %776 = arith.addf %774, %775 : vector<2x128xf32>
    %777 = vector.extract_strided_slice %776 {offsets = [0, 0], sizes = [2, 32], strides = [1, 1]} : vector<2x128xf32> to vector<2x32xf32>
    %778 = arith.negf %777 : vector<2x32xf32>
    %779 = math.exp %778 : vector<2x32xf32>
    %cst_254 = arith.constant 1.000000e+00 : f32
    %780 = vector.broadcast %cst_254 : f32 to vector<2x32xf32>
    %781 = arith.addf %780, %779 : vector<2x32xf32>
    %782 = arith.divf %780, %781 : vector<2x32xf32>
    %783 = vector.extract_strided_slice %776 {offsets = [0, 32], sizes = [2, 32], strides = [1, 1]} : vector<2x128xf32> to vector<2x32xf32>
    %784 = arith.negf %783 : vector<2x32xf32>
    %785 = math.exp %784 : vector<2x32xf32>
    %cst_255 = arith.constant 1.000000e+00 : f32
    %786 = vector.broadcast %cst_255 : f32 to vector<2x32xf32>
    %787 = arith.addf %786, %785 : vector<2x32xf32>
    %788 = arith.divf %786, %787 : vector<2x32xf32>
    %789 = vector.extract_strided_slice %776 {offsets = [0, 64], sizes = [2, 32], strides = [1, 1]} : vector<2x128xf32> to vector<2x32xf32>
    %790 = math.tanh %789 : vector<2x32xf32>
    %791 = vector.extract_strided_slice %776 {offsets = [0, 96], sizes = [2, 32], strides = [1, 1]} : vector<2x128xf32> to vector<2x32xf32>
    %792 = arith.negf %791 : vector<2x32xf32>
    %793 = math.exp %792 : vector<2x32xf32>
    %cst_256 = arith.constant 1.000000e+00 : f32
    %794 = vector.broadcast %cst_256 : f32 to vector<2x32xf32>
    %795 = arith.addf %794, %793 : vector<2x32xf32>
    %796 = arith.divf %794, %795 : vector<2x32xf32>
    %797 = arith.mulf %788, %696 : vector<2x32xf32>
    %798 = arith.mulf %782, %790 : vector<2x32xf32>
    %799 = arith.addf %797, %798 : vector<2x32xf32>
    %800 = math.tanh %799 : vector<2x32xf32>
    %801 = arith.mulf %796, %800 : vector<2x32xf32>
    %802 = vector.shape_cast %801 : vector<2x32xf32> to vector<2x1x32xf32>
    %803 = vector.broadcast %802 : vector<2x1x32xf32> to vector<2x8x32xf32>
    %804 = arith.mulf %529, %803 : vector<2x8x32xf32>
    %cst_257 = arith.constant dense<0.000000e+00> : vector<2x8xf32>
    %805 = vector.multi_reduction <add>, %804, %cst_257 [2] : vector<2x8x32xf32> to vector<2x8xf32>
    %cst_258 = arith.constant -1.000000e+30 : f32
    %806 = vector.broadcast %cst_258 : f32 to vector<2x8xf32>
    %807 = arith.select %533, %805, %806 : vector<2x8xi1>, vector<2x8xf32>
    %cst_259 = arith.constant dense<0xFF800000> : vector<2xf32>
    %808 = vector.multi_reduction <maximumf>, %807, %cst_259 [1] : vector<2x8xf32> to vector<2xf32>
    %809 = vector.shape_cast %808 : vector<2xf32> to vector<2x1xf32>
    %810 = vector.broadcast %809 : vector<2x1xf32> to vector<2x8xf32>
    %811 = arith.subf %807, %810 : vector<2x8xf32>
    %812 = math.exp %811 : vector<2x8xf32>
    %cst_260 = arith.constant dense<0.000000e+00> : vector<2xf32>
    %813 = vector.multi_reduction <add>, %812, %cst_260 [1] : vector<2x8xf32> to vector<2xf32>
    %814 = vector.shape_cast %813 : vector<2xf32> to vector<2x1xf32>
    %815 = tpu.reciprocal %814 {approx = true} : vector<2x1xf32> -> vector<2x1xf32>
    %816 = vector.broadcast %815 : vector<2x1xf32> to vector<2x8xf32>
    %817 = arith.mulf %812, %816 : vector<2x8xf32>
    %818 = vector.shape_cast %817 : vector<2x8xf32> to vector<2x8x1xf32>
    %819 = vector.broadcast %818 : vector<2x8x1xf32> to vector<2x8x32xf32>
    %820 = arith.mulf %819, %529 : vector<2x8x32xf32>
    %cst_261 = arith.constant dense<0.000000e+00> : vector<2x32xf32>
    %821 = vector.multi_reduction <add>, %820, %cst_261 [1] : vector<2x8x32xf32> to vector<2x32xf32>
    %c0_262 = arith.constant 0 : index
    %c0_263 = arith.constant 0 : index
    %822 = vector.load %arg13[%c0_262, %c0_263] : memref<2x64xf32, #tpu.memory_space<vmem>>, vector<2x32xf32>
    tpu.vector_store %arg13[%c0_262, %c0_263], %801 {strides = array<i32>} : memref<2x64xf32, #tpu.memory_space<vmem>>, vector<2x32xf32>,
    %c0_264 = arith.constant 0 : index
    %c32_265 = arith.constant 32 : index
    %823 = vector.load %arg13[%c0_264, %c32_265] : memref<2x64xf32, #tpu.memory_space<vmem>>, vector<2x32xf32>
    tpu.vector_store %arg13[%c0_264, %c32_265], %821 {strides = array<i32>} : memref<2x64xf32, #tpu.memory_space<vmem>>, vector<2x32xf32>,
    %c0_266 = arith.constant 0 : index
    %c0_267 = arith.constant 0 : index
    %824 = vector.load %arg13[%c0_266, %c0_267] : memref<2x64xf32, #tpu.memory_space<vmem>>, vector<2x64xf32>
    %825 = arith.truncf %824 : vector<2x64xf32> to vector<2x64xbf16>
    %cst_268 = arith.constant dense<0.000000e+00> : vector<2x32xf32>
    %826 = tpu.matmul %825, %6, %cst_268 {dimension_numbers = #tpu.dot_dimension_numbers<[1], [0], [0], [1], [0, 0, 1, 1], [], []>} : vector<2x64xbf16>, vector<64x32xbf16>, vector<2x32xf32> -> vector<2x32xf32>
    %827 = vector.broadcast %7 : vector<1x32xf32> to vector<2x32xf32>
    %828 = arith.addf %826, %827 : vector<2x32xf32>
    %cst_269 = arith.constant dense<0xFF800000> : vector<2xf32>
    %829 = vector.multi_reduction <maximumf>, %828, %cst_269 [1] : vector<2x32xf32> to vector<2xf32>
    %830 = vector.shape_cast %829 : vector<2xf32> to vector<2x1xf32>
    %831 = vector.broadcast %830 : vector<2x1xf32> to vector<2x32xf32>
    %832 = arith.subf %828, %831 : vector<2x32xf32>
    %833 = math.exp %832 : vector<2x32xf32>
    %cst_270 = arith.constant dense<0.000000e+00> : vector<2xf32>
    %834 = vector.multi_reduction <add>, %833, %cst_270 [1] : vector<2x32xf32> to vector<2xf32>
    %835 = vector.shape_cast %834 : vector<2xf32> to vector<2x1xf32>
    %836 = math.log %835 : vector<2x1xf32>
    %837 = arith.addf %830, %836 : vector<2x1xf32>
    %838 = vector.broadcast %837 : vector<2x1xf32> to vector<2x32xf32>
    %839 = arith.subf %828, %838 : vector<2x32xf32>
    %c0_271 = arith.constant 0 : index
    %c2_272 = arith.constant 2 : index
    %c0_273 = arith.constant 0 : index
    %840 = vector.load %arg11[%c0_271, %c2_272, %c0_273] : memref<2x8x32xf32, #tpu.memory_space<vmem>>, vector<2x1x32xf32>
    %841 = vector.shape_cast %840 : vector<2x1x32xf32> to vector<2x32xf32>
    %842 = vector.shape_cast %839 : vector<2x32xf32> to vector<2x1x32xf32>
    tpu.vector_store %arg11[%c0_271, %c2_272, %c0_273], %842 {strides = array<i32>} : memref<2x8x32xf32, #tpu.memory_space<vmem>>, vector<2x1x32xf32>,
    %c3_274 = arith.constant 3 : index
    %c0_275 = arith.constant 0 : index
    %c0_276 = arith.constant 0 : index
    %843 = vector.load %arg1[%c3_274, %c0_275, %c0_276] : memref<8x2x128xf32, #tpu.memory_space<vmem>>, vector<1x2x128xf32>
    %844 = vector.shape_cast %843 : vector<1x2x128xf32> to vector<2x128xf32>
    %845 = arith.truncf %769 : vector<2x32xf32> to vector<2x32xbf16>
    %cst_277 = arith.constant dense<0.000000e+00> : vector<2x128xf32>
    %846 = tpu.matmul %845, %3, %cst_277 {dimension_numbers = #tpu.dot_dimension_numbers<[1], [0], [0], [1], [0, 0, 1, 1], [], []>} : vector<2x32xbf16>, vector<32x128xbf16>, vector<2x128xf32> -> vector<2x128xf32>
    %847 = arith.addf %844, %846 : vector<2x128xf32>
    %848 = vector.extract_strided_slice %847 {offsets = [0, 0], sizes = [2, 32], strides = [1, 1]} : vector<2x128xf32> to vector<2x32xf32>
    %849 = arith.negf %848 : vector<2x32xf32>
    %850 = math.exp %849 : vector<2x32xf32>
    %cst_278 = arith.constant 1.000000e+00 : f32
    %851 = vector.broadcast %cst_278 : f32 to vector<2x32xf32>
    %852 = arith.addf %851, %850 : vector<2x32xf32>
    %853 = arith.divf %851, %852 : vector<2x32xf32>
    %854 = vector.extract_strided_slice %847 {offsets = [0, 32], sizes = [2, 32], strides = [1, 1]} : vector<2x128xf32> to vector<2x32xf32>
    %855 = arith.negf %854 : vector<2x32xf32>
    %856 = math.exp %855 : vector<2x32xf32>
    %cst_279 = arith.constant 1.000000e+00 : f32
    %857 = vector.broadcast %cst_279 : f32 to vector<2x32xf32>
    %858 = arith.addf %857, %856 : vector<2x32xf32>
    %859 = arith.divf %857, %858 : vector<2x32xf32>
    %860 = vector.extract_strided_slice %847 {offsets = [0, 64], sizes = [2, 32], strides = [1, 1]} : vector<2x128xf32> to vector<2x32xf32>
    %861 = math.tanh %860 : vector<2x32xf32>
    %862 = vector.extract_strided_slice %847 {offsets = [0, 96], sizes = [2, 32], strides = [1, 1]} : vector<2x128xf32> to vector<2x32xf32>
    %863 = arith.negf %862 : vector<2x32xf32>
    %864 = math.exp %863 : vector<2x32xf32>
    %cst_280 = arith.constant 1.000000e+00 : f32
    %865 = vector.broadcast %cst_280 : f32 to vector<2x32xf32>
    %866 = arith.addf %865, %864 : vector<2x32xf32>
    %867 = arith.divf %865, %866 : vector<2x32xf32>
    %868 = arith.mulf %859, %767 : vector<2x32xf32>
    %869 = arith.mulf %853, %861 : vector<2x32xf32>
    %870 = arith.addf %868, %869 : vector<2x32xf32>
    %871 = math.tanh %870 : vector<2x32xf32>
    %872 = arith.mulf %867, %871 : vector<2x32xf32>
    %c0_281 = arith.constant 0 : index
    %c0_282 = arith.constant 0 : index
    %873 = vector.load %arg13[%c0_281, %c0_282] : memref<2x64xf32, #tpu.memory_space<vmem>>, vector<2x32xf32>
    tpu.vector_store %arg13[%c0_281, %c0_282], %872 {strides = array<i32>} : memref<2x64xf32, #tpu.memory_space<vmem>>, vector<2x32xf32>,
    %c0_283 = arith.constant 0 : index
    %c32_284 = arith.constant 32 : index
    %874 = vector.load %arg13[%c0_283, %c32_284] : memref<2x64xf32, #tpu.memory_space<vmem>>, vector<2x32xf32>
    tpu.vector_store %arg13[%c0_283, %c32_284], %801 {strides = array<i32>} : memref<2x64xf32, #tpu.memory_space<vmem>>, vector<2x32xf32>,
    %c0_285 = arith.constant 0 : index
    %c0_286 = arith.constant 0 : index
    %875 = vector.load %arg13[%c0_285, %c0_286] : memref<2x64xf32, #tpu.memory_space<vmem>>, vector<2x64xf32>
    %876 = arith.truncf %875 : vector<2x64xf32> to vector<2x64xbf16>
    %cst_287 = arith.constant dense<0.000000e+00> : vector<2x128xf32>
    %877 = tpu.matmul %876, %4, %cst_287 {dimension_numbers = #tpu.dot_dimension_numbers<[1], [0], [0], [1], [0, 0, 1, 1], [], []>} : vector<2x64xbf16>, vector<64x128xbf16>, vector<2x128xf32> -> vector<2x128xf32>
    %878 = vector.broadcast %5 : vector<1x128xf32> to vector<2x128xf32>
    %879 = arith.addf %877, %878 : vector<2x128xf32>
    %880 = vector.extract_strided_slice %879 {offsets = [0, 0], sizes = [2, 32], strides = [1, 1]} : vector<2x128xf32> to vector<2x32xf32>
    %881 = arith.negf %880 : vector<2x32xf32>
    %882 = math.exp %881 : vector<2x32xf32>
    %cst_288 = arith.constant 1.000000e+00 : f32
    %883 = vector.broadcast %cst_288 : f32 to vector<2x32xf32>
    %884 = arith.addf %883, %882 : vector<2x32xf32>
    %885 = arith.divf %883, %884 : vector<2x32xf32>
    %886 = vector.extract_strided_slice %879 {offsets = [0, 32], sizes = [2, 32], strides = [1, 1]} : vector<2x128xf32> to vector<2x32xf32>
    %887 = arith.negf %886 : vector<2x32xf32>
    %888 = math.exp %887 : vector<2x32xf32>
    %cst_289 = arith.constant 1.000000e+00 : f32
    %889 = vector.broadcast %cst_289 : f32 to vector<2x32xf32>
    %890 = arith.addf %889, %888 : vector<2x32xf32>
    %891 = arith.divf %889, %890 : vector<2x32xf32>
    %892 = vector.extract_strided_slice %879 {offsets = [0, 64], sizes = [2, 32], strides = [1, 1]} : vector<2x128xf32> to vector<2x32xf32>
    %893 = math.tanh %892 : vector<2x32xf32>
    %894 = vector.extract_strided_slice %879 {offsets = [0, 96], sizes = [2, 32], strides = [1, 1]} : vector<2x128xf32> to vector<2x32xf32>
    %895 = arith.negf %894 : vector<2x32xf32>
    %896 = math.exp %895 : vector<2x32xf32>
    %cst_290 = arith.constant 1.000000e+00 : f32
    %897 = vector.broadcast %cst_290 : f32 to vector<2x32xf32>
    %898 = arith.addf %897, %896 : vector<2x32xf32>
    %899 = arith.divf %897, %898 : vector<2x32xf32>
    %900 = arith.mulf %891, %799 : vector<2x32xf32>
    %901 = arith.mulf %885, %893 : vector<2x32xf32>
    %902 = arith.addf %900, %901 : vector<2x32xf32>
    %903 = math.tanh %902 : vector<2x32xf32>
    %904 = arith.mulf %899, %903 : vector<2x32xf32>
    %905 = vector.shape_cast %904 : vector<2x32xf32> to vector<2x1x32xf32>
    %906 = vector.broadcast %905 : vector<2x1x32xf32> to vector<2x8x32xf32>
    %907 = arith.mulf %529, %906 : vector<2x8x32xf32>
    %cst_291 = arith.constant dense<0.000000e+00> : vector<2x8xf32>
    %908 = vector.multi_reduction <add>, %907, %cst_291 [2] : vector<2x8x32xf32> to vector<2x8xf32>
    %cst_292 = arith.constant -1.000000e+30 : f32
    %909 = vector.broadcast %cst_292 : f32 to vector<2x8xf32>
    %910 = arith.select %533, %908, %909 : vector<2x8xi1>, vector<2x8xf32>
    %cst_293 = arith.constant dense<0xFF800000> : vector<2xf32>
    %911 = vector.multi_reduction <maximumf>, %910, %cst_293 [1] : vector<2x8xf32> to vector<2xf32>
    %912 = vector.shape_cast %911 : vector<2xf32> to vector<2x1xf32>
    %913 = vector.broadcast %912 : vector<2x1xf32> to vector<2x8xf32>
    %914 = arith.subf %910, %913 : vector<2x8xf32>
    %915 = math.exp %914 : vector<2x8xf32>
    %cst_294 = arith.constant dense<0.000000e+00> : vector<2xf32>
    %916 = vector.multi_reduction <add>, %915, %cst_294 [1] : vector<2x8xf32> to vector<2xf32>
    %917 = vector.shape_cast %916 : vector<2xf32> to vector<2x1xf32>
    %918 = tpu.reciprocal %917 {approx = true} : vector<2x1xf32> -> vector<2x1xf32>
    %919 = vector.broadcast %918 : vector<2x1xf32> to vector<2x8xf32>
    %920 = arith.mulf %915, %919 : vector<2x8xf32>
    %921 = vector.shape_cast %920 : vector<2x8xf32> to vector<2x8x1xf32>
    %922 = vector.broadcast %921 : vector<2x8x1xf32> to vector<2x8x32xf32>
    %923 = arith.mulf %922, %529 : vector<2x8x32xf32>
    %cst_295 = arith.constant dense<0.000000e+00> : vector<2x32xf32>
    %924 = vector.multi_reduction <add>, %923, %cst_295 [1] : vector<2x8x32xf32> to vector<2x32xf32>
    %c0_296 = arith.constant 0 : index
    %c0_297 = arith.constant 0 : index
    %925 = vector.load %arg13[%c0_296, %c0_297] : memref<2x64xf32, #tpu.memory_space<vmem>>, vector<2x32xf32>
    tpu.vector_store %arg13[%c0_296, %c0_297], %904 {strides = array<i32>} : memref<2x64xf32, #tpu.memory_space<vmem>>, vector<2x32xf32>,
    %c0_298 = arith.constant 0 : index
    %c32_299 = arith.constant 32 : index
    %926 = vector.load %arg13[%c0_298, %c32_299] : memref<2x64xf32, #tpu.memory_space<vmem>>, vector<2x32xf32>
    tpu.vector_store %arg13[%c0_298, %c32_299], %924 {strides = array<i32>} : memref<2x64xf32, #tpu.memory_space<vmem>>, vector<2x32xf32>,
    %c0_300 = arith.constant 0 : index
    %c0_301 = arith.constant 0 : index
    %927 = vector.load %arg13[%c0_300, %c0_301] : memref<2x64xf32, #tpu.memory_space<vmem>>, vector<2x64xf32>
    %928 = arith.truncf %927 : vector<2x64xf32> to vector<2x64xbf16>
    %cst_302 = arith.constant dense<0.000000e+00> : vector<2x32xf32>
    %929 = tpu.matmul %928, %6, %cst_302 {dimension_numbers = #tpu.dot_dimension_numbers<[1], [0], [0], [1], [0, 0, 1, 1], [], []>} : vector<2x64xbf16>, vector<64x32xbf16>, vector<2x32xf32> -> vector<2x32xf32>
    %930 = vector.broadcast %7 : vector<1x32xf32> to vector<2x32xf32>
    %931 = arith.addf %929, %930 : vector<2x32xf32>
    %cst_303 = arith.constant dense<0xFF800000> : vector<2xf32>
    %932 = vector.multi_reduction <maximumf>, %931, %cst_303 [1] : vector<2x32xf32> to vector<2xf32>
    %933 = vector.shape_cast %932 : vector<2xf32> to vector<2x1xf32>
    %934 = vector.broadcast %933 : vector<2x1xf32> to vector<2x32xf32>
    %935 = arith.subf %931, %934 : vector<2x32xf32>
    %936 = math.exp %935 : vector<2x32xf32>
    %cst_304 = arith.constant dense<0.000000e+00> : vector<2xf32>
    %937 = vector.multi_reduction <add>, %936, %cst_304 [1] : vector<2x32xf32> to vector<2xf32>
    %938 = vector.shape_cast %937 : vector<2xf32> to vector<2x1xf32>
    %939 = math.log %938 : vector<2x1xf32>
    %940 = arith.addf %933, %939 : vector<2x1xf32>
    %941 = vector.broadcast %940 : vector<2x1xf32> to vector<2x32xf32>
    %942 = arith.subf %931, %941 : vector<2x32xf32>
    %c0_305 = arith.constant 0 : index
    %c3_306 = arith.constant 3 : index
    %c0_307 = arith.constant 0 : index
    %943 = vector.load %arg11[%c0_305, %c3_306, %c0_307] : memref<2x8x32xf32, #tpu.memory_space<vmem>>, vector<2x1x32xf32>
    %944 = vector.shape_cast %943 : vector<2x1x32xf32> to vector<2x32xf32>
    %945 = vector.shape_cast %942 : vector<2x32xf32> to vector<2x1x32xf32>
    tpu.vector_store %arg11[%c0_305, %c3_306, %c0_307], %945 {strides = array<i32>} : memref<2x8x32xf32, #tpu.memory_space<vmem>>, vector<2x1x32xf32>,
    %c4_308 = arith.constant 4 : index
    %c0_309 = arith.constant 0 : index
    %c0_310 = arith.constant 0 : index
    %946 = vector.load %arg1[%c4_308, %c0_309, %c0_310] : memref<8x2x128xf32, #tpu.memory_space<vmem>>, vector<1x2x128xf32>
    %947 = vector.shape_cast %946 : vector<1x2x128xf32> to vector<2x128xf32>
    %948 = arith.truncf %872 : vector<2x32xf32> to vector<2x32xbf16>
    %cst_311 = arith.constant dense<0.000000e+00> : vector<2x128xf32>
    %949 = tpu.matmul %948, %3, %cst_311 {dimension_numbers = #tpu.dot_dimension_numbers<[1], [0], [0], [1], [0, 0, 1, 1], [], []>} : vector<2x32xbf16>, vector<32x128xbf16>, vector<2x128xf32> -> vector<2x128xf32>
    %950 = arith.addf %947, %949 : vector<2x128xf32>
    %951 = vector.extract_strided_slice %950 {offsets = [0, 0], sizes = [2, 32], strides = [1, 1]} : vector<2x128xf32> to vector<2x32xf32>
    %952 = arith.negf %951 : vector<2x32xf32>
    %953 = math.exp %952 : vector<2x32xf32>
    %cst_312 = arith.constant 1.000000e+00 : f32
    %954 = vector.broadcast %cst_312 : f32 to vector<2x32xf32>
    %955 = arith.addf %954, %953 : vector<2x32xf32>
    %956 = arith.divf %954, %955 : vector<2x32xf32>
    %957 = vector.extract_strided_slice %950 {offsets = [0, 32], sizes = [2, 32], strides = [1, 1]} : vector<2x128xf32> to vector<2x32xf32>
    %958 = arith.negf %957 : vector<2x32xf32>
    %959 = math.exp %958 : vector<2x32xf32>
    %cst_313 = arith.constant 1.000000e+00 : f32
    %960 = vector.broadcast %cst_313 : f32 to vector<2x32xf32>
    %961 = arith.addf %960, %959 : vector<2x32xf32>
    %962 = arith.divf %960, %961 : vector<2x32xf32>
    %963 = vector.extract_strided_slice %950 {offsets = [0, 64], sizes = [2, 32], strides = [1, 1]} : vector<2x128xf32> to vector<2x32xf32>
    %964 = math.tanh %963 : vector<2x32xf32>
    %965 = vector.extract_strided_slice %950 {offsets = [0, 96], sizes = [2, 32], strides = [1, 1]} : vector<2x128xf32> to vector<2x32xf32>
    %966 = arith.negf %965 : vector<2x32xf32>
    %967 = math.exp %966 : vector<2x32xf32>
    %cst_314 = arith.constant 1.000000e+00 : f32
    %968 = vector.broadcast %cst_314 : f32 to vector<2x32xf32>
    %969 = arith.addf %968, %967 : vector<2x32xf32>
    %970 = arith.divf %968, %969 : vector<2x32xf32>
    %971 = arith.mulf %962, %870 : vector<2x32xf32>
    %972 = arith.mulf %956, %964 : vector<2x32xf32>
    %973 = arith.addf %971, %972 : vector<2x32xf32>
    %974 = math.tanh %973 : vector<2x32xf32>
    %975 = arith.mulf %970, %974 : vector<2x32xf32>
    %c0_315 = arith.constant 0 : index
    %c0_316 = arith.constant 0 : index
    %976 = vector.load %arg13[%c0_315, %c0_316] : memref<2x64xf32, #tpu.memory_space<vmem>>, vector<2x32xf32>
    tpu.vector_store %arg13[%c0_315, %c0_316], %975 {strides = array<i32>} : memref<2x64xf32, #tpu.memory_space<vmem>>, vector<2x32xf32>,
    %c0_317 = arith.constant 0 : index
    %c32_318 = arith.constant 32 : index
    %977 = vector.load %arg13[%c0_317, %c32_318] : memref<2x64xf32, #tpu.memory_space<vmem>>, vector<2x32xf32>
    tpu.vector_store %arg13[%c0_317, %c32_318], %904 {strides = array<i32>} : memref<2x64xf32, #tpu.memory_space<vmem>>, vector<2x32xf32>,
    %c0_319 = arith.constant 0 : index
    %c0_320 = arith.constant 0 : index
    %978 = vector.load %arg13[%c0_319, %c0_320] : memref<2x64xf32, #tpu.memory_space<vmem>>, vector<2x64xf32>
    %979 = arith.truncf %978 : vector<2x64xf32> to vector<2x64xbf16>
    %cst_321 = arith.constant dense<0.000000e+00> : vector<2x128xf32>
    %980 = tpu.matmul %979, %4, %cst_321 {dimension_numbers = #tpu.dot_dimension_numbers<[1], [0], [0], [1], [0, 0, 1, 1], [], []>} : vector<2x64xbf16>, vector<64x128xbf16>, vector<2x128xf32> -> vector<2x128xf32>
    %981 = vector.broadcast %5 : vector<1x128xf32> to vector<2x128xf32>
    %982 = arith.addf %980, %981 : vector<2x128xf32>
    %983 = vector.extract_strided_slice %982 {offsets = [0, 0], sizes = [2, 32], strides = [1, 1]} : vector<2x128xf32> to vector<2x32xf32>
    %984 = arith.negf %983 : vector<2x32xf32>
    %985 = math.exp %984 : vector<2x32xf32>
    %cst_322 = arith.constant 1.000000e+00 : f32
    %986 = vector.broadcast %cst_322 : f32 to vector<2x32xf32>
    %987 = arith.addf %986, %985 : vector<2x32xf32>
    %988 = arith.divf %986, %987 : vector<2x32xf32>
    %989 = vector.extract_strided_slice %982 {offsets = [0, 32], sizes = [2, 32], strides = [1, 1]} : vector<2x128xf32> to vector<2x32xf32>
    %990 = arith.negf %989 : vector<2x32xf32>
    %991 = math.exp %990 : vector<2x32xf32>
    %cst_323 = arith.constant 1.000000e+00 : f32
    %992 = vector.broadcast %cst_323 : f32 to vector<2x32xf32>
    %993 = arith.addf %992, %991 : vector<2x32xf32>
    %994 = arith.divf %992, %993 : vector<2x32xf32>
    %995 = vector.extract_strided_slice %982 {offsets = [0, 64], sizes = [2, 32], strides = [1, 1]} : vector<2x128xf32> to vector<2x32xf32>
    %996 = math.tanh %995 : vector<2x32xf32>
    %997 = vector.extract_strided_slice %982 {offsets = [0, 96], sizes = [2, 32], strides = [1, 1]} : vector<2x128xf32> to vector<2x32xf32>
    %998 = arith.negf %997 : vector<2x32xf32>
    %999 = math.exp %998 : vector<2x32xf32>
    %cst_324 = arith.constant 1.000000e+00 : f32
    %1000 = vector.broadcast %cst_324 : f32 to vector<2x32xf32>
    %1001 = arith.addf %1000, %999 : vector<2x32xf32>
    %1002 = arith.divf %1000, %1001 : vector<2x32xf32>
    %1003 = arith.mulf %994, %902 : vector<2x32xf32>
    %1004 = arith.mulf %988, %996 : vector<2x32xf32>
    %1005 = arith.addf %1003, %1004 : vector<2x32xf32>
    %1006 = math.tanh %1005 : vector<2x32xf32>
    %1007 = arith.mulf %1002, %1006 : vector<2x32xf32>
    %1008 = vector.shape_cast %1007 : vector<2x32xf32> to vector<2x1x32xf32>
    %1009 = vector.broadcast %1008 : vector<2x1x32xf32> to vector<2x8x32xf32>
    %1010 = arith.mulf %529, %1009 : vector<2x8x32xf32>
    %cst_325 = arith.constant dense<0.000000e+00> : vector<2x8xf32>
    %1011 = vector.multi_reduction <add>, %1010, %cst_325 [2] : vector<2x8x32xf32> to vector<2x8xf32>
    %cst_326 = arith.constant -1.000000e+30 : f32
    %1012 = vector.broadcast %cst_326 : f32 to vector<2x8xf32>
    %1013 = arith.select %533, %1011, %1012 : vector<2x8xi1>, vector<2x8xf32>
    %cst_327 = arith.constant dense<0xFF800000> : vector<2xf32>
    %1014 = vector.multi_reduction <maximumf>, %1013, %cst_327 [1] : vector<2x8xf32> to vector<2xf32>
    %1015 = vector.shape_cast %1014 : vector<2xf32> to vector<2x1xf32>
    %1016 = vector.broadcast %1015 : vector<2x1xf32> to vector<2x8xf32>
    %1017 = arith.subf %1013, %1016 : vector<2x8xf32>
    %1018 = math.exp %1017 : vector<2x8xf32>
    %cst_328 = arith.constant dense<0.000000e+00> : vector<2xf32>
    %1019 = vector.multi_reduction <add>, %1018, %cst_328 [1] : vector<2x8xf32> to vector<2xf32>
    %1020 = vector.shape_cast %1019 : vector<2xf32> to vector<2x1xf32>
    %1021 = tpu.reciprocal %1020 {approx = true} : vector<2x1xf32> -> vector<2x1xf32>
    %1022 = vector.broadcast %1021 : vector<2x1xf32> to vector<2x8xf32>
    %1023 = arith.mulf %1018, %1022 : vector<2x8xf32>
    %1024 = vector.shape_cast %1023 : vector<2x8xf32> to vector<2x8x1xf32>
    %1025 = vector.broadcast %1024 : vector<2x8x1xf32> to vector<2x8x32xf32>
    %1026 = arith.mulf %1025, %529 : vector<2x8x32xf32>
    %cst_329 = arith.constant dense<0.000000e+00> : vector<2x32xf32>
    %1027 = vector.multi_reduction <add>, %1026, %cst_329 [1] : vector<2x8x32xf32> to vector<2x32xf32>
    %c0_330 = arith.constant 0 : index
    %c0_331 = arith.constant 0 : index
    %1028 = vector.load %arg13[%c0_330, %c0_331] : memref<2x64xf32, #tpu.memory_space<vmem>>, vector<2x32xf32>
    tpu.vector_store %arg13[%c0_330, %c0_331], %1007 {strides = array<i32>} : memref<2x64xf32, #tpu.memory_space<vmem>>, vector<2x32xf32>,
    %c0_332 = arith.constant 0 : index
    %c32_333 = arith.constant 32 : index
    %1029 = vector.load %arg13[%c0_332, %c32_333] : memref<2x64xf32, #tpu.memory_space<vmem>>, vector<2x32xf32>
    tpu.vector_store %arg13[%c0_332, %c32_333], %1027 {strides = array<i32>} : memref<2x64xf32, #tpu.memory_space<vmem>>, vector<2x32xf32>,
    %c0_334 = arith.constant 0 : index
    %c0_335 = arith.constant 0 : index
    %1030 = vector.load %arg13[%c0_334, %c0_335] : memref<2x64xf32, #tpu.memory_space<vmem>>, vector<2x64xf32>
    %1031 = arith.truncf %1030 : vector<2x64xf32> to vector<2x64xbf16>
    %cst_336 = arith.constant dense<0.000000e+00> : vector<2x32xf32>
    %1032 = tpu.matmul %1031, %6, %cst_336 {dimension_numbers = #tpu.dot_dimension_numbers<[1], [0], [0], [1], [0, 0, 1, 1], [], []>} : vector<2x64xbf16>, vector<64x32xbf16>, vector<2x32xf32> -> vector<2x32xf32>
    %1033 = vector.broadcast %7 : vector<1x32xf32> to vector<2x32xf32>
    %1034 = arith.addf %1032, %1033 : vector<2x32xf32>
    %cst_337 = arith.constant dense<0xFF800000> : vector<2xf32>
    %1035 = vector.multi_reduction <maximumf>, %1034, %cst_337 [1] : vector<2x32xf32> to vector<2xf32>
    %1036 = vector.shape_cast %1035 : vector<2xf32> to vector<2x1xf32>
    %1037 = vector.broadcast %1036 : vector<2x1xf32> to vector<2x32xf32>
    %1038 = arith.subf %1034, %1037 : vector<2x32xf32>
    %1039 = math.exp %1038 : vector<2x32xf32>
    %cst_338 = arith.constant dense<0.000000e+00> : vector<2xf32>
    %1040 = vector.multi_reduction <add>, %1039, %cst_338 [1] : vector<2x32xf32> to vector<2xf32>
    %1041 = vector.shape_cast %1040 : vector<2xf32> to vector<2x1xf32>
    %1042 = math.log %1041 : vector<2x1xf32>
    %1043 = arith.addf %1036, %1042 : vector<2x1xf32>
    %1044 = vector.broadcast %1043 : vector<2x1xf32> to vector<2x32xf32>
    %1045 = arith.subf %1034, %1044 : vector<2x32xf32>
    %c0_339 = arith.constant 0 : index
    %c4_340 = arith.constant 4 : index
    %c0_341 = arith.constant 0 : index
    %1046 = vector.load %arg11[%c0_339, %c4_340, %c0_341] : memref<2x8x32xf32, #tpu.memory_space<vmem>>, vector<2x1x32xf32>
    %1047 = vector.shape_cast %1046 : vector<2x1x32xf32> to vector<2x32xf32>
    %1048 = vector.shape_cast %1045 : vector<2x32xf32> to vector<2x1x32xf32>
    tpu.vector_store %arg11[%c0_339, %c4_340, %c0_341], %1048 {strides = array<i32>} : memref<2x8x32xf32, #tpu.memory_space<vmem>>, vector<2x1x32xf32>,
    %c5_342 = arith.constant 5 : index
    %c0_343 = arith.constant 0 : index
    %c0_344 = arith.constant 0 : index
    %1049 = vector.load %arg1[%c5_342, %c0_343, %c0_344] : memref<8x2x128xf32, #tpu.memory_space<vmem>>, vector<1x2x128xf32>
    %1050 = vector.shape_cast %1049 : vector<1x2x128xf32> to vector<2x128xf32>
    %1051 = arith.truncf %975 : vector<2x32xf32> to vector<2x32xbf16>
    %cst_345 = arith.constant dense<0.000000e+00> : vector<2x128xf32>
    %1052 = tpu.matmul %1051, %3, %cst_345 {dimension_numbers = #tpu.dot_dimension_numbers<[1], [0], [0], [1], [0, 0, 1, 1], [], []>} : vector<2x32xbf16>, vector<32x128xbf16>, vector<2x128xf32> -> vector<2x128xf32>
    %1053 = arith.addf %1050, %1052 : vector<2x128xf32>
    %1054 = vector.extract_strided_slice %1053 {offsets = [0, 0], sizes = [2, 32], strides = [1, 1]} : vector<2x128xf32> to vector<2x32xf32>
    %1055 = arith.negf %1054 : vector<2x32xf32>
    %1056 = math.exp %1055 : vector<2x32xf32>
    %cst_346 = arith.constant 1.000000e+00 : f32
    %1057 = vector.broadcast %cst_346 : f32 to vector<2x32xf32>
    %1058 = arith.addf %1057, %1056 : vector<2x32xf32>
    %1059 = arith.divf %1057, %1058 : vector<2x32xf32>
    %1060 = vector.extract_strided_slice %1053 {offsets = [0, 32], sizes = [2, 32], strides = [1, 1]} : vector<2x128xf32> to vector<2x32xf32>
    %1061 = arith.negf %1060 : vector<2x32xf32>
    %1062 = math.exp %1061 : vector<2x32xf32>
    %cst_347 = arith.constant 1.000000e+00 : f32
    %1063 = vector.broadcast %cst_347 : f32 to vector<2x32xf32>
    %1064 = arith.addf %1063, %1062 : vector<2x32xf32>
    %1065 = arith.divf %1063, %1064 : vector<2x32xf32>
    %1066 = vector.extract_strided_slice %1053 {offsets = [0, 64], sizes = [2, 32], strides = [1, 1]} : vector<2x128xf32> to vector<2x32xf32>
    %1067 = math.tanh %1066 : vector<2x32xf32>
    %1068 = vector.extract_strided_slice %1053 {offsets = [0, 96], sizes = [2, 32], strides = [1, 1]} : vector<2x128xf32> to vector<2x32xf32>
    %1069 = arith.negf %1068 : vector<2x32xf32>
    %1070 = math.exp %1069 : vector<2x32xf32>
    %cst_348 = arith.constant 1.000000e+00 : f32
    %1071 = vector.broadcast %cst_348 : f32 to vector<2x32xf32>
    %1072 = arith.addf %1071, %1070 : vector<2x32xf32>
    %1073 = arith.divf %1071, %1072 : vector<2x32xf32>
    %1074 = arith.mulf %1065, %973 : vector<2x32xf32>
    %1075 = arith.mulf %1059, %1067 : vector<2x32xf32>
    %1076 = arith.addf %1074, %1075 : vector<2x32xf32>
    %1077 = math.tanh %1076 : vector<2x32xf32>
    %1078 = arith.mulf %1073, %1077 : vector<2x32xf32>
    %c0_349 = arith.constant 0 : index
    %c0_350 = arith.constant 0 : index
    %1079 = vector.load %arg13[%c0_349, %c0_350] : memref<2x64xf32, #tpu.memory_space<vmem>>, vector<2x32xf32>
    tpu.vector_store %arg13[%c0_349, %c0_350], %1078 {strides = array<i32>} : memref<2x64xf32, #tpu.memory_space<vmem>>, vector<2x32xf32>,
    %c0_351 = arith.constant 0 : index
    %c32_352 = arith.constant 32 : index
    %1080 = vector.load %arg13[%c0_351, %c32_352] : memref<2x64xf32, #tpu.memory_space<vmem>>, vector<2x32xf32>
    tpu.vector_store %arg13[%c0_351, %c32_352], %1007 {strides = array<i32>} : memref<2x64xf32, #tpu.memory_space<vmem>>, vector<2x32xf32>,
    %c0_353 = arith.constant 0 : index
    %c0_354 = arith.constant 0 : index
    %1081 = vector.load %arg13[%c0_353, %c0_354] : memref<2x64xf32, #tpu.memory_space<vmem>>, vector<2x64xf32>
    %1082 = arith.truncf %1081 : vector<2x64xf32> to vector<2x64xbf16>
    %cst_355 = arith.constant dense<0.000000e+00> : vector<2x128xf32>
    %1083 = tpu.matmul %1082, %4, %cst_355 {dimension_numbers = #tpu.dot_dimension_numbers<[1], [0], [0], [1], [0, 0, 1, 1], [], []>} : vector<2x64xbf16>, vector<64x128xbf16>, vector<2x128xf32> -> vector<2x128xf32>
    %1084 = vector.broadcast %5 : vector<1x128xf32> to vector<2x128xf32>
    %1085 = arith.addf %1083, %1084 : vector<2x128xf32>
    %1086 = vector.extract_strided_slice %1085 {offsets = [0, 0], sizes = [2, 32], strides = [1, 1]} : vector<2x128xf32> to vector<2x32xf32>
    %1087 = arith.negf %1086 : vector<2x32xf32>
    %1088 = math.exp %1087 : vector<2x32xf32>
    %cst_356 = arith.constant 1.000000e+00 : f32
    %1089 = vector.broadcast %cst_356 : f32 to vector<2x32xf32>
    %1090 = arith.addf %1089, %1088 : vector<2x32xf32>
    %1091 = arith.divf %1089, %1090 : vector<2x32xf32>
    %1092 = vector.extract_strided_slice %1085 {offsets = [0, 32], sizes = [2, 32], strides = [1, 1]} : vector<2x128xf32> to vector<2x32xf32>
    %1093 = arith.negf %1092 : vector<2x32xf32>
    %1094 = math.exp %1093 : vector<2x32xf32>
    %cst_357 = arith.constant 1.000000e+00 : f32
    %1095 = vector.broadcast %cst_357 : f32 to vector<2x32xf32>
    %1096 = arith.addf %1095, %1094 : vector<2x32xf32>
    %1097 = arith.divf %1095, %1096 : vector<2x32xf32>
    %1098 = vector.extract_strided_slice %1085 {offsets = [0, 64], sizes = [2, 32], strides = [1, 1]} : vector<2x128xf32> to vector<2x32xf32>
    %1099 = math.tanh %1098 : vector<2x32xf32>
    %1100 = vector.extract_strided_slice %1085 {offsets = [0, 96], sizes = [2, 32], strides = [1, 1]} : vector<2x128xf32> to vector<2x32xf32>
    %1101 = arith.negf %1100 : vector<2x32xf32>
    %1102 = math.exp %1101 : vector<2x32xf32>
    %cst_358 = arith.constant 1.000000e+00 : f32
    %1103 = vector.broadcast %cst_358 : f32 to vector<2x32xf32>
    %1104 = arith.addf %1103, %1102 : vector<2x32xf32>
    %1105 = arith.divf %1103, %1104 : vector<2x32xf32>
    %1106 = arith.mulf %1097, %1005 : vector<2x32xf32>
    %1107 = arith.mulf %1091, %1099 : vector<2x32xf32>
    %1108 = arith.addf %1106, %1107 : vector<2x32xf32>
    %1109 = math.tanh %1108 : vector<2x32xf32>
    %1110 = arith.mulf %1105, %1109 : vector<2x32xf32>
    %1111 = vector.shape_cast %1110 : vector<2x32xf32> to vector<2x1x32xf32>
    %1112 = vector.broadcast %1111 : vector<2x1x32xf32> to vector<2x8x32xf32>
    %1113 = arith.mulf %529, %1112 : vector<2x8x32xf32>
    %cst_359 = arith.constant dense<0.000000e+00> : vector<2x8xf32>
    %1114 = vector.multi_reduction <add>, %1113, %cst_359 [2] : vector<2x8x32xf32> to vector<2x8xf32>
    %cst_360 = arith.constant -1.000000e+30 : f32
    %1115 = vector.broadcast %cst_360 : f32 to vector<2x8xf32>
    %1116 = arith.select %533, %1114, %1115 : vector<2x8xi1>, vector<2x8xf32>
    %cst_361 = arith.constant dense<0xFF800000> : vector<2xf32>
    %1117 = vector.multi_reduction <maximumf>, %1116, %cst_361 [1] : vector<2x8xf32> to vector<2xf32>
    %1118 = vector.shape_cast %1117 : vector<2xf32> to vector<2x1xf32>
    %1119 = vector.broadcast %1118 : vector<2x1xf32> to vector<2x8xf32>
    %1120 = arith.subf %1116, %1119 : vector<2x8xf32>
    %1121 = math.exp %1120 : vector<2x8xf32>
    %cst_362 = arith.constant dense<0.000000e+00> : vector<2xf32>
    %1122 = vector.multi_reduction <add>, %1121, %cst_362 [1] : vector<2x8xf32> to vector<2xf32>
    %1123 = vector.shape_cast %1122 : vector<2xf32> to vector<2x1xf32>
    %1124 = tpu.reciprocal %1123 {approx = true} : vector<2x1xf32> -> vector<2x1xf32>
    %1125 = vector.broadcast %1124 : vector<2x1xf32> to vector<2x8xf32>
    %1126 = arith.mulf %1121, %1125 : vector<2x8xf32>
    %1127 = vector.shape_cast %1126 : vector<2x8xf32> to vector<2x8x1xf32>
    %1128 = vector.broadcast %1127 : vector<2x8x1xf32> to vector<2x8x32xf32>
    %1129 = arith.mulf %1128, %529 : vector<2x8x32xf32>
    %cst_363 = arith.constant dense<0.000000e+00> : vector<2x32xf32>
    %1130 = vector.multi_reduction <add>, %1129, %cst_363 [1] : vector<2x8x32xf32> to vector<2x32xf32>
    %c0_364 = arith.constant 0 : index
    %c0_365 = arith.constant 0 : index
    %1131 = vector.load %arg13[%c0_364, %c0_365] : memref<2x64xf32, #tpu.memory_space<vmem>>, vector<2x32xf32>
    tpu.vector_store %arg13[%c0_364, %c0_365], %1110 {strides = array<i32>} : memref<2x64xf32, #tpu.memory_space<vmem>>, vector<2x32xf32>,
    %c0_366 = arith.constant 0 : index
    %c32_367 = arith.constant 32 : index
    %1132 = vector.load %arg13[%c0_366, %c32_367] : memref<2x64xf32, #tpu.memory_space<vmem>>, vector<2x32xf32>
    tpu.vector_store %arg13[%c0_366, %c32_367], %1130 {strides = array<i32>} : memref<2x64xf32, #tpu.memory_space<vmem>>, vector<2x32xf32>,
    %c0_368 = arith.constant 0 : index
    %c0_369 = arith.constant 0 : index
    %1133 = vector.load %arg13[%c0_368, %c0_369] : memref<2x64xf32, #tpu.memory_space<vmem>>, vector<2x64xf32>
    %1134 = arith.truncf %1133 : vector<2x64xf32> to vector<2x64xbf16>
    %cst_370 = arith.constant dense<0.000000e+00> : vector<2x32xf32>
    %1135 = tpu.matmul %1134, %6, %cst_370 {dimension_numbers = #tpu.dot_dimension_numbers<[1], [0], [0], [1], [0, 0, 1, 1], [], []>} : vector<2x64xbf16>, vector<64x32xbf16>, vector<2x32xf32> -> vector<2x32xf32>
    %1136 = vector.broadcast %7 : vector<1x32xf32> to vector<2x32xf32>
    %1137 = arith.addf %1135, %1136 : vector<2x32xf32>
    %cst_371 = arith.constant dense<0xFF800000> : vector<2xf32>
    %1138 = vector.multi_reduction <maximumf>, %1137, %cst_371 [1] : vector<2x32xf32> to vector<2xf32>
    %1139 = vector.shape_cast %1138 : vector<2xf32> to vector<2x1xf32>
    %1140 = vector.broadcast %1139 : vector<2x1xf32> to vector<2x32xf32>
    %1141 = arith.subf %1137, %1140 : vector<2x32xf32>
    %1142 = math.exp %1141 : vector<2x32xf32>
    %cst_372 = arith.constant dense<0.000000e+00> : vector<2xf32>
    %1143 = vector.multi_reduction <add>, %1142, %cst_372 [1] : vector<2x32xf32> to vector<2xf32>
    %1144 = vector.shape_cast %1143 : vector<2xf32> to vector<2x1xf32>
    %1145 = math.log %1144 : vector<2x1xf32>
    %1146 = arith.addf %1139, %1145 : vector<2x1xf32>
    %1147 = vector.broadcast %1146 : vector<2x1xf32> to vector<2x32xf32>
    %1148 = arith.subf %1137, %1147 : vector<2x32xf32>
    %c0_373 = arith.constant 0 : index
    %c5_374 = arith.constant 5 : index
    %c0_375 = arith.constant 0 : index
    %1149 = vector.load %arg11[%c0_373, %c5_374, %c0_375] : memref<2x8x32xf32, #tpu.memory_space<vmem>>, vector<2x1x32xf32>
    %1150 = vector.shape_cast %1149 : vector<2x1x32xf32> to vector<2x32xf32>
    %1151 = vector.shape_cast %1148 : vector<2x32xf32> to vector<2x1x32xf32>
    tpu.vector_store %arg11[%c0_373, %c5_374, %c0_375], %1151 {strides = array<i32>} : memref<2x8x32xf32, #tpu.memory_space<vmem>>, vector<2x1x32xf32>,
    %c6_376 = arith.constant 6 : index
    %c0_377 = arith.constant 0 : index
    %c0_378 = arith.constant 0 : index
    %1152 = vector.load %arg1[%c6_376, %c0_377, %c0_378] : memref<8x2x128xf32, #tpu.memory_space<vmem>>, vector<1x2x128xf32>
    %1153 = vector.shape_cast %1152 : vector<1x2x128xf32> to vector<2x128xf32>
    %1154 = arith.truncf %1078 : vector<2x32xf32> to vector<2x32xbf16>
    %cst_379 = arith.constant dense<0.000000e+00> : vector<2x128xf32>
    %1155 = tpu.matmul %1154, %3, %cst_379 {dimension_numbers = #tpu.dot_dimension_numbers<[1], [0], [0], [1], [0, 0, 1, 1], [], []>} : vector<2x32xbf16>, vector<32x128xbf16>, vector<2x128xf32> -> vector<2x128xf32>
    %1156 = arith.addf %1153, %1155 : vector<2x128xf32>
    %1157 = vector.extract_strided_slice %1156 {offsets = [0, 0], sizes = [2, 32], strides = [1, 1]} : vector<2x128xf32> to vector<2x32xf32>
    %1158 = arith.negf %1157 : vector<2x32xf32>
    %1159 = math.exp %1158 : vector<2x32xf32>
    %cst_380 = arith.constant 1.000000e+00 : f32
    %1160 = vector.broadcast %cst_380 : f32 to vector<2x32xf32>
    %1161 = arith.addf %1160, %1159 : vector<2x32xf32>
    %1162 = arith.divf %1160, %1161 : vector<2x32xf32>
    %1163 = vector.extract_strided_slice %1156 {offsets = [0, 32], sizes = [2, 32], strides = [1, 1]} : vector<2x128xf32> to vector<2x32xf32>
    %1164 = arith.negf %1163 : vector<2x32xf32>
    %1165 = math.exp %1164 : vector<2x32xf32>
    %cst_381 = arith.constant 1.000000e+00 : f32
    %1166 = vector.broadcast %cst_381 : f32 to vector<2x32xf32>
    %1167 = arith.addf %1166, %1165 : vector<2x32xf32>
    %1168 = arith.divf %1166, %1167 : vector<2x32xf32>
    %1169 = vector.extract_strided_slice %1156 {offsets = [0, 64], sizes = [2, 32], strides = [1, 1]} : vector<2x128xf32> to vector<2x32xf32>
    %1170 = math.tanh %1169 : vector<2x32xf32>
    %1171 = vector.extract_strided_slice %1156 {offsets = [0, 96], sizes = [2, 32], strides = [1, 1]} : vector<2x128xf32> to vector<2x32xf32>
    %1172 = arith.negf %1171 : vector<2x32xf32>
    %1173 = math.exp %1172 : vector<2x32xf32>
    %cst_382 = arith.constant 1.000000e+00 : f32
    %1174 = vector.broadcast %cst_382 : f32 to vector<2x32xf32>
    %1175 = arith.addf %1174, %1173 : vector<2x32xf32>
    %1176 = arith.divf %1174, %1175 : vector<2x32xf32>
    %1177 = arith.mulf %1168, %1076 : vector<2x32xf32>
    %1178 = arith.mulf %1162, %1170 : vector<2x32xf32>
    %1179 = arith.addf %1177, %1178 : vector<2x32xf32>
    %1180 = math.tanh %1179 : vector<2x32xf32>
    %1181 = arith.mulf %1176, %1180 : vector<2x32xf32>
    %c0_383 = arith.constant 0 : index
    %c0_384 = arith.constant 0 : index
    %1182 = vector.load %arg13[%c0_383, %c0_384] : memref<2x64xf32, #tpu.memory_space<vmem>>, vector<2x32xf32>
    tpu.vector_store %arg13[%c0_383, %c0_384], %1181 {strides = array<i32>} : memref<2x64xf32, #tpu.memory_space<vmem>>, vector<2x32xf32>,
    %c0_385 = arith.constant 0 : index
    %c32_386 = arith.constant 32 : index
    %1183 = vector.load %arg13[%c0_385, %c32_386] : memref<2x64xf32, #tpu.memory_space<vmem>>, vector<2x32xf32>
    tpu.vector_store %arg13[%c0_385, %c32_386], %1110 {strides = array<i32>} : memref<2x64xf32, #tpu.memory_space<vmem>>, vector<2x32xf32>,
    %c0_387 = arith.constant 0 : index
    %c0_388 = arith.constant 0 : index
    %1184 = vector.load %arg13[%c0_387, %c0_388] : memref<2x64xf32, #tpu.memory_space<vmem>>, vector<2x64xf32>
    %1185 = arith.truncf %1184 : vector<2x64xf32> to vector<2x64xbf16>
    %cst_389 = arith.constant dense<0.000000e+00> : vector<2x128xf32>
    %1186 = tpu.matmul %1185, %4, %cst_389 {dimension_numbers = #tpu.dot_dimension_numbers<[1], [0], [0], [1], [0, 0, 1, 1], [], []>} : vector<2x64xbf16>, vector<64x128xbf16>, vector<2x128xf32> -> vector<2x128xf32>
    %1187 = vector.broadcast %5 : vector<1x128xf32> to vector<2x128xf32>
    %1188 = arith.addf %1186, %1187 : vector<2x128xf32>
    %1189 = vector.extract_strided_slice %1188 {offsets = [0, 0], sizes = [2, 32], strides = [1, 1]} : vector<2x128xf32> to vector<2x32xf32>
    %1190 = arith.negf %1189 : vector<2x32xf32>
    %1191 = math.exp %1190 : vector<2x32xf32>
    %cst_390 = arith.constant 1.000000e+00 : f32
    %1192 = vector.broadcast %cst_390 : f32 to vector<2x32xf32>
    %1193 = arith.addf %1192, %1191 : vector<2x32xf32>
    %1194 = arith.divf %1192, %1193 : vector<2x32xf32>
    %1195 = vector.extract_strided_slice %1188 {offsets = [0, 32], sizes = [2, 32], strides = [1, 1]} : vector<2x128xf32> to vector<2x32xf32>
    %1196 = arith.negf %1195 : vector<2x32xf32>
    %1197 = math.exp %1196 : vector<2x32xf32>
    %cst_391 = arith.constant 1.000000e+00 : f32
    %1198 = vector.broadcast %cst_391 : f32 to vector<2x32xf32>
    %1199 = arith.addf %1198, %1197 : vector<2x32xf32>
    %1200 = arith.divf %1198, %1199 : vector<2x32xf32>
    %1201 = vector.extract_strided_slice %1188 {offsets = [0, 64], sizes = [2, 32], strides = [1, 1]} : vector<2x128xf32> to vector<2x32xf32>
    %1202 = math.tanh %1201 : vector<2x32xf32>
    %1203 = vector.extract_strided_slice %1188 {offsets = [0, 96], sizes = [2, 32], strides = [1, 1]} : vector<2x128xf32> to vector<2x32xf32>
    %1204 = arith.negf %1203 : vector<2x32xf32>
    %1205 = math.exp %1204 : vector<2x32xf32>
    %cst_392 = arith.constant 1.000000e+00 : f32
    %1206 = vector.broadcast %cst_392 : f32 to vector<2x32xf32>
    %1207 = arith.addf %1206, %1205 : vector<2x32xf32>
    %1208 = arith.divf %1206, %1207 : vector<2x32xf32>
    %1209 = arith.mulf %1200, %1108 : vector<2x32xf32>
    %1210 = arith.mulf %1194, %1202 : vector<2x32xf32>
    %1211 = arith.addf %1209, %1210 : vector<2x32xf32>
    %1212 = math.tanh %1211 : vector<2x32xf32>
    %1213 = arith.mulf %1208, %1212 : vector<2x32xf32>
    %1214 = vector.shape_cast %1213 : vector<2x32xf32> to vector<2x1x32xf32>
    %1215 = vector.broadcast %1214 : vector<2x1x32xf32> to vector<2x8x32xf32>
    %1216 = arith.mulf %529, %1215 : vector<2x8x32xf32>
    %cst_393 = arith.constant dense<0.000000e+00> : vector<2x8xf32>
    %1217 = vector.multi_reduction <add>, %1216, %cst_393 [2] : vector<2x8x32xf32> to vector<2x8xf32>
    %cst_394 = arith.constant -1.000000e+30 : f32
    %1218 = vector.broadcast %cst_394 : f32 to vector<2x8xf32>
    %1219 = arith.select %533, %1217, %1218 : vector<2x8xi1>, vector<2x8xf32>
    %cst_395 = arith.constant dense<0xFF800000> : vector<2xf32>
    %1220 = vector.multi_reduction <maximumf>, %1219, %cst_395 [1] : vector<2x8xf32> to vector<2xf32>
    %1221 = vector.shape_cast %1220 : vector<2xf32> to vector<2x1xf32>
    %1222 = vector.broadcast %1221 : vector<2x1xf32> to vector<2x8xf32>
    %1223 = arith.subf %1219, %1222 : vector<2x8xf32>
    %1224 = math.exp %1223 : vector<2x8xf32>
    %cst_396 = arith.constant dense<0.000000e+00> : vector<2xf32>
    %1225 = vector.multi_reduction <add>, %1224, %cst_396 [1] : vector<2x8xf32> to vector<2xf32>
    %1226 = vector.shape_cast %1225 : vector<2xf32> to vector<2x1xf32>
    %1227 = tpu.reciprocal %1226 {approx = true} : vector<2x1xf32> -> vector<2x1xf32>
    %1228 = vector.broadcast %1227 : vector<2x1xf32> to vector<2x8xf32>
    %1229 = arith.mulf %1224, %1228 : vector<2x8xf32>
    %1230 = vector.shape_cast %1229 : vector<2x8xf32> to vector<2x8x1xf32>
    %1231 = vector.broadcast %1230 : vector<2x8x1xf32> to vector<2x8x32xf32>
    %1232 = arith.mulf %1231, %529 : vector<2x8x32xf32>
    %cst_397 = arith.constant dense<0.000000e+00> : vector<2x32xf32>
    %1233 = vector.multi_reduction <add>, %1232, %cst_397 [1] : vector<2x8x32xf32> to vector<2x32xf32>
    %c0_398 = arith.constant 0 : index
    %c0_399 = arith.constant 0 : index
    %1234 = vector.load %arg13[%c0_398, %c0_399] : memref<2x64xf32, #tpu.memory_space<vmem>>, vector<2x32xf32>
    tpu.vector_store %arg13[%c0_398, %c0_399], %1213 {strides = array<i32>} : memref<2x64xf32, #tpu.memory_space<vmem>>, vector<2x32xf32>,
    %c0_400 = arith.constant 0 : index
    %c32_401 = arith.constant 32 : index
    %1235 = vector.load %arg13[%c0_400, %c32_401] : memref<2x64xf32, #tpu.memory_space<vmem>>, vector<2x32xf32>
    tpu.vector_store %arg13[%c0_400, %c32_401], %1233 {strides = array<i32>} : memref<2x64xf32, #tpu.memory_space<vmem>>, vector<2x32xf32>,
    %c0_402 = arith.constant 0 : index
    %c0_403 = arith.constant 0 : index
    %1236 = vector.load %arg13[%c0_402, %c0_403] : memref<2x64xf32, #tpu.memory_space<vmem>>, vector<2x64xf32>
    %1237 = arith.truncf %1236 : vector<2x64xf32> to vector<2x64xbf16>
    %cst_404 = arith.constant dense<0.000000e+00> : vector<2x32xf32>
    %1238 = tpu.matmul %1237, %6, %cst_404 {dimension_numbers = #tpu.dot_dimension_numbers<[1], [0], [0], [1], [0, 0, 1, 1], [], []>} : vector<2x64xbf16>, vector<64x32xbf16>, vector<2x32xf32> -> vector<2x32xf32>
    %1239 = vector.broadcast %7 : vector<1x32xf32> to vector<2x32xf32>
    %1240 = arith.addf %1238, %1239 : vector<2x32xf32>
    %cst_405 = arith.constant dense<0xFF800000> : vector<2xf32>
    %1241 = vector.multi_reduction <maximumf>, %1240, %cst_405 [1] : vector<2x32xf32> to vector<2xf32>
    %1242 = vector.shape_cast %1241 : vector<2xf32> to vector<2x1xf32>
    %1243 = vector.broadcast %1242 : vector<2x1xf32> to vector<2x32xf32>
    %1244 = arith.subf %1240, %1243 : vector<2x32xf32>
    %1245 = math.exp %1244 : vector<2x32xf32>
    %cst_406 = arith.constant dense<0.000000e+00> : vector<2xf32>
    %1246 = vector.multi_reduction <add>, %1245, %cst_406 [1] : vector<2x32xf32> to vector<2xf32>
    %1247 = vector.shape_cast %1246 : vector<2xf32> to vector<2x1xf32>
    %1248 = math.log %1247 : vector<2x1xf32>
    %1249 = arith.addf %1242, %1248 : vector<2x1xf32>
    %1250 = vector.broadcast %1249 : vector<2x1xf32> to vector<2x32xf32>
    %1251 = arith.subf %1240, %1250 : vector<2x32xf32>
    %c0_407 = arith.constant 0 : index
    %c6_408 = arith.constant 6 : index
    %c0_409 = arith.constant 0 : index
    %1252 = vector.load %arg11[%c0_407, %c6_408, %c0_409] : memref<2x8x32xf32, #tpu.memory_space<vmem>>, vector<2x1x32xf32>
    %1253 = vector.shape_cast %1252 : vector<2x1x32xf32> to vector<2x32xf32>
    %1254 = vector.shape_cast %1251 : vector<2x32xf32> to vector<2x1x32xf32>
    tpu.vector_store %arg11[%c0_407, %c6_408, %c0_409], %1254 {strides = array<i32>} : memref<2x8x32xf32, #tpu.memory_space<vmem>>, vector<2x1x32xf32>,
    %c7_410 = arith.constant 7 : index
    %c0_411 = arith.constant 0 : index
    %c0_412 = arith.constant 0 : index
    %1255 = vector.load %arg1[%c7_410, %c0_411, %c0_412] : memref<8x2x128xf32, #tpu.memory_space<vmem>>, vector<1x2x128xf32>
    %1256 = vector.shape_cast %1255 : vector<1x2x128xf32> to vector<2x128xf32>
    %1257 = arith.truncf %1181 : vector<2x32xf32> to vector<2x32xbf16>
    %cst_413 = arith.constant dense<0.000000e+00> : vector<2x128xf32>
    %1258 = tpu.matmul %1257, %3, %cst_413 {dimension_numbers = #tpu.dot_dimension_numbers<[1], [0], [0], [1], [0, 0, 1, 1], [], []>} : vector<2x32xbf16>, vector<32x128xbf16>, vector<2x128xf32> -> vector<2x128xf32>
    %1259 = arith.addf %1256, %1258 : vector<2x128xf32>
    %1260 = vector.extract_strided_slice %1259 {offsets = [0, 0], sizes = [2, 32], strides = [1, 1]} : vector<2x128xf32> to vector<2x32xf32>
    %1261 = arith.negf %1260 : vector<2x32xf32>
    %1262 = math.exp %1261 : vector<2x32xf32>
    %cst_414 = arith.constant 1.000000e+00 : f32
    %1263 = vector.broadcast %cst_414 : f32 to vector<2x32xf32>
    %1264 = arith.addf %1263, %1262 : vector<2x32xf32>
    %1265 = arith.divf %1263, %1264 : vector<2x32xf32>
    %1266 = vector.extract_strided_slice %1259 {offsets = [0, 32], sizes = [2, 32], strides = [1, 1]} : vector<2x128xf32> to vector<2x32xf32>
    %1267 = arith.negf %1266 : vector<2x32xf32>
    %1268 = math.exp %1267 : vector<2x32xf32>
    %cst_415 = arith.constant 1.000000e+00 : f32
    %1269 = vector.broadcast %cst_415 : f32 to vector<2x32xf32>
    %1270 = arith.addf %1269, %1268 : vector<2x32xf32>
    %1271 = arith.divf %1269, %1270 : vector<2x32xf32>
    %1272 = vector.extract_strided_slice %1259 {offsets = [0, 64], sizes = [2, 32], strides = [1, 1]} : vector<2x128xf32> to vector<2x32xf32>
    %1273 = math.tanh %1272 : vector<2x32xf32>
    %1274 = vector.extract_strided_slice %1259 {offsets = [0, 96], sizes = [2, 32], strides = [1, 1]} : vector<2x128xf32> to vector<2x32xf32>
    %1275 = arith.negf %1274 : vector<2x32xf32>
    %1276 = math.exp %1275 : vector<2x32xf32>
    %cst_416 = arith.constant 1.000000e+00 : f32
    %1277 = vector.broadcast %cst_416 : f32 to vector<2x32xf32>
    %1278 = arith.addf %1277, %1276 : vector<2x32xf32>
    %1279 = arith.divf %1277, %1278 : vector<2x32xf32>
    %1280 = arith.mulf %1271, %1179 : vector<2x32xf32>
    %1281 = arith.mulf %1265, %1273 : vector<2x32xf32>
    %1282 = arith.addf %1280, %1281 : vector<2x32xf32>
    %1283 = math.tanh %1282 : vector<2x32xf32>
    %1284 = arith.mulf %1279, %1283 : vector<2x32xf32>
    %c0_417 = arith.constant 0 : index
    %c0_418 = arith.constant 0 : index
    %1285 = vector.load %arg13[%c0_417, %c0_418] : memref<2x64xf32, #tpu.memory_space<vmem>>, vector<2x32xf32>
    tpu.vector_store %arg13[%c0_417, %c0_418], %1284 {strides = array<i32>} : memref<2x64xf32, #tpu.memory_space<vmem>>, vector<2x32xf32>,
    %c0_419 = arith.constant 0 : index
    %c32_420 = arith.constant 32 : index
    %1286 = vector.load %arg13[%c0_419, %c32_420] : memref<2x64xf32, #tpu.memory_space<vmem>>, vector<2x32xf32>
    tpu.vector_store %arg13[%c0_419, %c32_420], %1213 {strides = array<i32>} : memref<2x64xf32, #tpu.memory_space<vmem>>, vector<2x32xf32>,
    %c0_421 = arith.constant 0 : index
    %c0_422 = arith.constant 0 : index
    %1287 = vector.load %arg13[%c0_421, %c0_422] : memref<2x64xf32, #tpu.memory_space<vmem>>, vector<2x64xf32>
    %1288 = arith.truncf %1287 : vector<2x64xf32> to vector<2x64xbf16>
    %cst_423 = arith.constant dense<0.000000e+00> : vector<2x128xf32>
    %1289 = tpu.matmul %1288, %4, %cst_423 {dimension_numbers = #tpu.dot_dimension_numbers<[1], [0], [0], [1], [0, 0, 1, 1], [], []>} : vector<2x64xbf16>, vector<64x128xbf16>, vector<2x128xf32> -> vector<2x128xf32>
    %1290 = vector.broadcast %5 : vector<1x128xf32> to vector<2x128xf32>
    %1291 = arith.addf %1289, %1290 : vector<2x128xf32>
    %1292 = vector.extract_strided_slice %1291 {offsets = [0, 0], sizes = [2, 32], strides = [1, 1]} : vector<2x128xf32> to vector<2x32xf32>
    %1293 = arith.negf %1292 : vector<2x32xf32>
    %1294 = math.exp %1293 : vector<2x32xf32>
    %cst_424 = arith.constant 1.000000e+00 : f32
    %1295 = vector.broadcast %cst_424 : f32 to vector<2x32xf32>
    %1296 = arith.addf %1295, %1294 : vector<2x32xf32>
    %1297 = arith.divf %1295, %1296 : vector<2x32xf32>
    %1298 = vector.extract_strided_slice %1291 {offsets = [0, 32], sizes = [2, 32], strides = [1, 1]} : vector<2x128xf32> to vector<2x32xf32>
    %1299 = arith.negf %1298 : vector<2x32xf32>
    %1300 = math.exp %1299 : vector<2x32xf32>
    %cst_425 = arith.constant 1.000000e+00 : f32
    %1301 = vector.broadcast %cst_425 : f32 to vector<2x32xf32>
    %1302 = arith.addf %1301, %1300 : vector<2x32xf32>
    %1303 = arith.divf %1301, %1302 : vector<2x32xf32>
    %1304 = vector.extract_strided_slice %1291 {offsets = [0, 64], sizes = [2, 32], strides = [1, 1]} : vector<2x128xf32> to vector<2x32xf32>
    %1305 = math.tanh %1304 : vector<2x32xf32>
    %1306 = vector.extract_strided_slice %1291 {offsets = [0, 96], sizes = [2, 32], strides = [1, 1]} : vector<2x128xf32> to vector<2x32xf32>
    %1307 = arith.negf %1306 : vector<2x32xf32>
    %1308 = math.exp %1307 : vector<2x32xf32>
    %cst_426 = arith.constant 1.000000e+00 : f32
    %1309 = vector.broadcast %cst_426 : f32 to vector<2x32xf32>
    %1310 = arith.addf %1309, %1308 : vector<2x32xf32>
    %1311 = arith.divf %1309, %1310 : vector<2x32xf32>
    %1312 = arith.mulf %1303, %1211 : vector<2x32xf32>
    %1313 = arith.mulf %1297, %1305 : vector<2x32xf32>
    %1314 = arith.addf %1312, %1313 : vector<2x32xf32>
    %1315 = math.tanh %1314 : vector<2x32xf32>
    %1316 = arith.mulf %1311, %1315 : vector<2x32xf32>
    %1317 = vector.shape_cast %1316 : vector<2x32xf32> to vector<2x1x32xf32>
    %1318 = vector.broadcast %1317 : vector<2x1x32xf32> to vector<2x8x32xf32>
    %1319 = arith.mulf %529, %1318 : vector<2x8x32xf32>
    %cst_427 = arith.constant dense<0.000000e+00> : vector<2x8xf32>
    %1320 = vector.multi_reduction <add>, %1319, %cst_427 [2] : vector<2x8x32xf32> to vector<2x8xf32>
    %cst_428 = arith.constant -1.000000e+30 : f32
    %1321 = vector.broadcast %cst_428 : f32 to vector<2x8xf32>
    %1322 = arith.select %533, %1320, %1321 : vector<2x8xi1>, vector<2x8xf32>
    %cst_429 = arith.constant dense<0xFF800000> : vector<2xf32>
    %1323 = vector.multi_reduction <maximumf>, %1322, %cst_429 [1] : vector<2x8xf32> to vector<2xf32>
    %1324 = vector.shape_cast %1323 : vector<2xf32> to vector<2x1xf32>
    %1325 = vector.broadcast %1324 : vector<2x1xf32> to vector<2x8xf32>
    %1326 = arith.subf %1322, %1325 : vector<2x8xf32>
    %1327 = math.exp %1326 : vector<2x8xf32>
    %cst_430 = arith.constant dense<0.000000e+00> : vector<2xf32>
    %1328 = vector.multi_reduction <add>, %1327, %cst_430 [1] : vector<2x8xf32> to vector<2xf32>
    %1329 = vector.shape_cast %1328 : vector<2xf32> to vector<2x1xf32>
    %1330 = tpu.reciprocal %1329 {approx = true} : vector<2x1xf32> -> vector<2x1xf32>
    %1331 = vector.broadcast %1330 : vector<2x1xf32> to vector<2x8xf32>
    %1332 = arith.mulf %1327, %1331 : vector<2x8xf32>
    %1333 = vector.shape_cast %1332 : vector<2x8xf32> to vector<2x8x1xf32>
    %1334 = vector.broadcast %1333 : vector<2x8x1xf32> to vector<2x8x32xf32>
    %1335 = arith.mulf %1334, %529 : vector<2x8x32xf32>
    %cst_431 = arith.constant dense<0.000000e+00> : vector<2x32xf32>
    %1336 = vector.multi_reduction <add>, %1335, %cst_431 [1] : vector<2x8x32xf32> to vector<2x32xf32>
    %c0_432 = arith.constant 0 : index
    %c0_433 = arith.constant 0 : index
    %1337 = vector.load %arg13[%c0_432, %c0_433] : memref<2x64xf32, #tpu.memory_space<vmem>>, vector<2x32xf32>
    tpu.vector_store %arg13[%c0_432, %c0_433], %1316 {strides = array<i32>} : memref<2x64xf32, #tpu.memory_space<vmem>>, vector<2x32xf32>,
    %c0_434 = arith.constant 0 : index
    %c32_435 = arith.constant 32 : index
    %1338 = vector.load %arg13[%c0_434, %c32_435] : memref<2x64xf32, #tpu.memory_space<vmem>>, vector<2x32xf32>
    tpu.vector_store %arg13[%c0_434, %c32_435], %1336 {strides = array<i32>} : memref<2x64xf32, #tpu.memory_space<vmem>>, vector<2x32xf32>,
    %c0_436 = arith.constant 0 : index
    %c0_437 = arith.constant 0 : index
    %1339 = vector.load %arg13[%c0_436, %c0_437] : memref<2x64xf32, #tpu.memory_space<vmem>>, vector<2x64xf32>
    %1340 = arith.truncf %1339 : vector<2x64xf32> to vector<2x64xbf16>
    %cst_438 = arith.constant dense<0.000000e+00> : vector<2x32xf32>
    %1341 = tpu.matmul %1340, %6, %cst_438 {dimension_numbers = #tpu.dot_dimension_numbers<[1], [0], [0], [1], [0, 0, 1, 1], [], []>} : vector<2x64xbf16>, vector<64x32xbf16>, vector<2x32xf32> -> vector<2x32xf32>
    %1342 = vector.broadcast %7 : vector<1x32xf32> to vector<2x32xf32>
    %1343 = arith.addf %1341, %1342 : vector<2x32xf32>
    %cst_439 = arith.constant dense<0xFF800000> : vector<2xf32>
    %1344 = vector.multi_reduction <maximumf>, %1343, %cst_439 [1] : vector<2x32xf32> to vector<2xf32>
    %1345 = vector.shape_cast %1344 : vector<2xf32> to vector<2x1xf32>
    %1346 = vector.broadcast %1345 : vector<2x1xf32> to vector<2x32xf32>
    %1347 = arith.subf %1343, %1346 : vector<2x32xf32>
    %1348 = math.exp %1347 : vector<2x32xf32>
    %cst_440 = arith.constant dense<0.000000e+00> : vector<2xf32>
    %1349 = vector.multi_reduction <add>, %1348, %cst_440 [1] : vector<2x32xf32> to vector<2xf32>
    %1350 = vector.shape_cast %1349 : vector<2xf32> to vector<2x1xf32>
    %1351 = math.log %1350 : vector<2x1xf32>
    %1352 = arith.addf %1345, %1351 : vector<2x1xf32>
    %1353 = vector.broadcast %1352 : vector<2x1xf32> to vector<2x32xf32>
    %1354 = arith.subf %1343, %1353 : vector<2x32xf32>
    %c0_441 = arith.constant 0 : index
    %c7_442 = arith.constant 7 : index
    %c0_443 = arith.constant 0 : index
    %1355 = vector.load %arg11[%c0_441, %c7_442, %c0_443] : memref<2x8x32xf32, #tpu.memory_space<vmem>>, vector<2x1x32xf32>
    %1356 = vector.shape_cast %1355 : vector<2x1x32xf32> to vector<2x32xf32>
    %1357 = vector.shape_cast %1354 : vector<2x32xf32> to vector<2x1x32xf32>
    tpu.vector_store %arg11[%c0_441, %c7_442, %c0_443], %1357 {strides = array<i32>} : memref<2x8x32xf32, #tpu.memory_space<vmem>>, vector<2x1x32xf32>,
    return
  }
}

</mosaic_0001>

<bundles_post_ra>
// kernel: seq2seq_forward.1
= control target key start
LH: loop header
LB: loop body
LE: loop exit
PB: predicated region body
PF: predicated region fallthrough
CT: control target
= control target key end

     0   :  { %v5595_v1 = vmov 0.0   ;;  %vm5596_vm0 = vmmov 0   ;;  %v5597_v3 = vmov 0   ;;  %s7164_s0 = inlined_call_operand.vmem [shape: f32[8,2,128], index: 0, kind: input, shape index: {}]   ;;  %s7165_s1 = inlined_call_operand.vmem [shape: f32[8,2,128], index: 1, kind: input, shape index: {}]   ;;  %s7166_s2 = inlined_call_operand.vmem [shape: s32[2,1], index: 2, kind: input, shape index: {}]   ;;  %s7167_s3 = inlined_call_operand.vmem [shape: bf16[32,128], index: 3, kind: input, shape index: {}]   ;;  %s7168_s4 = inlined_call_operand.vmem [shape: bf16[64,128], index: 4, kind: input, shape index: {}]   ;;  %s7169_s5 = inlined_call_operand.vmem [shape: f32[1,128], index: 5, kind: input, shape index: {}]   ;;  %s7170_s6 = inlined_call_operand.vmem [shape: bf16[32,128], index: 6, kind: input, shape index: {}]   ;;  %s7171_s7 = inlined_call_operand.vmem [shape: bf16[64,128], index: 7, kind: input, shape index: {}]   ;;  %s7172_s8 = inlined_call_operand.vmem [shape: f32[1,128], index: 8, kind: input, shape index: {}]   ;;  %s7173_s9 = inlined_call_operand.vmem [shape: bf16[64,32], index: 9, kind: input, shape index: {}]   ;;  %s7174_s10 = inlined_call_operand.vmem [shape: f32[1,32], index: 10, kind: input, shape index: {}]   ;;  %s7175_s11 = inlined_call_operand.hbm [shape: f32[2,8,32], index: 11, kind: output, shape index: {}]  }
   0x1   :  { %v5667_v0 = vld [vmem:[%s7167_s3 + $0x8] sm:$0xff]   ;;  %4788 = vmatprep.subr.bf16.mxu0 %v5595_v1  ;;  %4796 = vmatprep.subr.bf16.mxu1 %v5595_v1  ;;  %v5675_v2 = vld [vmem:[%s7167_s3] sm:$0xff]  }
   0x2   :  { %4789 = vmatpush3.bf16.msra.mxu0 %v5667_v0  ;;  %4792 = vmatprep.mubr.msk.bf16.mxu0 %vm5596_vm0, %v5595_v1 }
   0x3   :  { %4790 = vmatprep.subr.bf16.mxu0 %v5595_v1  ;;  %4804 = vmatprep.mubr.msk.bf16.mxu1 %vm5596_vm0, %v5595_v1 }
   0x4   :  { %5213 = vset.pattern.permute.xlu0 %v5597_v3 }
   0x6   :  { %4791 = vmatpush3.bf16.msra.mxu0 %v5675_v2 }
   0x7   :  { %4808 = vmatprep.subr.bf16.mxu0 %v5595_v1 }
   0x9   :  { %4793 = vmatmul.mubr.bf16.vlgmr.msra.gmra.mxu0 %v5597_v3 }
   0xa   :  { %4809 = vmatpush3.bf16.msra.mxu0 %v5667_v0  ;;  %4812 = vmatprep.mubr.msk.bf16.mxu0 %vm5596_vm0, %v5595_v1 }
   0xb   :  { %4810 = vmatprep.subr.bf16.mxu0 %v5595_v1 }
   0xc   :  { %16 = vsyncpa [#allocation5], 0  ;;  %v75_v4 = vld [vmem:[%s7164_s0] sm:$0x3]  ;;  %s5598_s22 = smov 64   ;;  %s5599_s23 = smov 32  }
   0xd   :  { %v5701_v20 = vld [vmem:[%s7168_s4 + $0x18] sm:$0xff]   ;;  %v5709_v22 = vld [vmem:[%s7168_s4 + $0x10] sm:$0xff]   ;;  %v5716_v23 = vld [vmem:[%s7168_s4 + $0x8] sm:$0xff]   ;;  %vm161_vm1 = vcmask 254976   ;;  %vm163_vm2 = vcmask 517376   ;;  %vm88_vm3 = vcmask 261120  }
   0xe   :  { %4811 = vmatpush3.bf16.msra.mxu0 %v5675_v2  ;;  %4797 = vmatpush3.bf16.msra.mxu1 %v5701_v20  ;;  %v5723_v24 = vld [vmem:[%s7168_s4] sm:$0xff]   ;;  %vm197_vm4 = vcmask 523264   ;;  %vm302_vm5 = vcmask 253952   ;;  %vm1899_vm6 = vcmask 1041409   ;;  %vm1903_vm7 = vcmask 58368  }
   0xf   :  { %4816 = vmatprep.subr.bf16.mxu0 %v5595_v1  ;;  %4798 = vmatprep.subr.bf16.mxu1 %v5595_v1  ;;  %v4526_v32 = vld [vmem:[%s7164_s0 + $0x2] sm:$0x3]  ;;  %v5756_v38 = vld [vmem:[%s7169_s5] ss:$0 sm:$0xff] }
  0x12   :  { %4799 = vmatpush3.bf16.msra.mxu1 %v5709_v22 }
  0x13   :  { %4800 = vmatprep.subr.bf16.mxu1 %v5595_v1 }
  0x16   :  { %4801 = vmatpush3.bf16.msra.mxu1 %v5716_v23 }
  0x17   :  { %4802 = vmatprep.subr.bf16.mxu1 %v5595_v1 }
  0x1a   :  { %4803 = vmatpush3.bf16.msra.mxu1 %v5723_v24 }
  0x1b   :  { %4828 = vmatprep.subr.bf16.mxu1 %v5595_v1 }
  0xc9   :  { %v126_v5 = vpop.f32.mrf.mxu0 }
  0xca   :  { %v132_v6 = vadd.f32 %v126_v5, %v75_v4 }
  0xcb   :  { %v4794_v7 = vpop.f32.mrf.mxu0 }
  0xcc   :  { %5230 = vtanh.f32 %v132_v6  ;;  %v4518_v11 = vmul.f32 -1.442695, %v132_v6 }
  0xcd   :  { %v129_v8 = vpop.f32.mrf.mxu0 }
  0xce   :  { %5232 = vpow2.f32 %v4518_v11 }
  0xcf   :  { %v4795_v9 = vpop.f32.mrf.mxu0 }
  0xd9   :  { %v5231_v10 = vpop.eup %5230 }
  0xda   :  { %142 = vrot.lane.b32.xlu0 %v5231_v10, %s5598_s22 }
  0xdb   :  { %v5233_v12 = vpop.eup %5232 }
  0xdc   :  { %v136_v13 = vadd.f32 1.0, %v5233_v12 }
  0xde   :  { %5234 = vrcp.f32 %v136_v13 }
  0xeb   :  { %v5235_v14 = vpop.eup %5234 }
  0xec   :  { %v140_v17 = vmul.f32 0.0, %v5235_v14 }
 0x14c   :  { %v143_v15 = vpop.permute.xlu0 %142 }
 0x14d   :  { %v145_v16 = vmul.f32 %v5235_v14, %v143_v15  ;;  %v4531_v15 = vld [vmem:[%s7164_s0 + $0x4] sm:$0x3] }
 0x14f   :  { %147 = vrot.lane.b32.xlu0 %v145_v16, %s5599_s23 }
 0x1c1   :  { %v148_v18 = vpop.permute.xlu0 %147 }
 0x1c2   :  { %v5695_v19 = vadd.f32 %v148_v18, %v140_v17 }
 0x1c4   :  { %5236 = vtanh.f32 %v5695_v19 }
 0x1d1   :  { %v5237_v21 = vpop.eup %5236 }
 0x1d2   :  { %153 = vrot.lane.b32.xlu1 %v5237_v21, %s5598_s22 }
 0x244   :  { %v154_v25 = vpop.permute.xlu1 %153 }
 0x245   :  { %v156_v26 = vmul.f32 %v5235_v14, %v154_v25 }
 0x247   :  { %v307_v27 = vpack.c.bf16 %v156_v26, %v156_v26  ;;  %158 = vrot.lane.b32.xlu1 %v156_v26, %s5599_s23 }
 0x249   :  { %309 = vrot.lane.b32.xlu0 %v307_v27, %s5599_s23 }
 0x2b9   :  { %v159_v28 = vpop.permute.xlu1 %158 }
 0x2ba   :  { %162 = vst.msk [vmem:[#allocation3] sm:$0x3] %vm161_vm1, %v159_v28 }
 0x2bb   :  { %164 = vst.msk [vmem:[#allocation3] sm:$0x3] %vm163_vm2, %v5595_v1  ;;  %v310_v29 = vpop.permute.xlu0 %309 }
 0x2bc   :  { %4813 = vmatmul.mubr.msk.bf16.vlgmr.msra.gmra.mxu0 %vm88_vm3, %v310_v29 }
 0x2bd   :  { %4817 = vmatpush3.bf16.msra.mxu0 %v5701_v20  ;;  %4824 = vmatprep.mubr.msk.bf16.mxu0 %vm5596_vm0, %v5595_v1 }
 0x2be   :  { %4818 = vmatprep.subr.bf16.mxu0 %v5595_v1 }
 0x2c1   :  { %4819 = vmatpush3.bf16.msra.mxu0 %v5709_v22 }
 0x2c2   :  { %v165_v30 = vld [vmem:[#allocation3] sm:$0x3]  ;;  %4820 = vmatprep.subr.bf16.mxu0 %v5595_v1 }
 0x2c3   :  { %v166_v31 = vpack.c.bf16 %v165_v30, %v165_v30 }
 0x2c5   :  { %4805 = vmatmul.mubr.msk.bf16.vlgmr.msra.gmra.mxu1 %vm197_vm4, %v166_v31  ;;  %4821 = vmatpush3.bf16.msra.mxu0 %v5716_v23 }
 0x2c6   :  { %4829 = vmatpush3.bf16.msra.mxu1 %v5667_v0  ;;  %4832 = vmatprep.mubr.msk.bf16.mxu1 %vm5596_vm0, %v5595_v1 }
 0x2c7   :  { %4830 = vmatprep.subr.bf16.mxu1 %v5595_v1  ;;  %4822 = vmatprep.subr.bf16.mxu0 %v5595_v1 }
 0x2c9   :  { %4823 = vmatpush3.bf16.msra.mxu0 %v5723_v24 }
 0x2ca   :  { %4831 = vmatpush3.bf16.msra.mxu1 %v5675_v2  ;;  %4848 = vmatprep.subr.bf16.mxu0 %v5595_v1 }
 0x2cb   :  { %4836 = vmatprep.subr.bf16.mxu1 %v5595_v1 }
 0x37c   :  { %v348_v33 = vpop.f32.mrf.mxu0 }
 0x37d   :  { %v354_v34 = vadd.f32 %v4526_v32, %v348_v33 }
 0x37e   :  { %v4814_v35 = vpop.f32.mrf.mxu0 }
 0x37f   :  { %5238 = vtanh.f32 %v354_v34  ;;  %v4528_v46 = vmul.f32 -1.442695, %v354_v34 }
 0x380   :  { %v351_v36 = vpop.f32.mrf.mxu0 }
 0x382   :  { %v4815_v37 = vpop.f32.mrf.mxu0 }
 0x385   :  { %v235_v39 = vpop.f32.mrf.mxu1 }
 0x386   :  { %v236_v40 = vadd.f32 %v5756_v38, %v235_v39 }
 0x387   :  { %v4806_v41 = vpop.f32.mrf.mxu1 }
 0x388   :  { %5240 = vtanh.f32 %v236_v40  ;;  %v4525_v47 = vmul.f32 -1.442695, %v236_v40 }
 0x389   :  { %v238_v42 = vpop.f32.mrf.mxu1  ;;  %5242 = vpow2.f32 %v4528_v46 }
 0x38a   :  { %5244 = vpow2.f32 %v4525_v47 }
 0x38b   :  { %v4807_v43 = vpop.f32.mrf.mxu1 }
 0x38c   :  { %v5239_v44 = vpop.eup %5238 }
 0x38d   :  { %364 = vrot.lane.b32.xlu1 %v5239_v44, %s5598_s22 }
 0x395   :  { %v5241_v45 = vpop.eup %5240 }
 0x396   :  { %250 = vrot.lane.b32.xlu0 %v5241_v45, %s5598_s22  ;;  %v5243_v48 = vpop.eup %5242 }
 0x397   :  { %v358_v49 = vadd.f32 1.0, %v5243_v48  ;;  %v5245_v50 = vpop.eup %5244 }
 0x398   :  { %v244_v51 = vadd.f32 1.0, %v5245_v50 }
 0x399   :  { %5246 = vrcp.f32 %v358_v49 }
 0x39a   :  { %5248 = vrcp.f32 %v244_v51 }
 0x3a6   :  { %v5247_v52 = vpop.eup %5246 }
 0x3a7   :  { %v5249_v55 = vpop.eup %5248  ;;  %v362_v58 = vmul.f32 %v5247_v52, %v5695_v19 }
 0x3a8   :  { %v248_v61 = vmul.f32 0.0, %v5249_v55 }
 0x3ff   :  { %v365_v53 = vpop.permute.xlu1 %364 }
 0x400   :  { %v367_v54 = vmul.f32 %v5247_v52, %v365_v53 }
 0x402   :  { %369 = vrot.lane.b32.xlu1 %v367_v54, %s5599_s23 }
 0x408   :  { %v251_v56 = vpop.permute.xlu0 %250 }
 0x409   :  { %v253_v57 = vmul.f32 %v5249_v55, %v251_v56 }
 0x40b   :  { %255 = vrot.lane.b32.xlu0 %v253_v57, %s5599_s23 }
 0x474   :  { %v370_v59 = vpop.permute.xlu1 %369 }
 0x475   :  { %v5764_v60 = vadd.f32 %v370_v59, %v362_v58 }
 0x477   :  { %5250 = vtanh.f32 %v5764_v60 }
 0x47d   :  { %v256_v62 = vpop.permute.xlu0 %255 }
 0x47e   :  { %v5767_v63 = vadd.f32 %v256_v62, %v248_v61 }
 0x480   :  { %5252 = vtanh.f32 %v5767_v63 }
 0x484   :  { %v5251_v3 = vpop.eup %5250 }
 0x485   :  { %375 = vrot.lane.b32.xlu1 %v5251_v3, %s5598_s22 }
 0x48d   :  { %v5253_v4 = vpop.eup %5252 }
 0x48e   :  { %261 = vrot.lane.b32.xlu0 %v5253_v4, %s5598_s22 }
 0x4f7   :  { %v376_v5 = vpop.permute.xlu1 %375 }
 0x4f8   :  { %v378_v6 = vmul.f32 %v5247_v52, %v376_v5 }
 0x4fa   :  { %380 = vrot.lane.b32.xlu1 %v378_v6, %s5599_s23  ;;  %v498_v7 = vpack.c.bf16 %v378_v6, %v378_v6 }
 0x4fe   :  { %500 = vrot.lane.b32.xlu1 %v498_v7, %s5599_s23 }
 0x500   :  { %v262_v8 = vpop.permute.xlu0 %261 }
 0x501   :  { %v5774_v9 = vmul.f32 %v5249_v55, %v262_v8 }
 0x503   :  { %384 = vrot.lane.b32.xlu0 %v5774_v9, %s5598_s22 }
 0x56c   :  { %v381_v10 = vpop.permute.xlu1 %380 }
 0x56d   :  { %383 = vst.msk [vmem:[#allocation3] sm:$0x3] %vm161_vm1, %v381_v10 }
 0x570   :  { %v501_v11 = vpop.permute.xlu1 %500 }
 0x571   :  { %4833 = vmatmul.mubr.msk.bf16.vlgmr.msra.gmra.mxu1 %vm88_vm3, %v501_v11 }
 0x572   :  { %4837 = vmatpush3.bf16.msra.mxu1 %v5701_v20  ;;  %4844 = vmatprep.mubr.msk.bf16.mxu1 %vm5596_vm0, %v5595_v1 }
 0x573   :  { %4838 = vmatprep.subr.bf16.mxu1 %v5595_v1 }
 0x575   :  { %v385_v12 = vpop.permute.xlu0 %384 }
 0x576   :  { %387 = vst.msk [vmem:[#allocation3] sm:$0x3] %vm163_vm2, %v385_v12  ;;  %4839 = vmatpush3.bf16.msra.mxu1 %v5709_v22 }
 0x577   :  { %4840 = vmatprep.subr.bf16.mxu1 %v5595_v1 }
 0x57a   :  { %4841 = vmatpush3.bf16.msra.mxu1 %v5716_v23 }
 0x57b   :  { %4842 = vmatprep.subr.bf16.mxu1 %v5595_v1 }
 0x57d   :  { %v388_v13 = vld [vmem:[#allocation3] sm:$0x3] }
 0x57e   :  { %v389_v14 = vpack.c.bf16 %v388_v13, %v388_v13  ;;  %4843 = vmatpush3.bf16.msra.mxu1 %v5723_v24 }
 0x57f   :  { %4868 = vmatprep.subr.bf16.mxu1 %v5595_v1 }
 0x580   :  { %4825 = vmatmul.mubr.msk.bf16.vlgmr.msra.gmra.mxu0 %vm197_vm4, %v389_v14 }
 0x581   :  { %4849 = vmatpush3.bf16.msra.mxu0 %v5667_v0  ;;  %4852 = vmatprep.mubr.msk.bf16.mxu0 %vm5596_vm0, %v5595_v1 }
 0x582   :  { %4850 = vmatprep.subr.bf16.mxu0 %v5595_v1 }
 0x585   :  { %4851 = vmatpush3.bf16.msra.mxu0 %v5675_v2 }
 0x586   :  { %4856 = vmatprep.subr.bf16.mxu0 %v5595_v1 }
 0x631   :  { %v539_v16 = vpop.f32.mrf.mxu1 }
 0x632   :  { %v545_v17 = vadd.f32 %v4531_v15, %v539_v16 }
 0x633   :  { %v4834_v18 = vpop.f32.mrf.mxu1 }
 0x634   :  { %5254 = vtanh.f32 %v545_v17  ;;  %v4533_v32 = vmul.f32 -1.442695, %v545_v17 }
 0x635   :  { %v542_v19 = vpop.f32.mrf.mxu1 }
 0x637   :  { %v4835_v21 = vpop.f32.mrf.mxu1 }
 0x640   :  { %v427_v25 = vpop.f32.mrf.mxu0 }
 0x641   :  { %v5255_v26 = vpop.eup %5254  ;;  %v428_v27 = vadd.f32 %v5756_v38, %v427_v25 }
 0x642   :  { %555 = vrot.lane.b32.xlu0 %v5255_v26, %s5598_s22  ;;  %v4826_v28 = vpop.f32.mrf.mxu0 }
 0x643   :  { %5256 = vtanh.f32 %v428_v27  ;;  %v4530_v33 = vmul.f32 -1.442695, %v428_v27 }
 0x644   :  { %v430_v29 = vpop.f32.mrf.mxu0  ;;  %5258 = vpow2.f32 %v4533_v32 }
 0x645   :  { %5260 = vpow2.f32 %v4530_v33 }
 0x646   :  { %v4827_v30 = vpop.f32.mrf.mxu0 }
 0x650   :  { %v5257_v31 = vpop.eup %5256 }
 0x651   :  { %442 = vrot.lane.b32.xlu1 %v5257_v31, %s5598_s22  ;;  %v5259_v34 = vpop.eup %5258 }
 0x652   :  { %v549_v35 = vadd.f32 1.0, %v5259_v34  ;;  %v5261_v36 = vpop.eup %5260 }
 0x653   :  { %v436_v37 = vadd.f32 1.0, %v5261_v36 }
 0x654   :  { %5262 = vrcp.f32 %v549_v35 }
 0x655   :  { %5264 = vrcp.f32 %v436_v37 }
 0x661   :  { %v5263_v39 = vpop.eup %5262 }
 0x662   :  { %v5265_v42 = vpop.eup %5264  ;;  %v553_v45 = vmul.f32 %v5263_v39, %v5764_v60 }
 0x663   :  { %v440_v48 = vmul.f32 %v5265_v42, %v5767_v63  ;;  %v4536_v63 = vld [vmem:[%s7164_s0 + $0x6] sm:$0x3] }
 0x6b4   :  { %v556_v40 = vpop.permute.xlu0 %555 }
 0x6b5   :  { %v558_v41 = vmul.f32 %v5263_v39, %v556_v40 }
 0x6b7   :  { %560 = vrot.lane.b32.xlu0 %v558_v41, %s5599_s23 }
 0x6c3   :  { %v443_v43 = vpop.permute.xlu1 %442 }
 0x6c4   :  { %v445_v44 = vmul.f32 %v5265_v42, %v443_v43 }
 0x6c6   :  { %447 = vrot.lane.b32.xlu1 %v445_v44, %s5599_s23 }
 0x729   :  { %v561_v46 = vpop.permute.xlu0 %560 }
 0x72a   :  { %v5807_v47 = vadd.f32 %v561_v46, %v553_v45 }
 0x72c   :  { %5266 = vtanh.f32 %v5807_v47 }
 0x738   :  { %v448_v49 = vpop.permute.xlu1 %447 }
 0x739   :  { %v5267_v50 = vpop.eup %5266  ;;  %v5811_v51 = vadd.f32 %v448_v49, %v440_v48 }
 0x73a   :  { %566 = vrot.lane.b32.xlu0 %v5267_v50, %s5598_s22 }
 0x73b   :  { %5268 = vtanh.f32 %v5811_v51 }
 0x748   :  { %v5269_v52 = vpop.eup %5268 }
 0x749   :  { %453 = vrot.lane.b32.xlu1 %v5269_v52, %s5598_s22 }
 0x7ac   :  { %v567_v53 = vpop.permute.xlu0 %566 }
 0x7ad   :  { %v569_v54 = vmul.f32 %v5263_v39, %v567_v53 }
 0x7af   :  { %571 = vrot.lane.b32.xlu0 %v569_v54, %s5599_s23  ;;  %v689_v55 = vpack.c.bf16 %v569_v54, %v569_v54 }
 0x7b3   :  { %691 = vrot.lane.b32.xlu0 %v689_v55, %s5599_s23 }
 0x7bb   :  { %v454_v56 = vpop.permute.xlu1 %453 }
 0x7bc   :  { %v5818_v57 = vmul.f32 %v5265_v42, %v454_v56 }
 0x7be   :  { %575 = vrot.lane.b32.xlu1 %v5818_v57, %s5598_s22 }
 0x821   :  { %v572_v58 = vpop.permute.xlu0 %571 }
 0x822   :  { %574 = vst.msk [vmem:[#allocation3] sm:$0x3] %vm161_vm1, %v572_v58 }
 0x825   :  { %v692_v59 = vpop.permute.xlu0 %691 }
 0x826   :  { %4853 = vmatmul.mubr.msk.bf16.vlgmr.msra.gmra.mxu0 %vm88_vm3, %v692_v59 }
 0x827   :  { %4857 = vmatpush3.bf16.msra.mxu0 %v5701_v20  ;;  %4864 = vmatprep.mubr.msk.bf16.mxu0 %vm5596_vm0, %v5595_v1 }
 0x828   :  { %4858 = vmatprep.subr.bf16.mxu0 %v5595_v1 }
 0x82b   :  { %4859 = vmatpush3.bf16.msra.mxu0 %v5709_v22 }
 0x82c   :  { %4860 = vmatprep.subr.bf16.mxu0 %v5595_v1 }
 0x82f   :  { %4861 = vmatpush3.bf16.msra.mxu0 %v5716_v23 }
 0x830   :  { %v576_v60 = vpop.permute.xlu1 %575  ;;  %4862 = vmatprep.subr.bf16.mxu0 %v5595_v1 }
 0x831   :  { %578 = vst.msk [vmem:[#allocation3] sm:$0x3] %vm163_vm2, %v576_v60 }
 0x833   :  { %4863 = vmatpush3.bf16.msra.mxu0 %v5723_v24 }
 0x834   :  { %4888 = vmatprep.subr.bf16.mxu0 %v5595_v1 }
 0x838   :  { %v579_v61 = vld [vmem:[#allocation3] sm:$0x3] }
 0x839   :  { %v580_v62 = vpack.c.bf16 %v579_v61, %v579_v61 }
 0x83b   :  { %4845 = vmatmul.mubr.msk.bf16.vlgmr.msra.gmra.mxu1 %vm197_vm4, %v580_v62 }
 0x83c   :  { %4869 = vmatpush3.bf16.msra.mxu1 %v5667_v0  ;;  %4872 = vmatprep.mubr.msk.bf16.mxu1 %vm5596_vm0, %v5595_v1 }
 0x83d   :  { %4870 = vmatprep.subr.bf16.mxu1 %v5595_v1 }
 0x840   :  { %4871 = vmatpush3.bf16.msra.mxu1 %v5675_v2 }
 0x841   :  { %4876 = vmatprep.subr.bf16.mxu1 %v5595_v1 }
 0x8e6   :  { %v730_v3 = vpop.f32.mrf.mxu0 }
 0x8e7   :  { %v736_v4 = vadd.f32 %v4536_v63, %v730_v3 }
 0x8e8   :  { %v4854_v5 = vpop.f32.mrf.mxu0 }
 0x8e9   :  { %5270 = vtanh.f32 %v736_v4  ;;  %v4538_v16 = vmul.f32 -1.442695, %v736_v4 }
 0x8ea   :  { %v733_v6 = vpop.f32.mrf.mxu0 }
 0x8ec   :  { %v4855_v7 = vpop.f32.mrf.mxu0 }
 0x8f6   :  { %v5271_v8 = vpop.eup %5270 }
 0x8f7   :  { %746 = vrot.lane.b32.xlu1 %v5271_v8, %s5598_s22 }
 0x8fb   :  { %v618_v10 = vpop.f32.mrf.mxu1 }
 0x8fc   :  { %v619_v11 = vadd.f32 %v5756_v38, %v618_v10 }
 0x8fd   :  { %v4846_v12 = vpop.f32.mrf.mxu1 }
 0x8fe   :  { %5272 = vtanh.f32 %v619_v11  ;;  %v4535_v19 = vmul.f32 -1.442695, %v619_v11 }
 0x8ff   :  { %v621_v13 = vpop.f32.mrf.mxu1  ;;  %5274 = vpow2.f32 %v4538_v16 }
 0x901   :  { %v4847_v14 = vpop.f32.mrf.mxu1 }
 0x90b   :  { %v5273_v15 = vpop.eup %5272 }
 0x90c   :  { %633 = vrot.lane.b32.xlu0 %v5273_v15, %s5598_s22  ;;  %v5275_v17 = vpop.eup %5274 }
 0x90d   :  { %v740_v18 = vadd.f32 1.0, %v5275_v17 }
 0x90f   :  { %5276 = vrcp.f32 %v740_v18 }
 0x910   :  { %5278 = vpow2.f32 %v4535_v19 }
 0x91c   :  { %v5277_v21 = vpop.eup %5276 }
 0x91d   :  { %v5279_v26 = vpop.eup %5278  ;;  %v744_v32 = vmul.f32 %v5277_v21, %v5807_v47 }
 0x91e   :  { %v627_v28 = vadd.f32 1.0, %v5279_v26 }
 0x920   :  { %5280 = vrcp.f32 %v627_v28 }
 0x92d   :  { %v5281_v29 = vpop.eup %5280 }
 0x92e   :  { %v631_v36 = vmul.f32 %v5281_v29, %v5811_v51  ;;  %v4541_v51 = vld [vmem:[%s7164_s0 + $0x8] sm:$0x3] }
 0x969   :  { %v747_v25 = vpop.permute.xlu1 %746 }
 0x96a   :  { %v749_v27 = vmul.f32 %v5277_v21, %v747_v25 }
 0x96c   :  { %751 = vrot.lane.b32.xlu1 %v749_v27, %s5599_s23 }
 0x97e   :  { %v634_v30 = vpop.permute.xlu0 %633 }
 0x97f   :  { %v636_v31 = vmul.f32 %v5281_v29, %v634_v30 }
 0x981   :  { %638 = vrot.lane.b32.xlu0 %v636_v31, %s5599_s23 }
 0x9de   :  { %v752_v33 = vpop.permute.xlu1 %751 }
 0x9df   :  { %v5851_v34 = vadd.f32 %v752_v33, %v744_v32 }
 0x9e1   :  { %5282 = vtanh.f32 %v5851_v34 }
 0x9ee   :  { %v5283_v35 = vpop.eup %5282 }
 0x9ef   :  { %757 = vrot.lane.b32.xlu1 %v5283_v35, %s5598_s22 }
 0x9f3   :  { %v639_v37 = vpop.permute.xlu0 %638 }
 0x9f4   :  { %v5856_v39 = vadd.f32 %v639_v37, %v631_v36 }
 0x9f6   :  { %5284 = vtanh.f32 %v5856_v39 }
 0xa03   :  { %v5285_v40 = vpop.eup %5284 }
 0xa04   :  { %644 = vrot.lane.b32.xlu0 %v5285_v40, %s5598_s22  ;;  %v4546_v40 = vld [vmem:[%s7164_s0 + $0xa] sm:$0x3] }
 0xa61   :  { %v758_v41 = vpop.permute.xlu1 %757 }
 0xa62   :  { %v760_v42 = vmul.f32 %v5277_v21, %v758_v41 }
 0xa64   :  { %762 = vrot.lane.b32.xlu1 %v760_v42, %s5599_s23  ;;  %v880_v43 = vpack.c.bf16 %v760_v42, %v760_v42 }
 0xa68   :  { %882 = vrot.lane.b32.xlu1 %v880_v43, %s5599_s23 }
 0xa76   :  { %v645_v44 = vpop.permute.xlu0 %644 }
 0xa77   :  { %v5862_v45 = vmul.f32 %v5281_v29, %v645_v44 }
 0xa79   :  { %766 = vrot.lane.b32.xlu0 %v5862_v45, %s5598_s22 }
 0xad6   :  { %v763_v46 = vpop.permute.xlu1 %762 }
 0xad7   :  { %765 = vst.msk [vmem:[#allocation3] sm:$0x3] %vm161_vm1, %v763_v46 }
 0xada   :  { %v883_v47 = vpop.permute.xlu1 %882 }
 0xadb   :  { %4873 = vmatmul.mubr.msk.bf16.vlgmr.msra.gmra.mxu1 %vm88_vm3, %v883_v47 }
 0xadc   :  { %4877 = vmatpush3.bf16.msra.mxu1 %v5701_v20  ;;  %4884 = vmatprep.mubr.msk.bf16.mxu1 %vm5596_vm0, %v5595_v1 }
 0xadd   :  { %4878 = vmatprep.subr.bf16.mxu1 %v5595_v1 }
 0xae0   :  { %4879 = vmatpush3.bf16.msra.mxu1 %v5709_v22 }
 0xae1   :  { %4880 = vmatprep.subr.bf16.mxu1 %v5595_v1 }
 0xae4   :  { %4881 = vmatpush3.bf16.msra.mxu1 %v5716_v23 }
 0xae5   :  { %4882 = vmatprep.subr.bf16.mxu1 %v5595_v1 }
 0xae8   :  { %4883 = vmatpush3.bf16.msra.mxu1 %v5723_v24 }
 0xae9   :  { %4908 = vmatprep.subr.bf16.mxu1 %v5595_v1 }
 0xaeb   :  { %v767_v48 = vpop.permute.xlu0 %766 }
 0xaec   :  { %769 = vst.msk [vmem:[#allocation3] sm:$0x3] %vm163_vm2, %v767_v48 }
 0xaf3   :  { %v770_v49 = vld [vmem:[#allocation3] sm:$0x3] }
 0xaf4   :  { %v771_v50 = vpack.c.bf16 %v770_v49, %v770_v49 }
 0xaf6   :  { %4865 = vmatmul.mubr.msk.bf16.vlgmr.msra.gmra.mxu0 %vm197_vm4, %v771_v50 }
 0xaf7   :  { %4889 = vmatpush3.bf16.msra.mxu0 %v5667_v0  ;;  %4892 = vmatprep.mubr.msk.bf16.mxu0 %vm5596_vm0, %v5595_v1 }
 0xaf8   :  { %4890 = vmatprep.subr.bf16.mxu0 %v5595_v1 }
 0xafb   :  { %4891 = vmatpush3.bf16.msra.mxu0 %v5675_v2 }
 0xafc   :  { %4896 = vmatprep.subr.bf16.mxu0 %v5595_v1 }
 0xb9b   :  { %v921_v52 = vpop.f32.mrf.mxu1 }
 0xb9c   :  { %v927_v53 = vadd.f32 %v4541_v51, %v921_v52 }
 0xb9d   :  { %v4874_v54 = vpop.f32.mrf.mxu1 }
 0xb9e   :  { %5286 = vtanh.f32 %v927_v53  ;;  %v4543_v4 = vmul.f32 -1.442695, %v927_v53 }
 0xb9f   :  { %v924_v55 = vpop.f32.mrf.mxu1 }
 0xba1   :  { %v4875_v56 = vpop.f32.mrf.mxu1 }
 0xbab   :  { %v5287_v58 = vpop.eup %5286 }
 0xbac   :  { %937 = vrot.lane.b32.xlu0 %v5287_v58, %s5598_s22 }
 0xbb6   :  { %v809_v59 = vpop.f32.mrf.mxu0 }
 0xbb7   :  { %v810_v60 = vadd.f32 %v5756_v38, %v809_v59 }
 0xbb8   :  { %v4866_v61 = vpop.f32.mrf.mxu0 }
 0xbb9   :  { %5288 = vtanh.f32 %v810_v60  ;;  %v4540_v7 = vmul.f32 -1.442695, %v810_v60 }
 0xbba   :  { %v812_v62 = vpop.f32.mrf.mxu0  ;;  %5290 = vpow2.f32 %v4543_v4 }
 0xbbc   :  { %v4867_v63 = vpop.f32.mrf.mxu0 }
 0xbc6   :  { %v5289_v3 = vpop.eup %5288 }
 0xbc7   :  { %824 = vrot.lane.b32.xlu1 %v5289_v3, %s5598_s22  ;;  %v5291_v5 = vpop.eup %5290 }
 0xbc8   :  { %v931_v6 = vadd.f32 1.0, %v5291_v5 }
 0xbca   :  { %5292 = vrcp.f32 %v931_v6 }
 0xbcb   :  { %5294 = vpow2.f32 %v4540_v7 }
 0xbd7   :  { %v5293_v8 = vpop.eup %5292 }
 0xbd8   :  { %v5295_v12 = vpop.eup %5294  ;;  %v935_v17 = vmul.f32 %v5293_v8, %v5851_v34 }
 0xbd9   :  { %v818_v13 = vadd.f32 1.0, %v5295_v12 }
 0xbdb   :  { %5296 = vrcp.f32 %v818_v13 }
 0xbe8   :  { %v5297_v14 = vpop.eup %5296 }
 0xbe9   :  { %v822_v25 = vmul.f32 %v5297_v14, %v5856_v39 }
 0xc1e   :  { %v938_v10 = vpop.permute.xlu0 %937 }
 0xc1f   :  { %v940_v11 = vmul.f32 %v5293_v8, %v938_v10 }
 0xc21   :  { %942 = vrot.lane.b32.xlu0 %v940_v11, %s5599_s23 }
 0xc39   :  { %v825_v15 = vpop.permute.xlu1 %824 }
 0xc3a   :  { %v827_v16 = vmul.f32 %v5297_v14, %v825_v15 }
 0xc3c   :  { %829 = vrot.lane.b32.xlu1 %v827_v16, %s5599_s23 }
 0xc93   :  { %v943_v18 = vpop.permute.xlu0 %942 }
 0xc94   :  { %v5895_v19 = vadd.f32 %v943_v18, %v935_v17 }
 0xc96   :  { %5298 = vtanh.f32 %v5895_v19 }
 0xca3   :  { %v5299_v21 = vpop.eup %5298 }
 0xca4   :  { %948 = vrot.lane.b32.xlu0 %v5299_v21, %s5598_s22 }
 0xcae   :  { %v830_v26 = vpop.permute.xlu1 %829 }
 0xcaf   :  { %v5900_v27 = vadd.f32 %v830_v26, %v822_v25 }
 0xcb1   :  { %5300 = vtanh.f32 %v5900_v27 }
 0xcbe   :  { %v5301_v28 = vpop.eup %5300 }
 0xcbf   :  { %835 = vrot.lane.b32.xlu1 %v5301_v28, %s5598_s22 }
 0xd16   :  { %v949_v29 = vpop.permute.xlu0 %948 }
 0xd17   :  { %v951_v30 = vmul.f32 %v5293_v8, %v949_v29  ;;  %v4551_v29 = vld [vmem:[%s7164_s0 + $0xc] sm:$0x3] }
 0xd19   :  { %953 = vrot.lane.b32.xlu0 %v951_v30, %s5599_s23  ;;  %v1071_v31 = vpack.c.bf16 %v951_v30, %v951_v30 }
 0xd1d   :  { %1073 = vrot.lane.b32.xlu0 %v1071_v31, %s5599_s23 }
 0xd31   :  { %v836_v32 = vpop.permute.xlu1 %835 }
 0xd32   :  { %v5906_v33 = vmul.f32 %v5297_v14, %v836_v32 }
 0xd34   :  { %957 = vrot.lane.b32.xlu1 %v5906_v33, %s5598_s22 }
 0xd8b   :  { %v954_v34 = vpop.permute.xlu0 %953 }
 0xd8c   :  { %956 = vst.msk [vmem:[#allocation3] sm:$0x3] %vm161_vm1, %v954_v34 }
 0xd8f   :  { %v1074_v35 = vpop.permute.xlu0 %1073 }
 0xd90   :  { %4893 = vmatmul.mubr.msk.bf16.vlgmr.msra.gmra.mxu0 %vm88_vm3, %v1074_v35 }
 0xd91   :  { %4897 = vmatpush3.bf16.msra.mxu0 %v5701_v20  ;;  %4904 = vmatprep.mubr.msk.bf16.mxu0 %vm5596_vm0, %v5595_v1 }
 0xd92   :  { %4898 = vmatprep.subr.bf16.mxu0 %v5595_v1 }
 0xd95   :  { %4899 = vmatpush3.bf16.msra.mxu0 %v5709_v22 }
 0xd96   :  { %4900 = vmatprep.subr.bf16.mxu0 %v5595_v1 }
 0xd99   :  { %4901 = vmatpush3.bf16.msra.mxu0 %v5716_v23 }
 0xd9a   :  { %4902 = vmatprep.subr.bf16.mxu0 %v5595_v1 }
 0xd9d   :  { %4903 = vmatpush3.bf16.msra.mxu0 %v5723_v24 }
 0xd9e   :  { %4928 = vmatprep.subr.bf16.mxu0 %v5595_v1 }
 0xda6   :  { %v958_v36 = vpop.permute.xlu1 %957 }
 0xda7   :  { %960 = vst.msk [vmem:[#allocation3] sm:$0x3] %vm163_vm2, %v958_v36 }
 0xdae   :  { %v961_v37 = vld [vmem:[#allocation3] sm:$0x3] }
 0xdaf   :  { %v962_v39 = vpack.c.bf16 %v961_v37, %v961_v37 }
 0xdb1   :  { %4885 = vmatmul.mubr.msk.bf16.vlgmr.msra.gmra.mxu1 %vm197_vm4, %v962_v39 }
 0xdb2   :  { %4909 = vmatpush3.bf16.msra.mxu1 %v5667_v0  ;;  %4912 = vmatprep.mubr.msk.bf16.mxu1 %vm5596_vm0, %v5595_v1 }
 0xdb3   :  { %4910 = vmatprep.subr.bf16.mxu1 %v5595_v1 }
 0xdb6   :  { %4911 = vmatpush3.bf16.msra.mxu1 %v5675_v2 }
 0xdb7   :  { %4916 = vmatprep.subr.bf16.mxu1 %v5595_v1 }
 0xe50   :  { %v1112_v41 = vpop.f32.mrf.mxu0 }
 0xe51   :  { %v1118_v42 = vadd.f32 %v4546_v40, %v1112_v41 }
 0xe52   :  { %v4894_v43 = vpop.f32.mrf.mxu0 }
 0xe53   :  { %5302 = vtanh.f32 %v1118_v42  ;;  %v4548_v54 = vmul.f32 -1.442695, %v1118_v42 }
 0xe54   :  { %v1115_v44 = vpop.f32.mrf.mxu0 }
 0xe56   :  { %v4895_v46 = vpop.f32.mrf.mxu0 }
 0xe60   :  { %v5303_v47 = vpop.eup %5302 }
 0xe61   :  { %1128 = vrot.lane.b32.xlu1 %v5303_v47, %s5598_s22 }
 0xe71   :  { %v1000_v48 = vpop.f32.mrf.mxu1 }
 0xe72   :  { %v1001_v49 = vadd.f32 %v5756_v38, %v1000_v48 }
 0xe73   :  { %v4886_v50 = vpop.f32.mrf.mxu1 }
 0xe74   :  { %5304 = vtanh.f32 %v1001_v49  ;;  %v4545_v58 = vmul.f32 -1.442695, %v1001_v49 }
 0xe75   :  { %v1003_v51 = vpop.f32.mrf.mxu1  ;;  %5306 = vpow2.f32 %v4548_v54 }
 0xe77   :  { %v4887_v52 = vpop.f32.mrf.mxu1 }
 0xe81   :  { %v5305_v53 = vpop.eup %5304 }
 0xe82   :  { %1015 = vrot.lane.b32.xlu0 %v5305_v53, %s5598_s22  ;;  %v5307_v55 = vpop.eup %5306 }
 0xe83   :  { %v1122_v56 = vadd.f32 1.0, %v5307_v55 }
 0xe85   :  { %5308 = vrcp.f32 %v1122_v56 }
 0xe86   :  { %5310 = vpow2.f32 %v4545_v58 }
 0xe92   :  { %v5309_v59 = vpop.eup %5308 }
 0xe93   :  { %v5311_v62 = vpop.eup %5310  ;;  %v1126_v6 = vmul.f32 %v5309_v59, %v5895_v19 }
 0xe94   :  { %v1009_v63 = vadd.f32 1.0, %v5311_v62 }
 0xe96   :  { %5312 = vrcp.f32 %v1009_v63 }
 0xea3   :  { %v5313_v3 = vpop.eup %5312 }
 0xea4   :  { %v1013_v11 = vmul.f32 %v5313_v3, %v5900_v27 }
 0xed3   :  { %v1129_v60 = vpop.permute.xlu1 %1128 }
 0xed4   :  { %v1131_v61 = vmul.f32 %v5309_v59, %v1129_v60 }
 0xed6   :  { %1133 = vrot.lane.b32.xlu1 %v1131_v61, %s5599_s23 }
 0xef4   :  { %v1016_v4 = vpop.permute.xlu0 %1015 }
 0xef5   :  { %v1018_v5 = vmul.f32 %v5313_v3, %v1016_v4 }
 0xef7   :  { %1020 = vrot.lane.b32.xlu0 %v1018_v5, %s5599_s23 }
 0xf48   :  { %v1134_v7 = vpop.permute.xlu1 %1133 }
 0xf49   :  { %v5939_v8 = vadd.f32 %v1134_v7, %v1126_v6 }
 0xf4b   :  { %5314 = vtanh.f32 %v5939_v8 }
 0xf58   :  { %v5315_v10 = vpop.eup %5314 }
 0xf59   :  { %1139 = vrot.lane.b32.xlu1 %v5315_v10, %s5598_s22 }
 0xf69   :  { %v1021_v12 = vpop.permute.xlu0 %1020 }
 0xf6a   :  { %v5944_v13 = vadd.f32 %v1021_v12, %v1013_v11 }
 0xf6c   :  { %5316 = vtanh.f32 %v5944_v13 }
 0xf79   :  { %v5317_v14 = vpop.eup %5316 }
 0xf7a   :  { %1026 = vrot.lane.b32.xlu0 %v5317_v14, %s5598_s22 }
 0xfcb   :  { %v1140_v15 = vpop.permute.xlu1 %1139 }
 0xfcc   :  { %v1142_v16 = vmul.f32 %v5309_v59, %v1140_v15 }
 0xfce   :  { %1144 = vrot.lane.b32.xlu1 %v1142_v16, %s5599_s23  ;;  %v1262_v17 = vpack.c.bf16 %v1142_v16, %v1142_v16 }
 0xfd2   :  { %1264 = vrot.lane.b32.xlu1 %v1262_v17, %s5599_s23 }
 0xfec   :  { %v1027_v18 = vpop.permute.xlu0 %1026 }
 0xfed   :  { %v5950_v19 = vmul.f32 %v5313_v3, %v1027_v18 }
 0xfef   :  { %1148 = vrot.lane.b32.xlu0 %v5950_v19, %s5598_s22 }
0x1040   :  { %v1145_v21 = vpop.permute.xlu1 %1144 }
0x1041   :  { %1147 = vst.msk [vmem:[#allocation3] sm:$0x3] %vm161_vm1, %v1145_v21 }
0x1044   :  { %v1265_v25 = vpop.permute.xlu1 %1264 }
0x1045   :  { %4913 = vmatmul.mubr.msk.bf16.vlgmr.msra.gmra.mxu1 %vm88_vm3, %v1265_v25 }
0x1046   :  { %4917 = vmatpush3.bf16.msra.mxu1 %v5701_v20  ;;  %4924 = vmatprep.mubr.msk.bf16.mxu1 %vm5596_vm0, %v5595_v1 }
0x1047   :  { %4918 = vmatprep.subr.bf16.mxu1 %v5595_v1 }
0x104a   :  { %4919 = vmatpush3.bf16.msra.mxu1 %v5709_v22 }
0x104b   :  { %4920 = vmatprep.subr.bf16.mxu1 %v5595_v1 }
0x104e   :  { %4921 = vmatpush3.bf16.msra.mxu1 %v5716_v23 }
0x104f   :  { %4922 = vmatprep.subr.bf16.mxu1 %v5595_v1 }
0x1052   :  { %4923 = vmatpush3.bf16.msra.mxu1 %v5723_v24 }
0x1053   :  { %4948 = vmatprep.subr.bf16.mxu1 %v5595_v1 }
0x1061   :  { %v1149_v26 = vpop.permute.xlu0 %1148 }
0x1062   :  { %1151 = vst.msk [vmem:[#allocation3] sm:$0x3] %vm163_vm2, %v1149_v26 }
0x1069   :  { %v1152_v27 = vld [vmem:[#allocation3] sm:$0x3] }
0x106a   :  { %v1153_v28 = vpack.c.bf16 %v1152_v27, %v1152_v27 }
0x106c   :  { %4905 = vmatmul.mubr.msk.bf16.vlgmr.msra.gmra.mxu0 %vm197_vm4, %v1153_v28 }
0x106d   :  { %4929 = vmatpush3.bf16.msra.mxu0 %v5667_v0  ;;  %4932 = vmatprep.mubr.msk.bf16.mxu0 %vm5596_vm0, %v5595_v1 }
0x106e   :  { %4930 = vmatprep.subr.bf16.mxu0 %v5595_v1 }
0x1071   :  { %4931 = vmatpush3.bf16.msra.mxu0 %v5675_v2 }
0x1072   :  { %4936 = vmatprep.subr.bf16.mxu0 %v5595_v1 }
0x1105   :  { %v1303_v30 = vpop.f32.mrf.mxu1 }
0x1106   :  { %v1309_v31 = vadd.f32 %v4551_v29, %v1303_v30 }
0x1107   :  { %v4914_v32 = vpop.f32.mrf.mxu1 }
0x1108   :  { %5318 = vtanh.f32 %v1309_v31  ;;  %v4553_v42 = vmul.f32 -1.442695, %v1309_v31 }
0x1109   :  { %v1306_v34 = vpop.f32.mrf.mxu1 }
0x110b   :  { %v4915_v35 = vpop.f32.mrf.mxu1 }
0x1115   :  { %v5319_v0 = vpop.eup %5318 }
0x1116   :  { %1319 = vrot.lane.b32.xlu0 %v5319_v0, %s5598_s22 }
0x112c   :  { %v1191_v36 = vpop.f32.mrf.mxu0 }
0x112d   :  { %v1192_v37 = vadd.f32 %v5756_v38, %v1191_v36 }
0x112e   :  { %v4906_v39 = vpop.f32.mrf.mxu0 }
0x112f   :  { %5320 = vtanh.f32 %v1192_v37  ;;  %v4550_v49 = vmul.f32 -1.442695, %v1192_v37 }
0x1130   :  { %v1194_v2 = vpop.f32.mrf.mxu0  ;;  %5322 = vpow2.f32 %v4553_v42 }
0x1132   :  { %v4907_v40 = vpop.f32.mrf.mxu0 }
0x113c   :  { %v5321_v41 = vpop.eup %5320 }
0x113d   :  { %1206 = vrot.lane.b32.xlu1 %v5321_v41, %s5598_s22  ;;  %v5323_v43 = vpop.eup %5322 }
0x113e   :  { %v1313_v44 = vadd.f32 1.0, %v5323_v43 }
0x1140   :  { %5324 = vrcp.f32 %v1313_v44 }
0x1141   :  { %5326 = vpow2.f32 %v4550_v49  ;;  %v6042_v49 = vld [vmem:[%s7170_s6] sm:$0xff]  }
0x114d   :  { %v5325_v46 = vpop.eup %5324 }
0x114e   :  { %v5327_v50 = vpop.eup %5326  ;;  %v1317_v55 = vmul.f32 %v5325_v46, %v5939_v8 }
0x114f   :  { %v1200_v51 = vadd.f32 1.0, %v5327_v50 }
0x1151   :  { %5328 = vrcp.f32 %v1200_v51 }
0x115e   :  { %v5329_v52 = vpop.eup %5328 }
0x115f   :  { %v1204_v60 = vmul.f32 %v5329_v52, %v5944_v13 }
0x1188   :  { %v1320_v47 = vpop.permute.xlu0 %1319 }
0x1189   :  { %v1322_v48 = vmul.f32 %v5325_v46, %v1320_v47  ;;  %v6034_v47 = vld [vmem:[%s7170_s6 + $0x8] sm:$0xff]  }
0x118b   :  { %1324 = vrot.lane.b32.xlu0 %v1322_v48, %s5599_s23 }
0x11af   :  { %v1207_v53 = vpop.permute.xlu1 %1206 }
0x11b0   :  { %v1209_v54 = vmul.f32 %v5329_v52, %v1207_v53 }
0x11b2   :  { %1211 = vrot.lane.b32.xlu1 %v1209_v54, %s5599_s23 }
0x11fd   :  { %v1325_v56 = vpop.permute.xlu0 %1324 }
0x11fe   :  { %v5983_v58 = vadd.f32 %v1325_v56, %v1317_v55 }
0x1200   :  { %5330 = vtanh.f32 %v5983_v58 }
0x120d   :  { %v5331_v59 = vpop.eup %5330 }
0x120e   :  { %1330 = vrot.lane.b32.xlu0 %v5331_v59, %s5598_s22 }
0x1224   :  { %v1212_v61 = vpop.permute.xlu1 %1211 }
0x1225   :  { %v5988_v62 = vadd.f32 %v1212_v61, %v1204_v60  ;;  %v1651_v61 = vld [vmem:[%s7165_s1] sm:$0x3] }
0x1227   :  { %5332 = vtanh.f32 %v5988_v62 }
0x1234   :  { %v5333_v63 = vpop.eup %5332 }
0x1235   :  { %1217 = vrot.lane.b32.xlu1 %v5333_v63, %s5598_s22 }
0x1280   :  { %v1331_v3 = vpop.permute.xlu0 %1330 }
0x1281   :  { %v1333_v4 = vmul.f32 %v5325_v46, %v1331_v3 }
0x1283   :  { %1335 = vrot.lane.b32.xlu0 %v1333_v4, %s5599_s23  ;;  %v1453_v5 = vpack.c.bf16 %v1333_v4, %v1333_v4 }
0x1287   :  { %1455 = vrot.lane.b32.xlu0 %v1453_v5, %s5599_s23 }
0x12a7   :  { %v1218_v6 = vpop.permute.xlu1 %1217 }
0x12a8   :  { %v5994_v7 = vmul.f32 %v5329_v52, %v1218_v6 }
0x12aa   :  { %1339 = vrot.lane.b32.xlu1 %v5994_v7, %s5598_s22 }
0x12f5   :  { %v1336_v8 = vpop.permute.xlu0 %1335 }
0x12f6   :  { %1338 = vst.msk [vmem:[#allocation3] sm:$0x3] %vm161_vm1, %v1336_v8 }
0x12f9   :  { %v1456_v10 = vpop.permute.xlu0 %1455 }
0x12fa   :  { %4933 = vmatmul.mubr.msk.bf16.vlgmr.msra.gmra.mxu0 %vm88_vm3, %v1456_v10  ;;  %v5550_v10 = vld [vmem:[%s7169_s5] ss:$0 sm:$0xff] }
0x12fb   :  { %4937 = vmatpush3.bf16.msra.mxu0 %v5701_v20  ;;  %4944 = vmatprep.mubr.msk.bf16.mxu0 %vm5596_vm0, %v5595_v1 }
0x12fc   :  { %4938 = vmatprep.subr.bf16.mxu0 %v5595_v1 }
0x12ff   :  { %4939 = vmatpush3.bf16.msra.mxu0 %v5709_v22  ;;  %v4556_v22 = vld [vmem:[%s7164_s0 + $0xe] sm:$0x3] }
0x1300   :  { %4940 = vmatprep.subr.bf16.mxu0 %v5595_v1 }
0x1303   :  { %4941 = vmatpush3.bf16.msra.mxu0 %v5716_v23 }
0x1304   :  { %4942 = vmatprep.subr.bf16.mxu0 %v5595_v1 }
0x1307   :  { %4943 = vmatpush3.bf16.msra.mxu0 %v5723_v24 }
0x1308   :  { %4968 = vmatprep.subr.bf16.mxu0 %v5595_v1 }
0x131c   :  { %v1340_v11 = vpop.permute.xlu1 %1339 }
0x131d   :  { %1342 = vst.msk [vmem:[#allocation3] sm:$0x3] %vm163_vm2, %v1340_v11 }
0x1324   :  { %v1343_v20 = vld [vmem:[#allocation3] sm:$0x3] }
0x1325   :  { %v1344_v12 = vpack.c.bf16 %v1343_v20, %v1343_v20 }
0x1327   :  { %4925 = vmatmul.mubr.msk.bf16.vlgmr.msra.gmra.mxu1 %vm197_vm4, %v1344_v12 }
0x1328   :  { %4952 = vmatprep.mubr.msk.bf16.mxu1 %vm5596_vm0, %v5595_v1  ;;  %4949 = vmatpush3.bf16.msra.mxu1 %v6034_v47 }
0x1329   :  { %4950 = vmatprep.subr.bf16.mxu1 %v5595_v1 }
0x132c   :  { %4951 = vmatpush3.bf16.msra.mxu1 %v6042_v49 }
0x132d   :  { %4956 = vmatprep.subr.bf16.mxu1 %v5595_v1 }
0x13ba   :  { %v1494_v23 = vpop.f32.mrf.mxu0 }
0x13bb   :  { %v1500_v13 = vadd.f32 %v4556_v22, %v1494_v23 }
0x13bc   :  { %v4934_v14 = vpop.f32.mrf.mxu0 }
0x13bd   :  { %5334 = vtanh.f32 %v1500_v13  ;;  %v4558_v28 = vmul.f32 -1.442695, %v1500_v13 }
0x13be   :  { %v1497_v24 = vpop.f32.mrf.mxu0 }
0x13c0   :  { %v4935_v15 = vpop.f32.mrf.mxu0 }
0x13ca   :  { %v5335_v16 = vpop.eup %5334 }
0x13cb   :  { %1510 = vrot.lane.b32.xlu1 %v5335_v16, %s5598_s22 }
0x13e7   :  { %v1382_v17 = vpop.f32.mrf.mxu1 }
0x13e8   :  { %v1383_v18 = vadd.f32 %v5756_v38, %v1382_v17 }
0x13e9   :  { %v4926_v21 = vpop.f32.mrf.mxu1 }
0x13ea   :  { %5336 = vtanh.f32 %v1383_v18  ;;  %v4555_v35 = vmul.f32 -1.442695, %v1383_v18 }
0x13eb   :  { %v1385_v25 = vpop.f32.mrf.mxu1  ;;  %5338 = vpow2.f32 %v4558_v28 }
0x13ed   :  { %v4927_v26 = vpop.f32.mrf.mxu1 }
0x13f7   :  { %v5337_v27 = vpop.eup %5336 }
0x13f8   :  { %1397 = vrot.lane.b32.xlu0 %v5337_v27, %s5598_s22  ;;  %v5339_v29 = vpop.eup %5338 }
0x13f9   :  { %v1504_v30 = vadd.f32 1.0, %v5339_v29 }
0x13fb   :  { %5340 = vrcp.f32 %v1504_v30 }
0x13fc   :  { %5342 = vpow2.f32 %v4555_v35 }
0x1408   :  { %v5341_v31 = vpop.eup %5340 }
0x1409   :  { %v5343_v38 = vpop.eup %5342  ;;  %v1508_v2 = vmul.f32 %v5341_v31, %v5983_v58 }
0x140a   :  { %v1391_v0 = vadd.f32 1.0, %v5343_v38 }
0x140c   :  { %5344 = vrcp.f32 %v1391_v0 }
0x1419   :  { %v5345_v36 = vpop.eup %5344 }
0x141a   :  { %v1395_v43 = vmul.f32 %v5345_v36, %v5988_v62 }
0x143d   :  { %v1511_v32 = vpop.permute.xlu1 %1510 }
0x143e   :  { %v1513_v34 = vmul.f32 %v5341_v31, %v1511_v32 }
0x1440   :  { %1515 = vrot.lane.b32.xlu1 %v1513_v34, %s5599_s23 }
0x146a   :  { %v1398_v37 = vpop.permute.xlu0 %1397 }
0x146b   :  { %v1400_v39 = vmul.f32 %v5345_v36, %v1398_v37  ;;  %v6089_v37 = vld [vmem:[%s7171_s7 + $0x10] sm:$0xff]  }
0x146d   :  { %1402 = vrot.lane.b32.xlu0 %v1400_v39, %s5599_s23 }
0x14b2   :  { %v1516_v40 = vpop.permute.xlu1 %1515 }
0x14b3   :  { %v6023_v41 = vadd.f32 %v1516_v40, %v1508_v2  ;;  %v6098_v40 = vld [vmem:[%s7171_s7 + $0x8] sm:$0xff]  }
0x14b5   :  { %5346 = vtanh.f32 %v6023_v41 }
0x14c2   :  { %v5347_v42 = vpop.eup %5346 }
0x14c3   :  { %1521 = vrot.lane.b32.xlu1 %v5347_v42, %s5598_s22 }
0x14df   :  { %v1403_v44 = vpop.permute.xlu0 %1402 }
0x14e0   :  { %v6028_v46 = vadd.f32 %v1403_v44, %v1395_v43 }
0x14e2   :  { %5348 = vtanh.f32 %v6028_v46 }
0x14ef   :  { %v5349_v48 = vpop.eup %5348 }
0x14f0   :  { %1408 = vrot.lane.b32.xlu0 %v5349_v48, %s5598_s22 }
0x1535   :  { %v1522_v50 = vpop.permute.xlu1 %1521 }
0x1536   :  { %v1524_v51 = vmul.f32 %v5341_v31, %v1522_v50 }
0x1538   :  { %1526 = vrot.lane.b32.xlu1 %v1524_v51, %s5599_s23  ;;  %v1652_v52 = vpack.c.bf16 %v1524_v51, %v1524_v51  ;;  %v6125_v51 = vld [vmem:[%s7172_s8] ss:$0 sm:$0xff] }
0x153c   :  { %1654 = vrot.lane.b32.xlu1 %v1652_v52, %s5599_s23 }
0x1562   :  { %v1409_v53 = vpop.permute.xlu0 %1408 }
0x1563   :  { %v6048_v54 = vmul.f32 %v5345_v36, %v1409_v53  ;;  %v6083_v36 = vld [vmem:[%s7171_s7 + $0x18] sm:$0xff]  }
0x1565   :  { %1530 = vrot.lane.b32.xlu0 %v6048_v54, %s5598_s22 }
0x15aa   :  { %v1527_v55 = vpop.permute.xlu1 %1526 }
0x15ab   :  { %1529 = vst.msk [vmem:[#allocation3] sm:$0x3] %vm161_vm1, %v1527_v55 }
0x15ae   :  { %v1655_v56 = vpop.permute.xlu1 %1654 }
0x15af   :  { %4953 = vmatmul.mubr.msk.bf16.vlgmr.msra.gmra.mxu1 %vm88_vm3, %v1655_v56 }
0x15b0   :  { %4964 = vmatprep.mubr.msk.bf16.mxu1 %vm5596_vm0, %v5595_v1  ;;  %4957 = vmatpush3.bf16.msra.mxu1 %v6083_v36 }
0x15b1   :  { %4958 = vmatprep.subr.bf16.mxu1 %v5595_v1 }
0x15b4   :  { %4959 = vmatpush3.bf16.msra.mxu1 %v6089_v37 }
0x15b5   :  { %4960 = vmatprep.subr.bf16.mxu1 %v5595_v1 }
0x15b8   :  { %4961 = vmatpush3.bf16.msra.mxu1 %v6098_v40 }
0x15b9   :  { %4962 = vmatprep.subr.bf16.mxu1 %v5595_v1 }
0x15d7   :  { %v1531_v58 = vpop.permute.xlu0 %1530 }
0x15d8   :  { %1533 = vst.msk [vmem:[#allocation3] sm:$0x3] %vm163_vm2, %v1531_v58 }
0x15df   :  { %v1534_v59 = vld [vmem:[#allocation3] sm:$0x3] }
0x15e0   :  { %v1535_v60 = vpack.c.bf16 %v1534_v59, %v1534_v59 }
0x15e2   :  { %4945 = vmatmul.mubr.msk.bf16.vlgmr.msra.gmra.mxu0 %vm197_vm4, %v1535_v60 }
0x15e3   :  { %4976 = vmatprep.mubr.msk.bf16.mxu0 %vm5596_vm0, %v5595_v1 }
0x166f   :  { %v1705_v62 = vpop.f32.mrf.mxu1 }
0x1670   :  { %v1711_v63 = vadd.f32 %v1705_v62, %v1651_v61 }
0x1671   :  { %v4954_v3 = vpop.f32.mrf.mxu1 }
0x1672   :  { %5350 = vtanh.f32 %v1711_v63  ;;  %v4564_v13 = vmul.f32 -1.442695, %v1711_v63  ;;  %v5600_v63 = vmov 1966171168  }
0x1673   :  { %v1708_v4 = vpop.f32.mrf.mxu1  ;;  %v267_v3 = vunpack.c.l.s4 %v5600_v63 }
0x1674   :  { %v269_v4 = vlaneseq }
0x1675   :  { %v4955_v5 = vpop.f32.mrf.mxu1 }
0x1676   :  { %v268_v5 = vunpack.c.0.s8 %v267_v3 }
0x167f   :  { %v5351_v6 = vpop.eup %5350 }
0x1680   :  { %1721 = vrot.lane.b32.xlu0 %v5351_v6, %s5598_s22  ;;  %v6130_v6 = vshrl.u32 %v269_v4, 7 }
0x16a2   :  { %v1573_v8 = vpop.f32.mrf.mxu0 }
0x16a3   :  { %v1574_v11 = vadd.f32 %v5550_v10, %v1573_v8  ;;  %v6133_v8 = vsub.s32 %v268_v5, %v6130_v6 }
0x16a4   :  { %v4946_v20 = vpop.f32.mrf.mxu0 }
0x16a5   :  { %5352 = vtanh.f32 %v1574_v11  ;;  %v4560_v18 = vmul.f32 -1.442695, %v1574_v11  ;;  %v6137_v10 = vrot.slane %v5774_v9, %v6133_v8  ;;  %v6153_v9 = vrot.slane %v5862_v45, %v6133_v8 }
0x16a6   :  { %v1576_v12 = vpop.f32.mrf.mxu0  ;;  %5354 = vpow2.f32 %v4564_v13 }
0x16a7   :  { %v273_v12 = vcombine.high %v6137_v10, %v6137_v10  ;;  %v663_v63 = vrot.slane %v6153_v9, %v6133_v8 }
0x16a8   :  { %v4947_v22 = vpop.f32.mrf.mxu0 }
0x16a9   :  { %v6145_v22 = vrot.slane %v5818_v57, %v6133_v8  ;;  %v656_v57 = vcombine.high %v6153_v9, %v6153_v9 }
0x16ab   :  { %v465_v13 = vcombine.high %v6145_v22, %v6145_v22 }
0x16ad   :  { %v479_v45 = vrot.slane %v465_v13, %v6133_v8 }
0x16b2   :  { %v5353_v23 = vpop.eup %5352 }
0x16b3   :  { %1588 = vrot.lane.b32.xlu1 %v5353_v23, %s5598_s22  ;;  %v5355_v14 = vpop.eup %5354 }
0x16b4   :  { %v1715_v24 = vadd.f32 1.0, %v5355_v14 }
0x16b6   :  { %5356 = vrcp.f32 %v1715_v24  ;;  %v287_v24 = vrot.slane %v273_v12, %v6133_v8 }
0x16b7   :  { %5358 = vpow2.f32 %v4560_v18 }
0x16c3   :  { %v5357_v15 = vpop.eup %5356 }
0x16c4   :  { %v5359_v21 = vpop.eup %5358  ;;  %v1719_v29 = vmul.f32 %v5357_v15, %v6023_v41  ;;  %v6105_v41 = vld [vmem:[%s7171_s7] sm:$0xff]  }
0x16c5   :  { %v1582_v25 = vadd.f32 1.0, %v5359_v21  ;;  %4963 = vmatpush3.bf16.msra.mxu1 %v6105_v41  ;;  %v6173_v21 = vrot.slane %v5950_v19, %v6133_v8 }
0x16c6   :  { %4980 = vmatprep.subr.bf16.mxu1 %v5595_v1 }
0x16c7   :  { %5360 = vrcp.f32 %v1582_v25 }
0x16d4   :  { %v5361_v26 = vpop.eup %5360 }
0x16d5   :  { %v1586_v34 = vmul.f32 %v5361_v26, %v6028_v46 }
0x16f2   :  { %v1722_v16 = vpop.permute.xlu0 %1721 }
0x16f3   :  { %v1724_v17 = vmul.f32 %v5357_v15, %v1722_v16  ;;  %v6164_v16 = vrot.slane %v5906_v33, %v6133_v8  ;;  %v1038_v33 = vcombine.high %v6173_v21, %v6173_v21 }
0x16f5   :  { %1726 = vrot.lane.b32.xlu0 %v1724_v17, %s5599_s23  ;;  %v847_v18 = vcombine.high %v6164_v16, %v6164_v16 }
0x1725   :  { %v1589_v27 = vpop.permute.xlu1 %1588 }
0x1726   :  { %v1591_v28 = vmul.f32 %v5361_v26, %v1589_v27  ;;  %v6182_v27 = vrot.slane %v5994_v7, %v6133_v8 }
0x1728   :  { %1593 = vrot.lane.b32.xlu1 %v1591_v28, %s5599_s23  ;;  %v1229_v19 = vcombine.high %v6182_v27, %v6182_v27  ;;  %v1236_v9 = vrot.slane %v6182_v27, %v6133_v8 }
0x1767   :  { %v1727_v30 = vpop.permute.xlu0 %1726 }
0x1768   :  { %v6071_v31 = vadd.f32 %v1727_v30, %v1719_v29  ;;  %v861_v29 = vrot.slane %v847_v18, %v6133_v8  ;;  %v6191_v30 = vrot.slane %v6048_v54, %v6133_v8 }
0x176a   :  { %5362 = vtanh.f32 %v6071_v31  ;;  %v1420_v7 = vcombine.high %v6191_v30, %v6191_v30 }
0x1777   :  { %v5363_v32 = vpop.eup %5362 }
0x1778   :  { %1732 = vrot.lane.b32.xlu0 %v5363_v32, %s5598_s22 }
0x179a   :  { %v1594_v35 = vpop.permute.xlu1 %1593 }
0x179b   :  { %v6076_v38 = vadd.f32 %v1594_v35, %v1586_v34  ;;  %v1052_v34 = vrot.slane %v1038_v33, %v6133_v8 }
0x179d   :  { %5364 = vtanh.f32 %v6076_v38 }
0x17aa   :  { %v5365_v0 = vpop.eup %5364 }
0x17ab   :  { %1599 = vrot.lane.b32.xlu1 %v5365_v0, %s5598_s22 }
0x17ea   :  { %v1733_v39 = vpop.permute.xlu0 %1732 }
0x17eb   :  { %v1735_v2 = vmul.f32 %v5357_v15, %v1733_v39  ;;  %v6158_v15 = vsub.s32 0, %v6130_v6  ;;  %v1243_v39 = vrot.slane %v1229_v19, %v6133_v8 }
0x17ed   :  { %1737 = vrot.lane.b32.xlu0 %v1735_v2, %s5599_s23  ;;  %v2073_v14 = vpack.c.bf16 %v1735_v2, %v1735_v2  ;;  %v295_v17 = vrot.slane %v287_v24, %v6158_v15  ;;  %v487_v25 = vrot.slane %v479_v45, %v6158_v15  ;;  %v869_v32 = vrot.slane %v861_v29, %v6158_v15 }
0x17ee   :  { %v1060_v0 = vrot.slane %v1052_v34, %v6158_v15  ;;  %v1251_v2 = vrot.slane %v1243_v39, %v6158_v15 }
0x181d   :  { %v1600_v42 = vpop.permute.xlu1 %1599 }
0x181e   :  { %v6109_v43 = vmul.f32 %v5361_v26, %v1600_v42  ;;  %v670_v26 = vrot.slane %v656_v57, %v6133_v8  ;;  %v1434_v42 = vrot.slane %v1420_v7, %v6133_v8  ;;  %v1427_v57 = vrot.slane %v6191_v30, %v6133_v8 }
0x1820   :  { %1741 = vrot.lane.b32.xlu1 %v6109_v43, %s5598_s22  ;;  %v678_v28 = vrot.slane %v670_v26, %v6158_v15  ;;  %v1610_v35 = vrot.slane %v6109_v43, %v6133_v8  ;;  %v1438_v45 = vrot.slane %v1427_v57, %v6158_v15 }
0x1822   :  { %v1611_v54 = vcombine.high %v1610_v35, %v1610_v35 }
0x185f   :  { %v1738_v44 = vpop.permute.xlu0 %1737 }
0x1860   :  { %1740 = vst.msk [vmem:[#allocation3] sm:$0x3] %vm161_vm1, %v1738_v44  ;;  %v1442_v44 = vrot.slane %v1434_v42, %v6158_v15 }
0x1892   :  { %v1742_v46 = vpop.permute.xlu1 %1741 }
0x1893   :  { %1744 = vst.msk [vmem:[#allocation3] sm:$0x3] %vm163_vm2, %v1742_v46  ;;  %v1625_v46 = vrot.slane %v1611_v54, %v6133_v8 }
0x1895   :  { %v1633_v43 = vrot.slane %v1625_v46, %v6158_v15 }
0x189a   :  { %v1745_v48 = vld [vmem:[#allocation3] sm:$0x3] }
0x189b   :  { %v1746_v50 = vpack.c.bf16 %v1745_v48, %v1745_v48 }
0x189d   :  { %4965 = vmatmul.mubr.msk.bf16.vlgmr.msra.gmra.mxu1 %vm197_vm4, %v1746_v50 }
0x189e   :  { %4981 = vmatpush3.bf16.msra.mxu1 %v6034_v47  ;;  %4984 = vmatprep.mubr.msk.bf16.mxu1 %vm5596_vm0, %v5595_v1 }
0x189f   :  { %4982 = vmatprep.subr.bf16.mxu1 %v5595_v1 }
0x18a2   :  { %4983 = vmatpush3.bf16.msra.mxu1 %v6042_v49 }
0x18a3   :  { %5000 = vmatprep.subr.bf16.mxu1 %v5595_v1 }
0x195d   :  { %v1814_v52 = vpop.f32.mrf.mxu1 }
0x195e   :  { %v1815_v53 = vadd.f32 %v6125_v51, %v1814_v52 }
0x195f   :  { %v4966_v55 = vpop.f32.mrf.mxu1 }
0x1960   :  { %5366 = vtanh.f32 %v1815_v53  ;;  %v4571_v60 = vmul.f32 -1.442695, %v1815_v53 }
0x1961   :  { %v1817_v56 = vpop.f32.mrf.mxu1 }
0x1962   :  { %5368 = vpow2.f32 %v4571_v60  ;;  %v472_v60 = vrot.slane %v6145_v22, %v6133_v8  ;;  %v1045_v22 = vrot.slane %v6173_v21, %v6133_v8 }
0x1963   :  { %v4967_v58 = vpop.f32.mrf.mxu1 }
0x1964   :  { %v483_v3 = vrot.slane %v472_v60, %v6158_v15 }
0x196d   :  { %v5367_v59 = vpop.eup %5366 }
0x196e   :  { %1829 = vrot.lane.b32.xlu0 %v5367_v59, %s5598_s22 }
0x196f   :  { %v5369_v61 = vpop.eup %5368 }
0x1970   :  { %v1823_v62 = vadd.f32 1.0, %v5369_v61 }
0x1972   :  { %5370 = vrcp.f32 %v1823_v62 }
0x197f   :  { %v6139_v11 = vpop.eup %5370 }
0x1980   :  { %v1827_v48 = vmul.f32 %v6139_v11, %v6076_v38  ;;  %v280_v38 = vrot.slane %v6137_v10, %v6133_v8  ;;  %v854_v10 = vrot.slane %v6164_v16, %v6133_v8  ;;  %v1247_v16 = vrot.slane %v1236_v9, %v6158_v15 }
0x1982   :  { %v291_v61 = vrot.slane %v280_v38, %v6158_v15 }
0x19e0   :  { %v1830_v20 = vpop.permute.xlu0 %1829 }
0x19e1   :  { %v1832_v23 = vmul.f32 %v6139_v11, %v1830_v20  ;;  %v674_v20 = vrot.slane %v663_v63, %v6158_v15 }
0x19e3   :  { %1834 = vrot.lane.b32.xlu1 %v1832_v23, %s5599_s23  ;;  %v865_v23 = vrot.slane %v854_v10, %v6158_v15 }
0x19e7   :  { %2075 = vrot.lane.b32.xlu1 %v2073_v14, %s5599_s23  ;;  %v1056_v14 = vrot.slane %v1045_v22, %v6158_v15 }
0x19eb   :  { %298 = vrot.lane.b32.xlu1 %v295_v17, %s5599_s23  ;;  %v1618_v17 = vrot.slane %v1610_v35, %v6133_v8 }
0x19ed   :  { %v1629_v18 = vrot.slane %v1618_v17, %v6158_v15 }
0x19ef   :  { %490 = vrot.lane.b32.xlu1 %v487_v25, %s5599_s23 }
0x19f3   :  { %681 = vrot.lane.b32.xlu1 %v678_v28, %s5599_s23 }
0x19f7   :  { %872 = vrot.lane.b32.xlu1 %v869_v32, %s5599_s23 }
0x19fb   :  { %1063 = vrot.lane.b32.xlu1 %v1060_v0, %s5599_s23 }
0x19ff   :  { %1254 = vrot.lane.b32.xlu1 %v1251_v2, %s5599_s23 }
0x1a03   :  { %1445 = vrot.lane.b32.xlu1 %v1442_v44, %s5599_s23 }
0x1a07   :  { %1636 = vrot.lane.b32.xlu1 %v1633_v43, %s5599_s23 }
0x1a55   :  { %v1835_v50 = vpop.permute.xlu1 %1834 }
0x1a56   :  { %v6213_v52 = vadd.f32 %v1835_v50, %v1827_v48 }
0x1a58   :  { %5372 = vtanh.f32 %v6213_v52 }
0x1a59   :  { %v2076_v53 = vpop.permute.xlu1 %2075 }
0x1a5a   :  { %4985 = vmatmul.mubr.msk.bf16.vlgmr.msra.gmra.mxu1 %vm88_vm3, %v2076_v53 }
0x1a5b   :  { %5008 = vmatprep.mubr.msk.bf16.mxu1 %vm5596_vm0, %v5595_v1 }
0x1a5d   :  { %v299_v55 = vpop.permute.xlu1 %298 }
0x1a5e   :  { %304 = vst.msk [vmem:[#allocation2 + $0x8] sm:$0x1] %vm302_vm5, %v299_v55 }
0x1a61   :  { %v491_v56 = vpop.permute.xlu1 %490 }
0x1a62   :  { %495 = vst.msk [vmem:[#allocation2 + $0x9] sm:$0x1] %vm302_vm5, %v491_v56 }
0x1a65   :  { %v5373_v58 = vpop.eup %5372  ;;  %v682_v59 = vpop.permute.xlu1 %681 }
0x1a66   :  { %686 = vst.msk [vmem:[#allocation2 + $0xa] sm:$0x1] %vm302_vm5, %v682_v59  ;;  %1840 = vrot.lane.b32.xlu0 %v5373_v58, %s5598_s22  ;;  %v1646_v58 = vld [vmem:[%s7166_s2] sm:$0x3]  ;;  %v1645_v59 = vand.u32 127, %v269_v4 }
0x1a69   :  { %v873_v62 = vpop.permute.xlu1 %872 }
0x1a6a   :  { %877 = vst.msk [vmem:[#allocation2 + $0xb] sm:$0x1] %vm302_vm5, %v873_v62  ;;  %296 = vrot.lane.b32.xlu0 %v291_v61, %s5599_s23  ;;  %v6291_v61 = vsub.s32 %v1645_v59, %v6130_v6 }
0x1a6d   :  { %v1064_v5 = vpop.permute.xlu1 %1063 }
0x1a6e   :  { %1068 = vst.msk [vmem:[#allocation2 + $0xc] sm:$0x1] %vm302_vm5, %v1064_v5  ;;  %488 = vrot.lane.b32.xlu0 %v483_v3, %s5599_s23  ;;  %v4578_v5 = vld [vmem:[%s7165_s1 + $0x2] sm:$0x3] }
0x1a71   :  { %v1255_v12 = vpop.permute.xlu1 %1254 }
0x1a72   :  { %1259 = vst.msk [vmem:[#allocation2 + $0xd] sm:$0x1] %vm302_vm5, %v1255_v12  ;;  %679 = vrot.lane.b32.xlu0 %v674_v20, %s5599_s23 }
0x1a75   :  { %v1446_v13 = vpop.permute.xlu1 %1445 }
0x1a76   :  { %1450 = vst.msk [vmem:[#allocation2 + $0xe] sm:$0x1] %vm302_vm5, %v1446_v13  ;;  %870 = vrot.lane.b32.xlu0 %v865_v23, %s5599_s23 }
0x1a79   :  { %v1637_v24 = vpop.permute.xlu1 %1636 }
0x1a7a   :  { %1641 = vst.msk [vmem:[#allocation2 + $0xf] sm:$0x1] %vm302_vm5, %v1637_v24  ;;  %1061 = vrot.lane.b32.xlu0 %v1056_v14, %s5599_s23 }
0x1a7e   :  { %1252 = vrot.lane.b32.xlu0 %v1247_v16, %s5599_s23 }
0x1a81   :  { %v6281_v50 = vld [vmem:[#allocation2 + $0x8] sm:$0xff] }
0x1a82   :  { %1443 = vrot.lane.b32.xlu0 %v1438_v45, %s5599_s23 }
0x1a86   :  { %1634 = vrot.lane.b32.xlu0 %v1629_v18, %s5599_s23 }
0x1ad8   :  { %v1841_v21 = vpop.permute.xlu0 %1840 }
0x1ad9   :  { %v6260_v25 = vmul.f32 %v6139_v11, %v1841_v21 }
0x1adb   :  { %v1851_v26 = vrot.slane %v6260_v25, %v6133_v8 }
0x1adc   :  { %v297_v33 = vpop.permute.xlu0 %296 }
0x1add   :  { %303 = vst.msk [vmem:[#allocation2] sm:$0x1] %vm302_vm5, %v297_v33  ;;  %v1859_v27 = vrot.slane %v1851_v26, %v6133_v8  ;;  %v1852_v28 = vcombine.high %v1851_v26, %v1851_v26 }
0x1adf   :  { %v1870_v29 = vrot.slane %v1859_v27, %v6158_v15  ;;  %v1866_v19 = vrot.slane %v1852_v28, %v6133_v8 }
0x1ae0   :  { %v489_v30 = vpop.permute.xlu0 %488 }
0x1ae1   :  { %494 = vst.msk [vmem:[#allocation2 + $0x1] sm:$0x1] %vm302_vm5, %v489_v30  ;;  %1875 = vrot.lane.b32.xlu0 %v1870_v29, %s5599_s23  ;;  %v1874_v11 = vrot.slane %v1866_v19, %v6158_v15 }
0x1ae3   :  { %1877 = vrot.lane.b32.xlu1 %v1874_v11, %s5599_s23 }
0x1ae4   :  { %v680_v32 = vpop.permute.xlu0 %679 }
0x1ae5   :  { %685 = vst.msk [vmem:[#allocation2 + $0x2] sm:$0x1] %vm302_vm5, %v680_v32 }
0x1ae8   :  { %v871_v34 = vpop.permute.xlu0 %870 }
0x1ae9   :  { %876 = vst.msk [vmem:[#allocation2 + $0x3] sm:$0x1] %vm302_vm5, %v871_v34  ;;  %v6315_v34 = vsub.s32 1, %v6130_v6  ;;  %v6331_v6 = vld [vmem:[%s7173_s9 + $0x10] sm:$0xff]  }
0x1aec   :  { %v1062_v7 = vpop.permute.xlu0 %1061 }
0x1aed   :  { %1067 = vst.msk [vmem:[#allocation2 + $0x4] sm:$0x1] %vm302_vm5, %v1062_v7 }
0x1af0   :  { %v1253_v35 = vpop.permute.xlu0 %1252 }
0x1af1   :  { %1258 = vst.msk [vmem:[#allocation2 + $0x5] sm:$0x1] %vm302_vm5, %v1253_v35 }
0x1af4   :  { %v1444_v0 = vpop.permute.xlu0 %1443 }
0x1af5   :  { %1449 = vst.msk [vmem:[#allocation2 + $0x6] sm:$0x1] %vm302_vm5, %v1444_v0  ;;  %v6324_v0 = vld [vmem:[%s7173_s9 + $0x18] sm:$0xff]  }
0x1af6   :  { %4969 = vmatpush3.bf16.msra.mxu0 %v6324_v0  ;;  %5001 = vmatpush3.bf16.msra.mxu1 %v6324_v0 }
0x1af7   :  { %4970 = vmatprep.subr.bf16.mxu0 %v5595_v1  ;;  %5002 = vmatprep.subr.bf16.mxu1 %v5595_v1 }
0x1af8   :  { %v1635_v39 = vpop.permute.xlu0 %1634 }
0x1af9   :  { %1640 = vst.msk [vmem:[#allocation2 + $0x7] sm:$0x1] %vm302_vm5, %v1635_v39 }
0x1afa   :  { %4971 = vmatpush3.bf16.msra.mxu0 %v6331_v6  ;;  %5003 = vmatpush3.bf16.msra.mxu1 %v6331_v6 }
0x1afb   :  { %4972 = vmatprep.subr.bf16.mxu0 %v5595_v1  ;;  %5004 = vmatprep.subr.bf16.mxu1 %v5595_v1 }
0x1b00   :  { %v6278_v46 = vld [vmem:[#allocation2] sm:$0xff] }
0x1b1a   :  { %v2114_v54 = vpop.f32.mrf.mxu1 }
0x1b1b   :  { %v2120_v22 = vadd.f32 %v4578_v5, %v2114_v54 }
0x1b1c   :  { %v4986_v2 = vpop.f32.mrf.mxu1 }
0x1b1d   :  { %5374 = vtanh.f32 %v2120_v22  ;;  %v4580_v9 = vmul.f32 -1.442695, %v2120_v22 }
0x1b1e   :  { %v2117_v42 = vpop.f32.mrf.mxu1 }
0x1b1f   :  { %5376 = vpow2.f32 %v4580_v9 }
0x1b20   :  { %v4987_v44 = vpop.f32.mrf.mxu1 }
0x1b2a   :  { %v5375_v13 = vpop.eup %5374 }
0x1b2c   :  { %v5377_v14 = vpop.eup %5376 }
0x1b2d   :  { %v2124_v24 = vadd.f32 1.0, %v5377_v14 }
0x1b2f   :  { %5378 = vrcp.f32 %v2124_v24 }
0x1b3c   :  { %v5379_v45 = vpop.eup %5378 }
0x1b3d   :  { %v2128_v29 = vmul.f32 %v5379_v45, %v6071_v31 }
0x1b53   :  { %v1876_v43 = vpop.permute.xlu0 %1875 }
0x1b54   :  { %v1881_v48 = vmul.f32 %v1876_v43, %v6278_v46 }
0x1b55   :  { %v1878_v53 = vpop.permute.xlu1 %1877 }
0x1b56   :  { %v1882_v55 = vmul.f32 %v1878_v53, %v6281_v50  ;;  %v1883_v56 = vsel %vm88_vm3, %v1881_v48, 0.0 }
0x1b57   :  { %1884 = vadd.xlane.f32.xlu0 %v1883_v56 }
0x1b58   :  { %v1886_v38 = vsel %vm88_vm3, %v1882_v55, 0.0 }
0x1b59   :  { %1887 = vadd.xlane.f32.xlu1 %v1886_v38  ;;  %v6346_v38 = vld [vmem:[%s7173_s9 + $0x8] sm:$0xff]  }
0x1b5a   :  { %4973 = vmatpush3.bf16.msra.mxu0 %v6346_v38  ;;  %5005 = vmatpush3.bf16.msra.mxu1 %v6346_v38 }
0x1b5b   :  { %4974 = vmatprep.subr.bf16.mxu0 %v5595_v1  ;;  %5006 = vmatprep.subr.bf16.mxu1 %v5595_v1 }
0x1b6d   :  { %1648 = vperm.xlu0 %5213, %v1646_v58  }
0x1be0   :  { %v1885_v62 = vpop.xlane.xlu0 %1884 }
0x1be1   :  { %v1894_v3 = vrot.slane %v1885_v62, %v6291_v61 }
0x1be2   :  { %v1888_v60 = vpop.xlane.xlu1 %1887 }
0x1be3   :  { %v1898_v63 = vrot.slane %v1888_v60, %v6291_v61 }
0x1be5   :  { %v1900_v4 = vsel %vm1899_vm6, %v1898_v63, %v1894_v3  ;;  %v6358_v3 = vld [vmem:[%s7173_s9] sm:$0xff]  }
0x1be6   :  { %4975 = vmatpush3.bf16.msra.mxu0 %v6358_v3  ;;  %5007 = vmatpush3.bf16.msra.mxu1 %v6358_v3 }
0x1be7   :  { %4988 = vmatprep.subr.bf16.mxu0 %v5595_v1  ;;  %5020 = vmatprep.subr.bf16.mxu1 %v5595_v1 }
0x1be8   :  { %v1649_v10 = vpop.permute.xlu0 %1648 }
0x1be9   :  { %vm6298_vm8 = vcmp.lt.s32.totalorder %v1645_v59, %v1649_v10 }
0x1bea   :  { %v1902_v12 = vsel %vm6298_vm8, %v1900_v4, -1e+30 }
0x1beb   :  { %v1904_v23 = vsel %vm1903_vm7, %v1902_v12, -inf }
0x1bec   :  { %1905 = vmax.xlane.f32.xlu1 %v1904_v23 }
0x1bfd   :  { %2130 = vrot.lane.b32.xlu1 %v5375_v13, %s5598_s22 }
0x1c75   :  { %v1906_v57 = vpop.xlane.xlu1 %1905 }
0x1c76   :  { %v1907_v16 = vsub.f32 %v1902_v12, %v1906_v57 }
0x1c78   :  { %v1908_v17 = vmul.f32 1.442695, %v1907_v16 }
0x1c79   :  { %v2131_v18 = vpop.permute.xlu1 %2130 }
0x1c7a   :  { %5380 = vpow2.f32 %v1908_v17  ;;  %v2133_v21 = vmul.f32 %v5379_v45, %v2131_v18 }
0x1c7c   :  { %2135 = vrot.lane.b32.xlu0 %v2133_v21, %s5599_s23 }
0x1c87   :  { %v5381_v26 = vpop.eup %5380 }
0x1c88   :  { %v1910_v33 = vsel %vm1903_vm7, %v5381_v26, 0.0 }
0x1c89   :  { %1911 = vadd.xlane.f32.xlu1 %v1910_v33 }
0x1cee   :  { %v2136_v28 = vpop.permute.xlu0 %2135 }
0x1cef   :  { %v6310_v19 = vadd.f32 %v2136_v28, %v2128_v29 }
0x1d12   :  { %v1912_v27 = vpop.xlane.xlu1 %1911 }
0x1d13   :  { %5382 = vrcp.f32 %v1912_v27 }
0x1d14   :  { %5384 = vtanh.f32 %v6310_v19 }
0x1d20   :  { %v5383_v30 = vpop.eup %5382 }
0x1d21   :  { %v1914_v11 = vmul.f32 %v5383_v30, %v5381_v26  ;;  %v5385_v35 = vpop.eup %5384 }
0x1d23   :  { %v1918_v32 = vrot.slane %v1914_v11, %v6158_v15  ;;  %v1925_v7 = vrot.slane %v1914_v11, %v6315_v34 }
0x1d25   :  { %1920 = vbcast.lane.b32.xlu0 %v1918_v32, 256 }
0x1d29   :  { %1927 = vbcast.lane.b32.xlu0 %v1925_v7, 256 }
0x1d2d   :  { %2141 = vrot.lane.b32.xlu0 %v5385_v35, %s5598_s22 }
0x1d31   :  { %1945 = vrot.lane.b32.xlu0 %v6260_v25, %s5599_s23 }
0x1d97   :  { %v1921_v31 = vpop.permute.xlu0 %1920 }
0x1d98   :  { %v1929_v39 = vmul.f32 %v1921_v31, %v6278_v46 }
0x1d9a   :  { %v1931_v54 = vsel %vm88_vm3, %v1929_v39, 0.0 }
0x1d9b   :  { %v1932_v2 = vrot.slane %v1931_v54, 4  ;;  %v1928_v42 = vpop.permute.xlu0 %1927 }
0x1d9c   :  { %v1930_v44 = vmul.f32 %v1928_v42, %v6281_v50 }
0x1d9d   :  { %v1933_v43 = vadd.f32 %v1932_v2, %v1931_v54 }
0x1d9e   :  { %v1938_v48 = vsel %vm88_vm3, %v1930_v44, 0.0 }
0x1d9f   :  { %v1934_v53 = vrot.slane %v1933_v43, 2  ;;  %v1939_v55 = vrot.slane %v1938_v48, 4  ;;  %v2142_v56 = vpop.permute.xlu0 %2141 }
0x1da0   :  { %v6348_v58 = vmul.f32 %v5379_v45, %v2142_v56 }
0x1da1   :  { %v1935_v59 = vadd.f32 %v1934_v53, %v1933_v43  ;;  %v1940_v60 = vadd.f32 %v1939_v55, %v1938_v48 }
0x1da2   :  { %2146 = vrot.lane.b32.xlu0 %v6348_v58, %s5599_s23  ;;  %v2420_v31 = vpack.c.bf16 %v6348_v58, %v6348_v58 }
0x1da3   :  { %v1941_v62 = vrot.slane %v1940_v60, 2  ;;  %v1946_v63 = vpop.permute.xlu0 %1945  ;;  %v1936_v5 = vrot.slane %v1935_v59, 1 }
0x1da4   :  { %1948 = vst.msk [vmem:[#allocation3] sm:$0x3] %vm161_vm1, %v1946_v63 }
0x1da5   :  { %v1942_v10 = vadd.f32 %v1941_v62, %v1940_v60  ;;  %v1937_v12 = vadd.f32 %v1936_v5, %v1935_v59 }
0x1da6   :  { %2150 = vrot.lane.b32.xlu0 %v6260_v25, %s5598_s22 }
0x1da7   :  { %v1943_v4 = vrot.slane %v1942_v10, 1 }
0x1da9   :  { %v1944_v22 = vadd.f32 %v1943_v4, %v1942_v10 }
0x1dab   :  { %v1951_v23 = vsel %vm1899_vm6, %v1944_v22, %v1937_v12 }
0x1dac   :  { %1952 = vrot.lane.b32.xlu1 %v1951_v23, %s5599_s23 }
0x1e14   :  { %v2147_v9 = vpop.permute.xlu0 %2146 }
0x1e18   :  { %v2151_v24 = vpop.permute.xlu0 %2150 }
0x1e1e   :  { %v1953_v13 = vpop.permute.xlu1 %1952 }
0x1e1f   :  { %1955 = vst.msk [vmem:[#allocation3] sm:$0x3] %vm163_vm2, %v1953_v13 }
0x1e26   :  { %v1956_v14 = vld [vmem:[#allocation3] sm:$0x3] }
0x1e27   :  { %2149 = vst.msk [vmem:[#allocation3] sm:$0x3] %vm161_vm1, %v2147_v9  ;;  %v1957_v25 = vpack.c.bf16 %v1956_v14, %v1956_v14 }
0x1e28   :  { %2153 = vst.msk [vmem:[#allocation3] sm:$0x3] %vm163_vm2, %v2151_v24 }
0x1e29   :  { %4977 = vmatmul.mubr.msk.bf16.vlgmr.msra.gmra.mxu0 %vm197_vm4, %v1957_v25 }
0x1e2a   :  { %4989 = vmatpush3.bf16.msra.mxu0 %v6083_v36  ;;  %4996 = vmatprep.mubr.msk.bf16.mxu0 %vm5596_vm0, %v5595_v1 }
0x1e2b   :  { %4990 = vmatprep.subr.bf16.mxu0 %v5595_v1 }
0x1e2e   :  { %4991 = vmatpush3.bf16.msra.mxu0 %v6089_v37 }
0x1e2f   :  { %4992 = vmatprep.subr.bf16.mxu0 %v5595_v1  ;;  %v2154_v57 = vld [vmem:[#allocation3] sm:$0x3] }
0x1e30   :  { %v2155_v16 = vpack.c.bf16 %v2154_v57, %v2154_v57 }
0x1e32   :  { %4993 = vmatpush3.bf16.msra.mxu0 %v6098_v40 }
0x1e33   :  { %4994 = vmatprep.subr.bf16.mxu0 %v5595_v1 }
0x1e36   :  { %4995 = vmatpush3.bf16.msra.mxu0 %v6105_v41 }
0x1e37   :  { %5012 = vmatprep.subr.bf16.mxu0 %v5595_v1 }
0x1e39   :  { %4997 = vmatmul.mubr.msk.bf16.vlgmr.msra.gmra.mxu0 %vm197_vm4, %v2155_v16 }
0x1e3a   :  { %5013 = vmatpush3.bf16.msra.mxu0 %v6034_v47  ;;  %5016 = vmatprep.mubr.msk.bf16.mxu0 %vm5596_vm0, %v5595_v1 }
0x1e3b   :  { %5014 = vmatprep.subr.bf16.mxu0 %v5595_v1 }
0x1e3e   :  { %5015 = vmatpush3.bf16.msra.mxu0 %v6042_v49 }
0x1e3f   :  { %5032 = vmatprep.subr.bf16.mxu0 %v5595_v1 }
0x1ee9   :  { %v6391_v17 = vpop.f32.mrf.mxu0 }
0x1eeb   :  { %v4978_v45 = vpop.f32.mrf.mxu0 }
0x1eed   :  { %v2028_v18 = vpop.f32.mrf.mxu0 }
0x1eee   :  { %v4584_v18 = vld [vmem:[%s7165_s1 + $0x4] sm:$0x3] }
0x1eef   :  { %v4979_v21 = vpop.f32.mrf.mxu0 }
0x1ef9   :  { %v2193_v26 = vpop.f32.mrf.mxu0 }
0x1efa   :  { %v2194_v33 = vadd.f32 %v6125_v51, %v2193_v26 }
0x1efb   :  { %v4998_v27 = vpop.f32.mrf.mxu0 }
0x1efc   :  { %5386 = vtanh.f32 %v2194_v33  ;;  %v4582_v30 = vmul.f32 -1.442695, %v2194_v33 }
0x1efd   :  { %v2196_v47 = vpop.f32.mrf.mxu0 }
0x1efe   :  { %5388 = vpow2.f32 %v4582_v30 }
0x1eff   :  { %v4999_v28 = vpop.f32.mrf.mxu0 }
0x1f09   :  { %v5387_v29 = vpop.eup %5386 }
0x1f0a   :  { %2208 = vrot.lane.b32.xlu0 %v5387_v29, %s5598_s22 }
0x1f0b   :  { %v5389_v49 = vpop.eup %5388 }
0x1f0c   :  { %v2202_v11 = vadd.f32 1.0, %v5389_v49 }
0x1f0e   :  { %5390 = vrcp.f32 %v2202_v11 }
0x1f1b   :  { %v5391_v32 = vpop.eup %5390 }
0x1f1c   :  { %v2206_v39 = vmul.f32 %v5391_v32, %v6213_v52 }
0x1f7c   :  { %v2209_v7 = vpop.permute.xlu0 %2208 }
0x1f7d   :  { %v2211_v35 = vmul.f32 %v5391_v32, %v2209_v7 }
0x1f7f   :  { %2213 = vrot.lane.b32.xlu0 %v2211_v35, %s5599_s23 }
0x1f83   :  { %2422 = vrot.lane.b32.xlu0 %v2420_v31, %s5599_s23 }
0x1ff1   :  { %v2214_v54 = vpop.permute.xlu0 %2213 }
0x1ff2   :  { %v6400_v2 = vadd.f32 %v2214_v54, %v2206_v39 }
0x1ff4   :  { %5392 = vtanh.f32 %v6400_v2 }
0x1ff5   :  { %v2423_v42 = vpop.permute.xlu0 %2422 }
0x1ff6   :  { %5017 = vmatmul.mubr.msk.bf16.vlgmr.msra.gmra.mxu0 %vm88_vm3, %v2423_v42 }
0x1ff7   :  { %5033 = vmatpush3.bf16.msra.mxu0 %v6324_v0  ;;  %5040 = vmatprep.mubr.msk.bf16.mxu0 %vm5596_vm0, %v5595_v1 }
0x1ff8   :  { %5034 = vmatprep.subr.bf16.mxu0 %v5595_v1 }
0x1ffb   :  { %5035 = vmatpush3.bf16.msra.mxu0 %v6331_v6 }
0x1ffc   :  { %5036 = vmatprep.subr.bf16.mxu0 %v5595_v1 }
0x1fff   :  { %5037 = vmatpush3.bf16.msra.mxu0 %v6346_v38 }
0x2000   :  { %5038 = vmatprep.subr.bf16.mxu0 %v5595_v1 }
0x2001   :  { %v5393_v52 = vpop.eup %5392 }
0x2002   :  { %2219 = vrot.lane.b32.xlu1 %v5393_v52, %s5598_s22 }
0x2003   :  { %5039 = vmatpush3.bf16.msra.mxu0 %v6358_v3 }
0x2004   :  { %5052 = vmatprep.subr.bf16.mxu0 %v5595_v1 }
0x2074   :  { %v2220_v44 = vpop.permute.xlu1 %2219 }
0x2075   :  { %v6415_v43 = vmul.f32 %v5391_v32, %v2220_v44 }
0x2077   :  { %v2230_v48 = vrot.slane %v6415_v43, %v6133_v8 }
0x2079   :  { %v2231_v53 = vcombine.high %v2230_v48, %v2230_v48  ;;  %v2238_v55 = vrot.slane %v2230_v48, %v6133_v8 }
0x207b   :  { %v2249_v56 = vrot.slane %v2238_v55, %v6158_v15  ;;  %v2245_v58 = vrot.slane %v2231_v53, %v6133_v8 }
0x207d   :  { %2254 = vrot.lane.b32.xlu1 %v2249_v56, %s5599_s23  ;;  %v2253_v59 = vrot.slane %v2245_v58, %v6158_v15 }
0x207f   :  { %2256 = vrot.lane.b32.xlu0 %v2253_v59, %s5599_s23 }
0x20b6   :  { %v2461_v60 = vpop.f32.mrf.mxu0 }
0x20b7   :  { %v2467_v21 = vadd.f32 %v4584_v18, %v2461_v60 }
0x20b8   :  { %v5018_v62 = vpop.f32.mrf.mxu0 }
0x20b9   :  { %5394 = vtanh.f32 %v2467_v21  ;;  %v4586_v33 = vmul.f32 -1.442695, %v2467_v21 }
0x20ba   :  { %v2464_v63 = vpop.f32.mrf.mxu0 }
0x20bb   :  { %5396 = vpow2.f32 %v4586_v33 }
0x20bc   :  { %v5019_v5 = vpop.f32.mrf.mxu0 }
0x20c6   :  { %v5395_v26 = vpop.eup %5394 }
0x20c8   :  { %v5397_v29 = vpop.eup %5396 }
0x20c9   :  { %v2471_v30 = vadd.f32 1.0, %v5397_v29 }
0x20ef   :  { %v2255_v10 = vpop.permute.xlu1 %2254 }
0x20f0   :  { %v2260_v4 = vmul.f32 %v2255_v10, %v6278_v46 }
0x20f1   :  { %v2257_v12 = vpop.permute.xlu0 %2256 }
0x20f2   :  { %v2261_v22 = vmul.f32 %v2257_v12, %v6281_v50  ;;  %v2262_v23 = vsel %vm88_vm3, %v2260_v4, 0.0 }
0x20f3   :  { %2263 = vadd.xlane.f32.xlu1 %v2262_v23 }
0x20f4   :  { %v2265_v13 = vsel %vm88_vm3, %v2261_v22, 0.0 }
0x20f5   :  { %2266 = vadd.xlane.f32.xlu0 %v2265_v13 }
0x217c   :  { %v2264_v9 = vpop.xlane.xlu1 %2263 }
0x217d   :  { %v2273_v24 = vrot.slane %v2264_v9, %v6291_v61 }
0x217e   :  { %v2267_v14 = vpop.xlane.xlu0 %2266 }
0x217f   :  { %v2277_v25 = vrot.slane %v2267_v14, %v6291_v61 }
0x2181   :  { %v2278_v57 = vsel %vm1899_vm6, %v2277_v25, %v2273_v24 }
0x2182   :  { %v2280_v16 = vsel %vm6298_vm8, %v2278_v57, -1e+30 }
0x2183   :  { %v2281_v45 = vsel %vm1903_vm7, %v2280_v16, -inf }
0x2184   :  { %2282 = vmax.xlane.f32.xlu0 %v2281_v45 }
0x219a   :  { %2477 = vrot.lane.b32.xlu0 %v5395_v26, %s5598_s22 }
0x220d   :  { %v2283_v27 = vpop.xlane.xlu0 %2282 }
0x220e   :  { %v2284_v47 = vsub.f32 %v2280_v16, %v2283_v27 }
0x2210   :  { %v2285_v28 = vmul.f32 1.442695, %v2284_v47 }
0x2211   :  { %v2478_v32 = vpop.permute.xlu0 %2477 }
0x2212   :  { %5398 = vpow2.f32 %v2285_v28 }
0x2213   :  { %5400 = vrcp.f32 %v2471_v30 }
0x221f   :  { %v5399_v49 = vpop.eup %5398 }
0x2220   :  { %v2287_v11 = vsel %vm1903_vm7, %v5399_v49, 0.0  ;;  %v5401_v7 = vpop.eup %5400 }
0x2221   :  { %2288 = vadd.xlane.f32.xlu1 %v2287_v11  ;;  %v2480_v35 = vmul.f32 %v5401_v7, %v2478_v32  ;;  %v2475_v39 = vmul.f32 %v5401_v7, %v6310_v19 }
0x2232   :  { %2482 = vrot.lane.b32.xlu1 %v2480_v35, %s5599_s23 }
0x22aa   :  { %v2289_v31 = vpop.xlane.xlu1 %2288 }
0x22ab   :  { %5402 = vrcp.f32 %v2289_v31 }
0x22ae   :  { %v2483_v54 = vpop.permute.xlu1 %2482 }
0x22af   :  { %v6442_v42 = vadd.f32 %v2483_v54, %v2475_v39 }
0x22b1   :  { %5404 = vtanh.f32 %v6442_v42 }
0x22b8   :  { %v5403_v52 = vpop.eup %5402 }
0x22b9   :  { %v2291_v44 = vmul.f32 %v5403_v52, %v5399_v49 }
0x22bb   :  { %v2302_v48 = vrot.slane %v2291_v44, %v6315_v34  ;;  %v2295_v53 = vrot.slane %v2291_v44, %v6158_v15 }
0x22bd   :  { %2304 = vbcast.lane.b32.xlu0 %v2302_v48, 256  ;;  %2297 = vbcast.lane.b32.xlu1 %v2295_v53, 256 }
0x22be   :  { %v5405_v55 = vpop.eup %5404 }
0x22c1   :  { %2322 = vrot.lane.b32.xlu0 %v6415_v43, %s5599_s23  ;;  %2488 = vrot.lane.b32.xlu1 %v5405_v55, %s5598_s22 }
0x232f   :  { %v2305_v19 = vpop.permute.xlu0 %2304  ;;  %v2298_v56 = vpop.permute.xlu1 %2297 }
0x2330   :  { %v2307_v58 = vmul.f32 %v2305_v19, %v6281_v50  ;;  %v2306_v59 = vmul.f32 %v2298_v56, %v6278_v46 }
0x2332   :  { %v2315_v60 = vsel %vm88_vm3, %v2307_v58, 0.0  ;;  %v2308_v62 = vsel %vm88_vm3, %v2306_v59, 0.0 }
0x2333   :  { %v2316_v63 = vrot.slane %v2315_v60, 4  ;;  %v2309_v5 = vrot.slane %v2308_v62, 4  ;;  %v2323_v10 = vpop.permute.xlu0 %2322  ;;  %v2489_v4 = vpop.permute.xlu1 %2488 }
0x2334   :  { %2325 = vst.msk [vmem:[#allocation3] sm:$0x3] %vm161_vm1, %v2323_v10  ;;  %v6455_v12 = vmul.f32 %v5401_v7, %v2489_v4 }
0x2335   :  { %v2317_v22 = vadd.f32 %v2316_v63, %v2315_v60  ;;  %v2310_v23 = vadd.f32 %v2309_v5, %v2308_v62 }
0x2336   :  { %2493 = vrot.lane.b32.xlu0 %v6455_v12, %s5599_s23 }
0x2337   :  { %v2318_v13 = vrot.slane %v2317_v22, 2  ;;  %v2311_v9 = vrot.slane %v2310_v23, 2 }
0x2339   :  { %v2319_v14 = vadd.f32 %v2318_v13, %v2317_v22  ;;  %v2312_v24 = vadd.f32 %v2311_v9, %v2310_v23 }
0x233b   :  { %v2320_v25 = vrot.slane %v2319_v14, 1  ;;  %v2313_v57 = vrot.slane %v2312_v24, 1 }
0x233d   :  { %v2314_v16 = vadd.f32 %v2313_v57, %v2312_v24  ;;  %v2321_v45 = vadd.f32 %v2320_v25, %v2319_v14 }
0x233f   :  { %v2328_v18 = vsel %vm1899_vm6, %v2321_v45, %v2314_v16 }
0x2340   :  { %2329 = vrot.lane.b32.xlu1 %v2328_v18, %s5599_s23 }
0x2344   :  { %2497 = vrot.lane.b32.xlu1 %v6415_v43, %s5598_s22 }
0x23a8   :  { %v2494_v26 = vpop.permute.xlu0 %2493 }
0x23b2   :  { %v2330_v21 = vpop.permute.xlu1 %2329 }
0x23b3   :  { %2332 = vst.msk [vmem:[#allocation3] sm:$0x3] %vm163_vm2, %v2330_v21 }
0x23b6   :  { %v2498_v27 = vpop.permute.xlu1 %2497 }
0x23ba   :  { %v2333_v33 = vld [vmem:[#allocation3] sm:$0x3] }
0x23bb   :  { %2496 = vst.msk [vmem:[#allocation3] sm:$0x3] %vm161_vm1, %v2494_v26  ;;  %v2334_v47 = vpack.c.bf16 %v2333_v33, %v2333_v33 }
0x23bc   :  { %2500 = vst.msk [vmem:[#allocation3] sm:$0x3] %vm163_vm2, %v2498_v27 }
0x23bd   :  { %5009 = vmatmul.mubr.msk.bf16.vlgmr.msra.gmra.mxu1 %vm197_vm4, %v2334_v47 }
0x23be   :  { %5021 = vmatpush3.bf16.msra.mxu1 %v6083_v36  ;;  %5028 = vmatprep.mubr.msk.bf16.mxu1 %vm5596_vm0, %v5595_v1  ;;  %v6481_v36 = vld [vmem:[%s7170_s6 + $0x8] sm:$0xff]  }
0x23bf   :  { %5022 = vmatprep.subr.bf16.mxu1 %v5595_v1 }
0x23c2   :  { %5023 = vmatpush3.bf16.msra.mxu1 %v6089_v37  ;;  %v6490_v37 = vld [vmem:[%s7170_s6] sm:$0xff]  }
0x23c3   :  { %5024 = vmatprep.subr.bf16.mxu1 %v5595_v1  ;;  %v2501_v43 = vld [vmem:[#allocation3] sm:$0x3] }
0x23c4   :  { %v2502_v28 = vpack.c.bf16 %v2501_v43, %v2501_v43 }
0x23c6   :  { %5025 = vmatpush3.bf16.msra.mxu1 %v6098_v40 }
0x23c7   :  { %5026 = vmatprep.subr.bf16.mxu1 %v5595_v1 }
0x23ca   :  { %5027 = vmatpush3.bf16.msra.mxu1 %v6105_v41 }
0x23cb   :  { %5044 = vmatprep.subr.bf16.mxu1 %v5595_v1 }
0x23cd   :  { %5029 = vmatmul.mubr.msk.bf16.vlgmr.msra.gmra.mxu1 %vm197_vm4, %v2502_v28  ;;  %v4590_v28 = vld [vmem:[%s7165_s1 + $0x6] sm:$0x3] }
0x23ce   :  { %5045 = vmatpush3.bf16.msra.mxu1 %v6481_v36  ;;  %5048 = vmatprep.mubr.msk.bf16.mxu1 %vm5596_vm0, %v5595_v1 }
0x23cf   :  { %5046 = vmatprep.subr.bf16.mxu1 %v5595_v1 }
0x23d2   :  { %5047 = vmatpush3.bf16.msra.mxu1 %v6490_v37 }
0x23d3   :  { %5064 = vmatprep.subr.bf16.mxu1 %v5595_v1 }
0x247d   :  { %v6494_v40 = vpop.f32.mrf.mxu1 }
0x247f   :  { %v5010_v41 = vpop.f32.mrf.mxu1 }
0x2481   :  { %v2375_v29 = vpop.f32.mrf.mxu1 }
0x2483   :  { %v5011_v30 = vpop.f32.mrf.mxu1 }
0x248d   :  { %v2540_v49 = vpop.f32.mrf.mxu1 }
0x248e   :  { %v2541_v11 = vadd.f32 %v6125_v51, %v2540_v49  ;;  %v2767_v51 = vpack.c.bf16 %v6455_v12, %v6455_v12 }
0x248f   :  { %v5030_v32 = vpop.f32.mrf.mxu1 }
0x2490   :  { %5406 = vtanh.f32 %v2541_v11  ;;  %v4588_v39 = vmul.f32 -1.442695, %v2541_v11 }
0x2491   :  { %v2543_v7 = vpop.f32.mrf.mxu1 }
0x2492   :  { %5408 = vpow2.f32 %v4588_v39 }
0x2493   :  { %v5031_v35 = vpop.f32.mrf.mxu1 }
0x249d   :  { %v5407_v31 = vpop.eup %5406 }
0x249e   :  { %2555 = vrot.lane.b32.xlu0 %v5407_v31, %s5598_s22 }
0x249f   :  { %v5409_v54 = vpop.eup %5408 }
0x24a0   :  { %v2549_v52 = vadd.f32 1.0, %v5409_v54 }
0x24a2   :  { %5410 = vrcp.f32 %v2549_v52 }
0x24af   :  { %v5411_v44 = vpop.eup %5410 }
0x24b0   :  { %v2553_v55 = vmul.f32 %v5411_v44, %v6400_v2 }
0x2510   :  { %v2556_v48 = vpop.permute.xlu0 %2555 }
0x2511   :  { %v2558_v53 = vmul.f32 %v5411_v44, %v2556_v48 }
0x2513   :  { %2560 = vrot.lane.b32.xlu1 %v2558_v53, %s5599_s23 }
0x2517   :  { %2769 = vrot.lane.b32.xlu1 %v2767_v51, %s5599_s23 }
0x2585   :  { %v2561_v19 = vpop.permute.xlu1 %2560 }
0x2586   :  { %v6503_v56 = vadd.f32 %v2561_v19, %v2553_v55 }
0x2588   :  { %5412 = vtanh.f32 %v6503_v56 }
0x2589   :  { %v2770_v58 = vpop.permute.xlu1 %2769 }
0x258a   :  { %5049 = vmatmul.mubr.msk.bf16.vlgmr.msra.gmra.mxu1 %vm88_vm3, %v2770_v58 }
0x258b   :  { %5065 = vmatpush3.bf16.msra.mxu1 %v6324_v0  ;;  %5072 = vmatprep.mubr.msk.bf16.mxu1 %vm5596_vm0, %v5595_v1 }
0x258c   :  { %5066 = vmatprep.subr.bf16.mxu1 %v5595_v1 }
0x258f   :  { %5067 = vmatpush3.bf16.msra.mxu1 %v6331_v6 }
0x2590   :  { %5068 = vmatprep.subr.bf16.mxu1 %v5595_v1 }
0x2593   :  { %5069 = vmatpush3.bf16.msra.mxu1 %v6346_v38 }
0x2594   :  { %5070 = vmatprep.subr.bf16.mxu1 %v5595_v1 }
0x2595   :  { %v5413_v2 = vpop.eup %5412 }
0x2596   :  { %2566 = vrot.lane.b32.xlu0 %v5413_v2, %s5598_s22 }
0x2597   :  { %5071 = vmatpush3.bf16.msra.mxu1 %v6358_v3 }
0x2598   :  { %5084 = vmatprep.subr.bf16.mxu1 %v5595_v1 }
0x2608   :  { %v2567_v59 = vpop.permute.xlu0 %2566 }
0x2609   :  { %v6518_v60 = vmul.f32 %v5411_v44, %v2567_v59 }
0x260b   :  { %v2577_v62 = vrot.slane %v6518_v60, %v6133_v8 }
0x260d   :  { %v2578_v63 = vcombine.high %v2577_v62, %v2577_v62  ;;  %v2585_v5 = vrot.slane %v2577_v62, %v6133_v8 }
0x260f   :  { %v2596_v10 = vrot.slane %v2585_v5, %v6158_v15  ;;  %v2592_v4 = vrot.slane %v2578_v63, %v6133_v8 }
0x2611   :  { %2601 = vrot.lane.b32.xlu0 %v2596_v10, %s5599_s23  ;;  %v2600_v12 = vrot.slane %v2592_v4, %v6158_v15 }
0x2613   :  { %2603 = vrot.lane.b32.xlu1 %v2600_v12, %s5599_s23 }
0x264a   :  { %v2808_v22 = vpop.f32.mrf.mxu1 }
0x264b   :  { %v2814_v41 = vadd.f32 %v4590_v28, %v2808_v22 }
0x264c   :  { %v5050_v23 = vpop.f32.mrf.mxu1 }
0x264d   :  { %5414 = vtanh.f32 %v2814_v41  ;;  %v4592_v30 = vmul.f32 -1.442695, %v2814_v41 }
0x264e   :  { %v2811_v13 = vpop.f32.mrf.mxu1 }
0x264f   :  { %5416 = vpow2.f32 %v4592_v30 }
0x2650   :  { %v5051_v9 = vpop.f32.mrf.mxu1 }
0x265a   :  { %v5415_v29 = vpop.eup %5414 }
0x265c   :  { %v5417_v7 = vpop.eup %5416 }
0x265d   :  { %v2818_v35 = vadd.f32 1.0, %v5417_v7  ;;  %v6596_v7 = vld [vmem:[%s7171_s7] sm:$0xff]  }
0x2683   :  { %v2602_v14 = vpop.permute.xlu0 %2601 }
0x2684   :  { %v2607_v24 = vmul.f32 %v2602_v14, %v6278_v46 }
0x2685   :  { %v2604_v25 = vpop.permute.xlu1 %2603 }
0x2686   :  { %v2608_v57 = vmul.f32 %v2604_v25, %v6281_v50  ;;  %v2609_v16 = vsel %vm88_vm3, %v2607_v24, 0.0 }
0x2687   :  { %2610 = vadd.xlane.f32.xlu0 %v2609_v16 }
0x2688   :  { %v2612_v45 = vsel %vm88_vm3, %v2608_v57, 0.0 }
0x2689   :  { %2613 = vadd.xlane.f32.xlu1 %v2612_v45 }
0x2710   :  { %v2611_v18 = vpop.xlane.xlu0 %2610 }
0x2711   :  { %v2620_v26 = vrot.slane %v2611_v18, %v6291_v61 }
0x2712   :  { %v2614_v21 = vpop.xlane.xlu1 %2613 }
0x2713   :  { %v2624_v33 = vrot.slane %v2614_v21, %v6291_v61 }
0x2715   :  { %v2625_v27 = vsel %vm1899_vm6, %v2624_v33, %v2620_v26 }
0x2716   :  { %v2627_v47 = vsel %vm6298_vm8, %v2625_v27, -1e+30 }
0x2717   :  { %v2628_v43 = vsel %vm1903_vm7, %v2627_v47, -inf }
0x2718   :  { %2629 = vmax.xlane.f32.xlu0 %v2628_v43 }
0x272e   :  { %2824 = vrot.lane.b32.xlu0 %v5415_v29, %s5598_s22 }
0x27a1   :  { %v2630_v49 = vpop.xlane.xlu0 %2629 }
0x27a2   :  { %v2631_v11 = vsub.f32 %v2627_v47, %v2630_v49  ;;  %v6573_v49 = vld [vmem:[%s7171_s7 + $0x18] sm:$0xff]  }
0x27a4   :  { %v2632_v32 = vmul.f32 1.442695, %v2631_v11  ;;  %v6589_v11 = vld [vmem:[%s7171_s7 + $0x8] sm:$0xff]  }
0x27a5   :  { %v2825_v54 = vpop.permute.xlu0 %2824 }
0x27a6   :  { %5418 = vpow2.f32 %v2632_v32 }
0x27a7   :  { %5420 = vrcp.f32 %v2818_v35 }
0x27b3   :  { %v5419_v31 = vpop.eup %5418 }
0x27b4   :  { %v2634_v39 = vsel %vm1903_vm7, %v5419_v31, 0.0  ;;  %v5421_v52 = vpop.eup %5420 }
0x27b5   :  { %2635 = vadd.xlane.f32.xlu1 %v2634_v39  ;;  %v2827_v44 = vmul.f32 %v5421_v52, %v2825_v54  ;;  %v2822_v53 = vmul.f32 %v5421_v52, %v6442_v42 }
0x27c6   :  { %2829 = vrot.lane.b32.xlu1 %v2827_v44, %s5599_s23 }
0x283e   :  { %v2636_v48 = vpop.xlane.xlu1 %2635 }
0x283f   :  { %5422 = vrcp.f32 %v2636_v48  ;;  %v6612_v48 = vld [vmem:[%s7172_s8] ss:$0 sm:$0xff] }
0x2842   :  { %v2830_v51 = vpop.permute.xlu1 %2829 }
0x2843   :  { %v6545_v55 = vadd.f32 %v2830_v51, %v2822_v53 }
0x2845   :  { %5424 = vtanh.f32 %v6545_v55 }
0x284c   :  { %v5423_v19 = vpop.eup %5422 }
0x284d   :  { %v2638_v58 = vmul.f32 %v5423_v19, %v5419_v31 }
0x284f   :  { %v2642_v2 = vrot.slane %v2638_v58, %v6158_v15  ;;  %v2649_v59 = vrot.slane %v2638_v58, %v6315_v34 }
0x2851   :  { %2644 = vbcast.lane.b32.xlu0 %v2642_v2, 256  ;;  %2651 = vbcast.lane.b32.xlu1 %v2649_v59, 256 }
0x2852   :  { %v5425_v62 = vpop.eup %5424 }
0x2855   :  { %2669 = vrot.lane.b32.xlu1 %v6518_v60, %s5599_s23  ;;  %2835 = vrot.lane.b32.xlu0 %v5425_v62, %s5598_s22 }
0x28c3   :  { %v2645_v42 = vpop.permute.xlu0 %2644  ;;  %v2652_v63 = vpop.permute.xlu1 %2651 }
0x28c4   :  { %v2653_v5 = vmul.f32 %v2645_v42, %v6278_v46  ;;  %v2654_v10 = vmul.f32 %v2652_v63, %v6281_v50 }
0x28c6   :  { %v2655_v4 = vsel %vm88_vm3, %v2653_v5, 0.0  ;;  %v2662_v12 = vsel %vm88_vm3, %v2654_v10, 0.0 }
0x28c7   :  { %v2656_v22 = vrot.slane %v2655_v4, 4  ;;  %v2663_v23 = vrot.slane %v2662_v12, 4  ;;  %v2670_v13 = vpop.permute.xlu1 %2669  ;;  %v2836_v9 = vpop.permute.xlu0 %2835 }
0x28c8   :  { %2672 = vst.msk [vmem:[#allocation3] sm:$0x3] %vm161_vm1, %v2670_v13  ;;  %v6558_v14 = vmul.f32 %v5421_v52, %v2836_v9 }
0x28c9   :  { %v2657_v24 = vadd.f32 %v2656_v22, %v2655_v4  ;;  %v2664_v25 = vadd.f32 %v2663_v23, %v2662_v12 }
0x28ca   :  { %2840 = vrot.lane.b32.xlu1 %v6558_v14, %s5599_s23  ;;  %v3114_v4 = vpack.c.bf16 %v6558_v14, %v6558_v14 }
0x28cb   :  { %v2658_v57 = vrot.slane %v2657_v24, 2  ;;  %v2665_v16 = vrot.slane %v2664_v25, 2 }
0x28cd   :  { %v2659_v45 = vadd.f32 %v2658_v57, %v2657_v24  ;;  %v2666_v18 = vadd.f32 %v2665_v16, %v2664_v25 }
0x28cf   :  { %v2660_v21 = vrot.slane %v2659_v45, 1  ;;  %v2667_v26 = vrot.slane %v2666_v18, 1 }
0x28d1   :  { %v2661_v33 = vadd.f32 %v2660_v21, %v2659_v45  ;;  %v2668_v27 = vadd.f32 %v2667_v26, %v2666_v18 }
0x28d3   :  { %v2675_v47 = vsel %vm1899_vm6, %v2668_v27, %v2661_v33 }
0x28d4   :  { %2676 = vrot.lane.b32.xlu0 %v2675_v47, %s5599_s23 }
0x28d8   :  { %2844 = vrot.lane.b32.xlu0 %v6518_v60, %s5598_s22  ;;  %v6582_v60 = vld [vmem:[%s7171_s7 + $0x10] sm:$0xff]  }
0x293c   :  { %v2841_v28 = vpop.permute.xlu1 %2840 }
0x2946   :  { %v2677_v43 = vpop.permute.xlu0 %2676 }
0x2947   :  { %2679 = vst.msk [vmem:[#allocation3] sm:$0x3] %vm163_vm2, %v2677_v43 }
0x294a   :  { %v2845_v29 = vpop.permute.xlu0 %2844 }
0x294e   :  { %v2680_v41 = vld [vmem:[#allocation3] sm:$0x3] }
0x294f   :  { %2843 = vst.msk [vmem:[#allocation3] sm:$0x3] %vm161_vm1, %v2841_v28  ;;  %v2681_v30 = vpack.c.bf16 %v2680_v41, %v2680_v41 }
0x2950   :  { %2847 = vst.msk [vmem:[#allocation3] sm:$0x3] %vm163_vm2, %v2845_v29 }
0x2951   :  { %5041 = vmatmul.mubr.msk.bf16.vlgmr.msra.gmra.mxu0 %vm197_vm4, %v2681_v30 }
0x2952   :  { %5053 = vmatpush3.bf16.msra.mxu0 %v6573_v49  ;;  %5060 = vmatprep.mubr.msk.bf16.mxu0 %vm5596_vm0, %v5595_v1 }
0x2953   :  { %5054 = vmatprep.subr.bf16.mxu0 %v5595_v1 }
0x2956   :  { %5055 = vmatpush3.bf16.msra.mxu0 %v6582_v60 }
0x2957   :  { %5056 = vmatprep.subr.bf16.mxu0 %v5595_v1  ;;  %v2848_v32 = vld [vmem:[#allocation3] sm:$0x3] }
0x2958   :  { %v2849_v35 = vpack.c.bf16 %v2848_v32, %v2848_v32 }
0x295a   :  { %5057 = vmatpush3.bf16.msra.mxu0 %v6589_v11 }
0x295b   :  { %5058 = vmatprep.subr.bf16.mxu0 %v5595_v1 }
0x295e   :  { %5059 = vmatpush3.bf16.msra.mxu0 %v6596_v7 }
0x295f   :  { %5076 = vmatprep.subr.bf16.mxu0 %v5595_v1 }
0x2961   :  { %5061 = vmatmul.mubr.msk.bf16.vlgmr.msra.gmra.mxu0 %vm197_vm4, %v2849_v35 }
0x2962   :  { %5077 = vmatpush3.bf16.msra.mxu0 %v6481_v36  ;;  %5080 = vmatprep.mubr.msk.bf16.mxu0 %vm5596_vm0, %v5595_v1 }
0x2963   :  { %5078 = vmatprep.subr.bf16.mxu0 %v5595_v1 }
0x2966   :  { %5079 = vmatpush3.bf16.msra.mxu0 %v6490_v37 }
0x2967   :  { %5096 = vmatprep.subr.bf16.mxu0 %v5595_v1 }
0x2a11   :  { %v6607_v31 = vpop.f32.mrf.mxu0 }
0x2a13   :  { %v5042_v39 = vpop.f32.mrf.mxu0 }
0x2a15   :  { %v2722_v54 = vpop.f32.mrf.mxu0 }
0x2a17   :  { %v5043_v52 = vpop.f32.mrf.mxu0 }
0x2a21   :  { %v2887_v44 = vpop.f32.mrf.mxu0 }
0x2a22   :  { %v2888_v53 = vadd.f32 %v6612_v48, %v2887_v44 }
0x2a23   :  { %v5062_v51 = vpop.f32.mrf.mxu0 }
0x2a24   :  { %5426 = vtanh.f32 %v2888_v53  ;;  %v4594_v59 = vmul.f32 -1.442695, %v2888_v53 }
0x2a25   :  { %v2890_v19 = vpop.f32.mrf.mxu0 }
0x2a26   :  { %5428 = vpow2.f32 %v4594_v59 }
0x2a27   :  { %v5063_v58 = vpop.f32.mrf.mxu0 }
0x2a31   :  { %v5427_v2 = vpop.eup %5426 }
0x2a32   :  { %2902 = vrot.lane.b32.xlu1 %v5427_v2, %s5598_s22 }
0x2a33   :  { %v5429_v62 = vpop.eup %5428 }
0x2a34   :  { %v2896_v42 = vadd.f32 1.0, %v5429_v62 }
0x2a36   :  { %5430 = vrcp.f32 %v2896_v42 }
0x2a43   :  { %v5431_v63 = vpop.eup %5430 }
0x2a44   :  { %v2900_v12 = vmul.f32 %v5431_v63, %v6503_v56 }
0x2aa4   :  { %v2903_v5 = vpop.permute.xlu1 %2902 }
0x2aa5   :  { %v2905_v10 = vmul.f32 %v5431_v63, %v2903_v5 }
0x2aa7   :  { %2907 = vrot.lane.b32.xlu0 %v2905_v10, %s5599_s23 }
0x2aab   :  { %3116 = vrot.lane.b32.xlu0 %v3114_v4, %s5599_s23 }
0x2b19   :  { %v2908_v22 = vpop.permute.xlu0 %2907 }
0x2b1a   :  { %v6621_v23 = vadd.f32 %v2908_v22, %v2900_v12 }
0x2b1c   :  { %5432 = vtanh.f32 %v6621_v23 }
0x2b1d   :  { %v3117_v13 = vpop.permute.xlu0 %3116 }
0x2b1e   :  { %5081 = vmatmul.mubr.msk.bf16.vlgmr.msra.gmra.mxu0 %vm88_vm3, %v3117_v13 }
0x2b1f   :  { %5097 = vmatpush3.bf16.msra.mxu0 %v6324_v0  ;;  %5104 = vmatprep.mubr.msk.bf16.mxu0 %vm5596_vm0, %v5595_v1 }
0x2b20   :  { %5098 = vmatprep.subr.bf16.mxu0 %v5595_v1 }
0x2b23   :  { %5099 = vmatpush3.bf16.msra.mxu0 %v6331_v6 }
0x2b24   :  { %5100 = vmatprep.subr.bf16.mxu0 %v5595_v1 }
0x2b27   :  { %5101 = vmatpush3.bf16.msra.mxu0 %v6346_v38 }
0x2b28   :  { %5102 = vmatprep.subr.bf16.mxu0 %v5595_v1 }
0x2b29   :  { %v5433_v56 = vpop.eup %5432 }
0x2b2a   :  { %2913 = vrot.lane.b32.xlu1 %v5433_v56, %s5598_s22 }
0x2b2b   :  { %5103 = vmatpush3.bf16.msra.mxu0 %v6358_v3 }
0x2b2c   :  { %5116 = vmatprep.subr.bf16.mxu0 %v5595_v1 }
0x2b9c   :  { %v2914_v0 = vpop.permute.xlu1 %2913 }
0x2b9d   :  { %v6636_v9 = vmul.f32 %v5431_v63, %v2914_v0 }
0x2b9f   :  { %v2924_v14 = vrot.slane %v6636_v9, %v6133_v8 }
0x2ba1   :  { %v2925_v6 = vcombine.high %v2924_v14, %v2924_v14  ;;  %v2932_v24 = vrot.slane %v2924_v14, %v6133_v8 }
0x2ba3   :  { %v2943_v38 = vrot.slane %v2932_v24, %v6158_v15  ;;  %v2939_v25 = vrot.slane %v2925_v6, %v6133_v8  ;;  %v6671_v24 = vld [vmem:[#allocation2 + $0x8] sm:$0xff] }
0x2ba5   :  { %2948 = vrot.lane.b32.xlu1 %v2943_v38, %s5599_s23  ;;  %v2947_v57 = vrot.slane %v2939_v25, %v6158_v15  ;;  %v6674_v25 = vld [vmem:[#allocation2] sm:$0xff] }
0x2ba7   :  { %2950 = vrot.lane.b32.xlu0 %v2947_v57, %s5599_s23 }
0x2bde   :  { %v3155_v3 = vpop.f32.mrf.mxu0 }
0x2be0   :  { %v5082_v16 = vpop.f32.mrf.mxu0 }
0x2be2   :  { %v3158_v45 = vpop.f32.mrf.mxu0 }
0x2be4   :  { %v5083_v18 = vpop.f32.mrf.mxu0 }
0x2c17   :  { %v2949_v21 = vpop.permute.xlu1 %2948 }
0x2c18   :  { %v2954_v26 = vmul.f32 %v2949_v21, %v6278_v46 }
0x2c19   :  { %v2951_v33 = vpop.permute.xlu0 %2950 }
0x2c1a   :  { %v2955_v27 = vmul.f32 %v2951_v33, %v6281_v50  ;;  %v2956_v47 = vsel %vm88_vm3, %v2954_v26, 0.0  ;;  %v4596_v50 = vld [vmem:[%s7165_s1 + $0x8] sm:$0x3] }
0x2c1b   :  { %2957 = vadd.xlane.f32.xlu1 %v2956_v47  ;;  %v3161_v39 = vadd.f32 %v4596_v50, %v3155_v3 }
0x2c1c   :  { %v2959_v43 = vsel %vm88_vm3, %v2955_v27, 0.0 }
0x2c1d   :  { %2960 = vadd.xlane.f32.xlu0 %v2959_v43  ;;  %5434 = vtanh.f32 %v3161_v39  ;;  %v4598_v52 = vmul.f32 -1.442695, %v3161_v39 }
0x2c1f   :  { %5436 = vpow2.f32 %v4598_v52 }
0x2c2a   :  { %v5435_v54 = vpop.eup %5434 }
0x2c2c   :  { %v5437_v19 = vpop.eup %5436 }
0x2c2d   :  { %v3165_v58 = vadd.f32 1.0, %v5437_v19 }
0x2ca4   :  { %v2958_v28 = vpop.xlane.xlu1 %2957 }
0x2ca5   :  { %v2967_v29 = vrot.slane %v2958_v28, %v6291_v61 }
0x2ca6   :  { %v2961_v41 = vpop.xlane.xlu0 %2960 }
0x2ca7   :  { %v2971_v30 = vrot.slane %v2961_v41, %v6291_v61 }
0x2ca9   :  { %v2972_v32 = vsel %vm1899_vm6, %v2971_v30, %v2967_v29 }
0x2caa   :  { %v2974_v46 = vsel %vm6298_vm8, %v2972_v32, -1e+30 }
0x2cab   :  { %v2975_v35 = vsel %vm1903_vm7, %v2974_v46, -inf }
0x2cac   :  { %2976 = vmax.xlane.f32.xlu0 %v2975_v35 }
0x2cc2   :  { %3171 = vrot.lane.b32.xlu0 %v5435_v54, %s5598_s22 }
0x2d35   :  { %v2977_v44 = vpop.xlane.xlu0 %2976 }
0x2d36   :  { %v2978_v53 = vsub.f32 %v2974_v46, %v2977_v44 }
0x2d38   :  { %v2979_v51 = vmul.f32 1.442695, %v2978_v53 }
0x2d39   :  { %v3172_v62 = vpop.permute.xlu0 %3171 }
0x2d3a   :  { %5438 = vpow2.f32 %v2979_v51 }
0x2d3b   :  { %5440 = vrcp.f32 %v3165_v58 }
0x2d47   :  { %v5439_v2 = vpop.eup %5438 }
0x2d48   :  { %v2981_v59 = vsel %vm1903_vm7, %v5439_v2, 0.0  ;;  %v5441_v42 = vpop.eup %5440 }
0x2d49   :  { %2982 = vadd.xlane.f32.xlu1 %v2981_v59  ;;  %v3174_v63 = vmul.f32 %v5441_v42, %v3172_v62  ;;  %v3169_v10 = vmul.f32 %v5441_v42, %v6545_v55 }
0x2d5a   :  { %3176 = vrot.lane.b32.xlu1 %v3174_v63, %s5599_s23 }
0x2dd2   :  { %v2983_v5 = vpop.xlane.xlu1 %2982 }
0x2dd3   :  { %5442 = vrcp.f32 %v2983_v5 }
0x2dd6   :  { %v3177_v4 = vpop.permute.xlu1 %3176 }
0x2dd7   :  { %v6663_v12 = vadd.f32 %v3177_v4, %v3169_v10 }
0x2dd9   :  { %5444 = vtanh.f32 %v6663_v12 }
0x2de0   :  { %v5443_v22 = vpop.eup %5442 }
0x2de1   :  { %v2985_v13 = vmul.f32 %v5443_v22, %v5439_v2 }
0x2de3   :  { %v2996_v56 = vrot.slane %v2985_v13, %v6315_v34  ;;  %v2989_v0 = vrot.slane %v2985_v13, %v6158_v15 }
0x2de5   :  { %2998 = vbcast.lane.b32.xlu0 %v2996_v56, 256  ;;  %2991 = vbcast.lane.b32.xlu1 %v2989_v0, 256 }
0x2de6   :  { %v5445_v14 = vpop.eup %5444 }
0x2de9   :  { %3016 = vrot.lane.b32.xlu0 %v6636_v9, %s5599_s23  ;;  %3182 = vrot.lane.b32.xlu1 %v5445_v14, %s5598_s22 }
0x2e57   :  { %v2999_v55 = vpop.permute.xlu0 %2998  ;;  %v2992_v6 = vpop.permute.xlu1 %2991 }
0x2e58   :  { %v3001_v38 = vmul.f32 %v6671_v24, %v2999_v55  ;;  %v3000_v57 = vmul.f32 %v6674_v25, %v2992_v6 }
0x2e5a   :  { %v3009_v3 = vsel %vm88_vm3, %v3001_v38, 0.0  ;;  %v3002_v16 = vsel %vm88_vm3, %v3000_v57, 0.0 }
0x2e5b   :  { %v3010_v45 = vrot.slane %v3009_v3, 4  ;;  %v3003_v18 = vrot.slane %v3002_v16, 4  ;;  %v3017_v21 = vpop.permute.xlu0 %3016  ;;  %v3183_v26 = vpop.permute.xlu1 %3182 }
0x2e5c   :  { %3019 = vst.msk [vmem:[#allocation3] sm:$0x3] %vm161_vm1, %v3017_v21  ;;  %v6680_v33 = vmul.f32 %v5441_v42, %v3183_v26  ;;  %v6749_v26 = vld [vmem:[%s7173_s9] sm:$0xff]  }
0x2e5d   :  { %v3011_v27 = vadd.f32 %v3010_v45, %v3009_v3  ;;  %v3004_v47 = vadd.f32 %v3003_v18, %v3002_v16  ;;  %v6725_v45 = vld [vmem:[%s7173_s9 + $0x18] sm:$0xff]   ;;  %v6741_v18 = vld [vmem:[%s7173_s9 + $0x8] sm:$0xff]  }
0x2e5e   :  { %3187 = vrot.lane.b32.xlu0 %v6680_v33, %s5599_s23  ;;  %v3461_v6 = vpack.c.bf16 %v6680_v33, %v6680_v33 }
0x2e5f   :  { %v3012_v43 = vrot.slane %v3011_v27, 2  ;;  %v3005_v28 = vrot.slane %v3004_v47, 2 }
0x2e61   :  { %v3013_v41 = vadd.f32 %v3012_v43, %v3011_v27  ;;  %v3006_v29 = vadd.f32 %v3005_v28, %v3004_v47 }
0x2e63   :  { %v3014_v30 = vrot.slane %v3013_v41, 1  ;;  %v3007_v32 = vrot.slane %v3006_v29, 1 }
0x2e65   :  { %v3015_v46 = vadd.f32 %v3014_v30, %v3013_v41  ;;  %v3008_v35 = vadd.f32 %v3007_v32, %v3006_v29 }
0x2e67   :  { %v3022_v50 = vsel %vm1899_vm6, %v3015_v46, %v3008_v35 }
0x2e68   :  { %3023 = vrot.lane.b32.xlu1 %v3022_v50, %s5599_s23 }
0x2e6c   :  { %3191 = vrot.lane.b32.xlu1 %v6636_v9, %s5598_s22 }
0x2ed0   :  { %v3188_v54 = vpop.permute.xlu0 %3187 }
0x2eda   :  { %v3024_v39 = vpop.permute.xlu1 %3023 }
0x2edb   :  { %3026 = vst.msk [vmem:[#allocation3] sm:$0x3] %vm163_vm2, %v3024_v39 }
0x2ede   :  { %v3192_v44 = vpop.permute.xlu1 %3191 }
0x2ee2   :  { %v3027_v52 = vld [vmem:[#allocation3] sm:$0x3] }
0x2ee3   :  { %v3028_v53 = vpack.c.bf16 %v3027_v52, %v3027_v52  ;;  %3190 = vst.msk [vmem:[#allocation3] sm:$0x3] %vm161_vm1, %v3188_v54 }
0x2ee4   :  { %3194 = vst.msk [vmem:[#allocation3] sm:$0x3] %vm163_vm2, %v3192_v44 }
0x2ee5   :  { %5073 = vmatmul.mubr.msk.bf16.vlgmr.msra.gmra.mxu1 %vm197_vm4, %v3028_v53 }
0x2ee6   :  { %5085 = vmatpush3.bf16.msra.mxu1 %v6573_v49  ;;  %5092 = vmatprep.mubr.msk.bf16.mxu1 %vm5596_vm0, %v5595_v1 }
0x2ee7   :  { %5086 = vmatprep.subr.bf16.mxu1 %v5595_v1 }
0x2eea   :  { %5087 = vmatpush3.bf16.msra.mxu1 %v6582_v60 }
0x2eeb   :  { %5088 = vmatprep.subr.bf16.mxu1 %v5595_v1  ;;  %v3195_v9 = vld [vmem:[#allocation3] sm:$0x3] }
0x2eec   :  { %v3196_v51 = vpack.c.bf16 %v3195_v9, %v3195_v9 }
0x2eee   :  { %5089 = vmatpush3.bf16.msra.mxu1 %v6589_v11 }
0x2eef   :  { %5090 = vmatprep.subr.bf16.mxu1 %v5595_v1 }
0x2ef2   :  { %5091 = vmatpush3.bf16.msra.mxu1 %v6596_v7 }
0x2ef3   :  { %5108 = vmatprep.subr.bf16.mxu1 %v5595_v1 }
0x2ef5   :  { %5093 = vmatmul.mubr.msk.bf16.vlgmr.msra.gmra.mxu1 %vm197_vm4, %v3196_v51 }
0x2ef6   :  { %5109 = vmatpush3.bf16.msra.mxu1 %v6481_v36  ;;  %5112 = vmatprep.mubr.msk.bf16.mxu1 %vm5596_vm0, %v5595_v1 }
0x2ef7   :  { %5110 = vmatprep.subr.bf16.mxu1 %v5595_v1 }
0x2efa   :  { %5111 = vmatpush3.bf16.msra.mxu1 %v6490_v37 }
0x2efb   :  { %5128 = vmatprep.subr.bf16.mxu1 %v5595_v1 }
0x2fa5   :  { %v6709_v19 = vpop.f32.mrf.mxu1 }
0x2fa7   :  { %v5074_v58 = vpop.f32.mrf.mxu1 }
0x2fa9   :  { %v3069_v2 = vpop.f32.mrf.mxu1 }
0x2fab   :  { %v5075_v59 = vpop.f32.mrf.mxu1 }
0x2fb5   :  { %v3234_v62 = vpop.f32.mrf.mxu1 }
0x2fb6   :  { %v3235_v42 = vadd.f32 %v6612_v48, %v3234_v62 }
0x2fb7   :  { %v5094_v63 = vpop.f32.mrf.mxu1 }
0x2fb8   :  { %5446 = vtanh.f32 %v3235_v42  ;;  %v4600_v22 = vmul.f32 -1.442695, %v3235_v42 }
0x2fb9   :  { %v3237_v5 = vpop.f32.mrf.mxu1 }
0x2fba   :  { %5448 = vpow2.f32 %v4600_v22  ;;  %v4602_v5 = vld [vmem:[%s7165_s1 + $0xa] sm:$0x3] }
0x2fbb   :  { %v5095_v10 = vpop.f32.mrf.mxu1 }
0x2fc5   :  { %v5447_v4 = vpop.eup %5446 }
0x2fc6   :  { %3249 = vrot.lane.b32.xlu0 %v5447_v4, %s5598_s22 }
0x2fc7   :  { %v5449_v13 = vpop.eup %5448 }
0x2fc8   :  { %v3243_v56 = vadd.f32 1.0, %v5449_v13 }
0x2fca   :  { %5450 = vrcp.f32 %v3243_v56 }
0x2fd7   :  { %v5451_v0 = vpop.eup %5450 }
0x2fd8   :  { %v3247_v38 = vmul.f32 %v5451_v0, %v6621_v23  ;;  %v6734_v23 = vld [vmem:[%s7173_s9 + $0x10] sm:$0xff]  }
0x3038   :  { %v3250_v14 = vpop.permute.xlu0 %3249 }
0x3039   :  { %v3252_v55 = vmul.f32 %v5451_v0, %v3250_v14 }
0x303b   :  { %3254 = vrot.lane.b32.xlu1 %v3252_v55, %s5599_s23 }
0x303f   :  { %3463 = vrot.lane.b32.xlu1 %v3461_v6, %s5599_s23 }
0x30ad   :  { %v3255_v57 = vpop.permute.xlu1 %3254 }
0x30ae   :  { %v6718_v3 = vadd.f32 %v3255_v57, %v3247_v38 }
0x30b0   :  { %5452 = vtanh.f32 %v6718_v3 }
0x30b1   :  { %v3464_v16 = vpop.permute.xlu1 %3463 }
0x30b2   :  { %5113 = vmatmul.mubr.msk.bf16.vlgmr.msra.gmra.mxu1 %vm88_vm3, %v3464_v16 }
0x30b3   :  { %5129 = vmatpush3.bf16.msra.mxu1 %v6725_v45  ;;  %5136 = vmatprep.mubr.msk.bf16.mxu1 %vm5596_vm0, %v5595_v1 }
0x30b4   :  { %5130 = vmatprep.subr.bf16.mxu1 %v5595_v1 }
0x30b7   :  { %5131 = vmatpush3.bf16.msra.mxu1 %v6734_v23 }
0x30b8   :  { %5132 = vmatprep.subr.bf16.mxu1 %v5595_v1 }
0x30bb   :  { %5133 = vmatpush3.bf16.msra.mxu1 %v6741_v18 }
0x30bc   :  { %5134 = vmatprep.subr.bf16.mxu1 %v5595_v1 }
0x30bd   :  { %v5453_v21 = vpop.eup %5452 }
0x30be   :  { %3260 = vrot.lane.b32.xlu0 %v5453_v21, %s5598_s22 }
0x30bf   :  { %5135 = vmatpush3.bf16.msra.mxu1 %v6749_v26 }
0x30c0   :  { %5148 = vmatprep.subr.bf16.mxu1 %v5595_v1 }
0x3130   :  { %v3261_v33 = vpop.permute.xlu0 %3260 }
0x3131   :  { %v6753_v27 = vmul.f32 %v5451_v0, %v3261_v33 }
0x3133   :  { %v3271_v47 = vrot.slane %v6753_v27, %v6133_v8 }
0x3135   :  { %v3272_v43 = vcombine.high %v3271_v47, %v3271_v47  ;;  %v3279_v28 = vrot.slane %v3271_v47, %v6133_v8 }
0x3137   :  { %v3286_v41 = vrot.slane %v3272_v43, %v6133_v8  ;;  %v3290_v29 = vrot.slane %v3279_v28, %v6158_v15 }
0x3139   :  { %3295 = vrot.lane.b32.xlu0 %v3290_v29, %s5599_s23  ;;  %v3294_v30 = vrot.slane %v3286_v41, %v6158_v15 }
0x313b   :  { %3297 = vrot.lane.b32.xlu1 %v3294_v30, %s5599_s23 }
0x3172   :  { %v3502_v32 = vpop.f32.mrf.mxu1 }
0x3173   :  { %v3508_v10 = vadd.f32 %v4602_v5, %v3502_v32 }
0x3174   :  { %v5114_v46 = vpop.f32.mrf.mxu1 }
0x3175   :  { %5454 = vtanh.f32 %v3508_v10  ;;  %v4604_v22 = vmul.f32 -1.442695, %v3508_v10 }
0x3176   :  { %v3505_v35 = vpop.f32.mrf.mxu1 }
0x3177   :  { %5456 = vpow2.f32 %v4604_v22 }
0x3178   :  { %v5115_v50 = vpop.f32.mrf.mxu1 }
0x3182   :  { %v5455_v4 = vpop.eup %5454 }
0x3184   :  { %v5457_v14 = vpop.eup %5456 }
0x3185   :  { %v3512_v55 = vadd.f32 1.0, %v5457_v14 }
0x31ab   :  { %v3296_v39 = vpop.permute.xlu0 %3295 }
0x31ac   :  { %v3301_v54 = vmul.f32 %v6674_v25, %v3296_v39 }
0x31ad   :  { %v3298_v52 = vpop.permute.xlu1 %3297 }
0x31ae   :  { %v3302_v44 = vmul.f32 %v6671_v24, %v3298_v52  ;;  %v3303_v53 = vsel %vm88_vm3, %v3301_v54, 0.0 }
0x31af   :  { %3304 = vadd.xlane.f32.xlu0 %v3303_v53 }
0x31b0   :  { %v3306_v9 = vsel %vm88_vm3, %v3302_v44, 0.0 }
0x31b1   :  { %3307 = vadd.xlane.f32.xlu1 %v3306_v9 }
0x3238   :  { %v3305_v51 = vpop.xlane.xlu0 %3304 }
0x3239   :  { %v3314_v2 = vrot.slane %v3305_v51, %v6291_v61 }
0x323a   :  { %v3308_v58 = vpop.xlane.xlu1 %3307 }
0x323b   :  { %v3318_v59 = vrot.slane %v3308_v58, %v6291_v61 }
0x323d   :  { %v3319_v62 = vsel %vm1899_vm6, %v3318_v59, %v3314_v2 }
0x323e   :  { %v3321_v42 = vsel %vm6298_vm8, %v3319_v62, -1e+30 }
0x323f   :  { %v3322_v63 = vsel %vm1903_vm7, %v3321_v42, -inf }
0x3240   :  { %3323 = vmax.xlane.f32.xlu0 %v3322_v63 }
0x3256   :  { %3518 = vrot.lane.b32.xlu0 %v5455_v4, %s5598_s22 }
0x32c9   :  { %v3324_v13 = vpop.xlane.xlu0 %3323 }
0x32ca   :  { %v3325_v56 = vsub.f32 %v3321_v42, %v3324_v13 }
0x32cc   :  { %v3326_v0 = vmul.f32 1.442695, %v3325_v56 }
0x32cd   :  { %v3519_v57 = vpop.permute.xlu0 %3518 }
0x32ce   :  { %5458 = vpow2.f32 %v3326_v0 }
0x32cf   :  { %5460 = vrcp.f32 %v3512_v55 }
0x32db   :  { %v5459_v6 = vpop.eup %5458 }
0x32dc   :  { %v3328_v38 = vsel %vm1903_vm7, %v5459_v6, 0.0  ;;  %v5461_v16 = vpop.eup %5460 }
0x32dd   :  { %3329 = vadd.xlane.f32.xlu1 %v3328_v38  ;;  %v3521_v21 = vmul.f32 %v5461_v16, %v3519_v57  ;;  %v3516_v47 = vmul.f32 %v5461_v16, %v6663_v12 }
0x32ee   :  { %3523 = vrot.lane.b32.xlu1 %v3521_v21, %s5599_s23 }
0x3366   :  { %v3330_v33 = vpop.xlane.xlu1 %3329 }
0x3367   :  { %5462 = vrcp.f32 %v3330_v33 }
0x336a   :  { %v3524_v43 = vpop.permute.xlu1 %3523 }
0x336b   :  { %v6780_v28 = vadd.f32 %v3524_v43, %v3516_v47 }
0x336d   :  { %5464 = vtanh.f32 %v6780_v28 }
0x3374   :  { %v5463_v41 = vpop.eup %5462 }
0x3375   :  { %v3332_v29 = vmul.f32 %v5463_v41, %v5459_v6 }
0x3377   :  { %v3336_v30 = vrot.slane %v3332_v29, %v6158_v15  ;;  %v3343_v32 = vrot.slane %v3332_v29, %v6315_v34 }
0x3379   :  { %3338 = vbcast.lane.b32.xlu0 %v3336_v30, 256  ;;  %3345 = vbcast.lane.b32.xlu1 %v3343_v32, 256 }
0x337a   :  { %v5465_v46 = vpop.eup %5464 }
0x337d   :  { %3363 = vrot.lane.b32.xlu1 %v6753_v27, %s5599_s23  ;;  %3529 = vrot.lane.b32.xlu0 %v5465_v46, %s5598_s22 }
0x33eb   :  { %v3339_v12 = vpop.permute.xlu0 %3338  ;;  %v3346_v35 = vpop.permute.xlu1 %3345 }
0x33ec   :  { %v3347_v50 = vmul.f32 %v6674_v25, %v3339_v12  ;;  %v3348_v39 = vmul.f32 %v6671_v24, %v3346_v35 }
0x33ee   :  { %v3349_v54 = vsel %vm88_vm3, %v3347_v50, 0.0  ;;  %v3356_v52 = vsel %vm88_vm3, %v3348_v39, 0.0 }
0x33ef   :  { %v3350_v44 = vrot.slane %v3349_v54, 4  ;;  %v3357_v53 = vrot.slane %v3356_v52, 4  ;;  %v3364_v9 = vpop.permute.xlu1 %3363  ;;  %v3530_v51 = vpop.permute.xlu0 %3529 }
0x33f0   :  { %3366 = vst.msk [vmem:[#allocation3] sm:$0x3] %vm161_vm1, %v3364_v9  ;;  %v6793_v58 = vmul.f32 %v5461_v16, %v3530_v51 }
0x33f1   :  { %v3351_v2 = vadd.f32 %v3350_v44, %v3349_v54  ;;  %v3358_v59 = vadd.f32 %v3357_v53, %v3356_v52 }
0x33f2   :  { %3534 = vrot.lane.b32.xlu1 %v6793_v58, %s5599_s23  ;;  %v3808_v54 = vpack.c.bf16 %v6793_v58, %v6793_v58 }
0x33f3   :  { %v3352_v62 = vrot.slane %v3351_v2, 2  ;;  %v3359_v42 = vrot.slane %v3358_v59, 2 }
0x33f5   :  { %v3353_v63 = vadd.f32 %v3352_v62, %v3351_v2  ;;  %v3360_v5 = vadd.f32 %v3359_v42, %v3358_v59 }
0x33f7   :  { %v3354_v10 = vrot.slane %v3353_v63, 1  ;;  %v3361_v4 = vrot.slane %v3360_v5, 1 }
0x33f9   :  { %v3355_v22 = vadd.f32 %v3354_v10, %v3353_v63  ;;  %v3362_v13 = vadd.f32 %v3361_v4, %v3360_v5 }
0x33fb   :  { %v3369_v56 = vsel %vm1899_vm6, %v3362_v13, %v3355_v22 }
0x33fc   :  { %3370 = vrot.lane.b32.xlu0 %v3369_v56, %s5599_s23 }
0x3400   :  { %3538 = vrot.lane.b32.xlu0 %v6753_v27, %s5598_s22 }
0x3464   :  { %v3535_v14 = vpop.permute.xlu1 %3534 }
0x346e   :  { %v3371_v0 = vpop.permute.xlu0 %3370 }
0x346f   :  { %3373 = vst.msk [vmem:[#allocation3] sm:$0x3] %vm163_vm2, %v3371_v0 }
0x3472   :  { %v3539_v6 = vpop.permute.xlu0 %3538 }
0x3476   :  { %v3374_v55 = vld [vmem:[#allocation3] sm:$0x3] }
0x3477   :  { %v3375_v38 = vpack.c.bf16 %v3374_v55, %v3374_v55  ;;  %3537 = vst.msk [vmem:[#allocation3] sm:$0x3] %vm161_vm1, %v3535_v14 }
0x3478   :  { %3541 = vst.msk [vmem:[#allocation3] sm:$0x3] %vm163_vm2, %v3539_v6 }
0x3479   :  { %5105 = vmatmul.mubr.msk.bf16.vlgmr.msra.gmra.mxu0 %vm197_vm4, %v3375_v38 }
0x347a   :  { %5117 = vmatpush3.bf16.msra.mxu0 %v6573_v49  ;;  %5124 = vmatprep.mubr.msk.bf16.mxu0 %vm5596_vm0, %v5595_v1 }
0x347b   :  { %5118 = vmatprep.subr.bf16.mxu0 %v5595_v1 }
0x347e   :  { %5119 = vmatpush3.bf16.msra.mxu0 %v6582_v60 }
0x347f   :  { %5120 = vmatprep.subr.bf16.mxu0 %v5595_v1  ;;  %v3542_v27 = vld [vmem:[#allocation3] sm:$0x3] }
0x3480   :  { %v3543_v57 = vpack.c.bf16 %v3542_v27, %v3542_v27 }
0x3482   :  { %5121 = vmatpush3.bf16.msra.mxu0 %v6589_v11 }
0x3483   :  { %5122 = vmatprep.subr.bf16.mxu0 %v5595_v1 }
0x3486   :  { %5123 = vmatpush3.bf16.msra.mxu0 %v6596_v7 }
0x3487   :  { %5140 = vmatprep.subr.bf16.mxu0 %v5595_v1 }
0x3489   :  { %5125 = vmatmul.mubr.msk.bf16.vlgmr.msra.gmra.mxu0 %vm197_vm4, %v3543_v57 }
0x348a   :  { %5141 = vmatpush3.bf16.msra.mxu0 %v6481_v36  ;;  %5144 = vmatprep.mubr.msk.bf16.mxu0 %vm5596_vm0, %v5595_v1 }
0x348b   :  { %5142 = vmatprep.subr.bf16.mxu0 %v5595_v1 }
0x348e   :  { %5143 = vmatpush3.bf16.msra.mxu0 %v6490_v37 }
0x348f   :  { %5160 = vmatprep.subr.bf16.mxu0 %v5595_v1 }
0x3539   :  { %v6822_v16 = vpop.f32.mrf.mxu0 }
0x353b   :  { %v5106_v21 = vpop.f32.mrf.mxu0 }
0x353d   :  { %v3416_v33 = vpop.f32.mrf.mxu0 }
0x353f   :  { %v5107_v47 = vpop.f32.mrf.mxu0 }
0x3549   :  { %v3581_v43 = vpop.f32.mrf.mxu0 }
0x354a   :  { %v3582_v41 = vadd.f32 %v6612_v48, %v3581_v43 }
0x354b   :  { %v5126_v29 = vpop.f32.mrf.mxu0 }
0x354c   :  { %5466 = vtanh.f32 %v3582_v41  ;;  %v4606_v46 = vmul.f32 -1.442695, %v3582_v41  ;;  %v4608_v29 = vld [vmem:[%s7165_s1 + $0xc] sm:$0x3] }
0x354d   :  { %v3584_v36 = vpop.f32.mrf.mxu0 }
0x354e   :  { %5468 = vpow2.f32 %v4606_v46 }
0x354f   :  { %v5127_v30 = vpop.f32.mrf.mxu0 }
0x3559   :  { %v5467_v32 = vpop.eup %5466 }
0x355a   :  { %3596 = vrot.lane.b32.xlu1 %v5467_v32, %s5598_s22 }
0x355b   :  { %v5469_v37 = vpop.eup %5468 }
0x355c   :  { %v3590_v12 = vadd.f32 1.0, %v5469_v37 }
0x355e   :  { %5470 = vrcp.f32 %v3590_v12 }
0x356b   :  { %v5471_v35 = vpop.eup %5470 }
0x356c   :  { %v3594_v52 = vmul.f32 %v5471_v35, %v6718_v3 }
0x35cc   :  { %v3597_v50 = vpop.permute.xlu1 %3596 }
0x35cd   :  { %v3599_v39 = vmul.f32 %v5471_v35, %v3597_v50 }
0x35cf   :  { %3601 = vrot.lane.b32.xlu0 %v3599_v39, %s5599_s23 }
0x35d3   :  { %3810 = vrot.lane.b32.xlu0 %v3808_v54, %s5599_s23 }
0x3641   :  { %v3602_v44 = vpop.permute.xlu0 %3601 }
0x3642   :  { %v6831_v53 = vadd.f32 %v3602_v44, %v3594_v52 }
0x3644   :  { %5472 = vtanh.f32 %v6831_v53 }
0x3645   :  { %v3811_v9 = vpop.permute.xlu0 %3810 }
0x3646   :  { %5145 = vmatmul.mubr.msk.bf16.vlgmr.msra.gmra.mxu0 %vm88_vm3, %v3811_v9 }
0x3647   :  { %5161 = vmatpush3.bf16.msra.mxu0 %v6725_v45  ;;  %5168 = vmatprep.mubr.msk.bf16.mxu0 %vm5596_vm0, %v5595_v1 }
0x3648   :  { %5162 = vmatprep.subr.bf16.mxu0 %v5595_v1 }
0x364b   :  { %5163 = vmatpush3.bf16.msra.mxu0 %v6734_v23 }
0x364c   :  { %5164 = vmatprep.subr.bf16.mxu0 %v5595_v1 }
0x364f   :  { %5165 = vmatpush3.bf16.msra.mxu0 %v6741_v18 }
0x3650   :  { %5166 = vmatprep.subr.bf16.mxu0 %v5595_v1 }
0x3651   :  { %v5473_v3 = vpop.eup %5472 }
0x3652   :  { %3607 = vrot.lane.b32.xlu1 %v5473_v3, %s5598_s22 }
0x3653   :  { %5167 = vmatpush3.bf16.msra.mxu0 %v6749_v26 }
0x3654   :  { %5180 = vmatprep.subr.bf16.mxu0 %v5595_v1 }
0x36c4   :  { %v3608_v51 = vpop.permute.xlu1 %3607 }
0x36c5   :  { %v6846_v58 = vmul.f32 %v5471_v35, %v3608_v51 }
0x36c7   :  { %v3618_v2 = vrot.slane %v6846_v58, %v6133_v8 }
0x36c9   :  { %v3619_v59 = vcombine.high %v3618_v2, %v3618_v2  ;;  %v3626_v62 = vrot.slane %v3618_v2, %v6133_v8 }
0x36cb   :  { %v3633_v42 = vrot.slane %v3619_v59, %v6133_v8  ;;  %v3637_v63 = vrot.slane %v3626_v62, %v6158_v15 }
0x36cd   :  { %3642 = vrot.lane.b32.xlu1 %v3637_v63, %s5599_s23  ;;  %v3641_v5 = vrot.slane %v3633_v42, %v6158_v15 }
0x36cf   :  { %3644 = vrot.lane.b32.xlu0 %v3641_v5, %s5599_s23 }
0x3706   :  { %v3849_v10 = vpop.f32.mrf.mxu0 }
0x3707   :  { %v3855_v36 = vadd.f32 %v4608_v29, %v3849_v10 }
0x3708   :  { %v5146_v4 = vpop.f32.mrf.mxu0 }
0x3709   :  { %5474 = vtanh.f32 %v3855_v36  ;;  %v4610_v32 = vmul.f32 -1.442695, %v3855_v36 }
0x370a   :  { %v3852_v22 = vpop.f32.mrf.mxu0 }
0x370b   :  { %5476 = vpow2.f32 %v4610_v32 }
0x370c   :  { %v5147_v13 = vpop.f32.mrf.mxu0 }
0x3716   :  { %v5475_v30 = vpop.eup %5474 }
0x3718   :  { %v5477_v35 = vpop.eup %5476 }
0x3719   :  { %v3859_v50 = vadd.f32 1.0, %v5477_v35 }
0x373f   :  { %v3643_v56 = vpop.permute.xlu1 %3642 }
0x3740   :  { %v3648_v0 = vmul.f32 %v6674_v25, %v3643_v56 }
0x3741   :  { %v3645_v14 = vpop.permute.xlu0 %3644 }
0x3742   :  { %v3649_v55 = vmul.f32 %v6671_v24, %v3645_v14  ;;  %v3650_v6 = vsel %vm88_vm3, %v3648_v0, 0.0 }
0x3743   :  { %3651 = vadd.xlane.f32.xlu1 %v3650_v6 }
0x3744   :  { %v3653_v38 = vsel %vm88_vm3, %v3649_v55, 0.0 }
0x3745   :  { %3654 = vadd.xlane.f32.xlu0 %v3653_v38 }
0x37cc   :  { %v3652_v27 = vpop.xlane.xlu1 %3651 }
0x37cd   :  { %v3661_v21 = vrot.slane %v3652_v27, %v6291_v61 }
0x37ce   :  { %v3655_v57 = vpop.xlane.xlu0 %3654 }
0x37cf   :  { %v3665_v33 = vrot.slane %v3655_v57, %v6291_v61 }
0x37d1   :  { %v3666_v47 = vsel %vm1899_vm6, %v3665_v33, %v3661_v21 }
0x37d2   :  { %v3668_v43 = vsel %vm6298_vm8, %v3666_v47, -1e+30 }
0x37d3   :  { %v3669_v41 = vsel %vm1903_vm7, %v3668_v43, -inf }
0x37d4   :  { %3670 = vmax.xlane.f32.xlu0 %v3669_v41 }
0x37ea   :  { %3865 = vrot.lane.b32.xlu0 %v5475_v30, %s5598_s22 }
0x385d   :  { %v3671_v46 = vpop.xlane.xlu0 %3670 }
0x385e   :  { %v3672_v37 = vsub.f32 %v3668_v43, %v3671_v46 }
0x3860   :  { %v3673_v12 = vmul.f32 1.442695, %v3672_v37 }
0x3861   :  { %v3866_v52 = vpop.permute.xlu0 %3865 }
0x3862   :  { %5478 = vpow2.f32 %v3673_v12 }
0x3863   :  { %5480 = vrcp.f32 %v3859_v50 }
0x386f   :  { %v5479_v39 = vpop.eup %5478 }
0x3870   :  { %v3675_v54 = vsel %vm1903_vm7, %v5479_v39, 0.0  ;;  %v5481_v44 = vpop.eup %5480 }
0x3871   :  { %3676 = vadd.xlane.f32.xlu1 %v3675_v54  ;;  %v3868_v9 = vmul.f32 %v5481_v44, %v3866_v52  ;;  %v3863_v51 = vmul.f32 %v5481_v44, %v6780_v28 }
0x3882   :  { %3870 = vrot.lane.b32.xlu1 %v3868_v9, %s5599_s23 }
0x38fa   :  { %v3677_v3 = vpop.xlane.xlu1 %3676 }
0x38fb   :  { %5482 = vrcp.f32 %v3677_v3 }
0x38fe   :  { %v3871_v2 = vpop.permute.xlu1 %3870 }
0x38ff   :  { %v6873_v59 = vadd.f32 %v3871_v2, %v3863_v51 }
0x3901   :  { %5484 = vtanh.f32 %v6873_v59 }
0x3908   :  { %v5483_v62 = vpop.eup %5482 }
0x3909   :  { %v3679_v42 = vmul.f32 %v5483_v62, %v5479_v39 }
0x390b   :  { %v3690_v63 = vrot.slane %v3679_v42, %v6315_v34  ;;  %v3683_v5 = vrot.slane %v3679_v42, %v6158_v15 }
0x390d   :  { %3692 = vbcast.lane.b32.xlu0 %v3690_v63, 256  ;;  %3685 = vbcast.lane.b32.xlu1 %v3683_v5, 256 }
0x390e   :  { %v5485_v10 = vpop.eup %5484 }
0x3911   :  { %3710 = vrot.lane.b32.xlu0 %v6846_v58, %s5599_s23  ;;  %3876 = vrot.lane.b32.xlu1 %v5485_v10, %s5598_s22 }
0x397f   :  { %v3693_v28 = vpop.permute.xlu0 %3692  ;;  %v3686_v4 = vpop.permute.xlu1 %3685 }
0x3980   :  { %v3695_v22 = vmul.f32 %v6671_v24, %v3693_v28  ;;  %v3694_v13 = vmul.f32 %v6674_v25, %v3686_v4 }
0x3982   :  { %v3703_v56 = vsel %vm88_vm3, %v3695_v22, 0.0  ;;  %v3696_v0 = vsel %vm88_vm3, %v3694_v13, 0.0 }
0x3983   :  { %v3704_v14 = vrot.slane %v3703_v56, 4  ;;  %v3697_v55 = vrot.slane %v3696_v0, 4  ;;  %v3711_v6 = vpop.permute.xlu0 %3710  ;;  %v3877_v38 = vpop.permute.xlu1 %3876 }
0x3984   :  { %3713 = vst.msk [vmem:[#allocation3] sm:$0x3] %vm161_vm1, %v3711_v6  ;;  %v6886_v27 = vmul.f32 %v5481_v44, %v3877_v38 }
0x3985   :  { %v3705_v57 = vadd.f32 %v3704_v14, %v3703_v56  ;;  %v3698_v21 = vadd.f32 %v3697_v55, %v3696_v0 }
0x3986   :  { %3881 = vrot.lane.b32.xlu0 %v6886_v27, %s5599_s23 }
0x3987   :  { %v3706_v33 = vrot.slane %v3705_v57, 2  ;;  %v3699_v47 = vrot.slane %v3698_v21, 2 }
0x3989   :  { %v3707_v43 = vadd.f32 %v3706_v33, %v3705_v57  ;;  %v3700_v41 = vadd.f32 %v3699_v47, %v3698_v21 }
0x398b   :  { %v3708_v29 = vrot.slane %v3707_v43, 1  ;;  %v3701_v36 = vrot.slane %v3700_v41, 1 }
0x398d   :  { %v3709_v30 = vadd.f32 %v3708_v29, %v3707_v43  ;;  %v3702_v32 = vadd.f32 %v3701_v36, %v3700_v41 }
0x398f   :  { %v3716_v46 = vsel %vm1899_vm6, %v3709_v30, %v3702_v32 }
0x3990   :  { %3717 = vrot.lane.b32.xlu1 %v3716_v46, %s5599_s23 }
0x3994   :  { %3885 = vrot.lane.b32.xlu1 %v6846_v58, %s5598_s22 }
0x39f8   :  { %v3882_v12 = vpop.permute.xlu0 %3881 }
0x3a02   :  { %v3718_v37 = vpop.permute.xlu1 %3717 }
0x3a03   :  { %3720 = vst.msk [vmem:[#allocation3] sm:$0x3] %vm163_vm2, %v3718_v37 }
0x3a06   :  { %v3886_v50 = vpop.permute.xlu1 %3885 }
0x3a0a   :  { %v3721_v35 = vld [vmem:[#allocation3] sm:$0x3] }
0x3a0b   :  { %v3722_v39 = vpack.c.bf16 %v3721_v35, %v3721_v35  ;;  %3884 = vst.msk [vmem:[#allocation3] sm:$0x3] %vm161_vm1, %v3882_v12 }
0x3a0c   :  { %3888 = vst.msk [vmem:[#allocation3] sm:$0x3] %vm163_vm2, %v3886_v50 }
0x3a0d   :  { %5137 = vmatmul.mubr.msk.bf16.vlgmr.msra.gmra.mxu1 %vm197_vm4, %v3722_v39 }
0x3a0e   :  { %5149 = vmatpush3.bf16.msra.mxu1 %v6573_v49  ;;  %5156 = vmatprep.mubr.msk.bf16.mxu1 %vm5596_vm0, %v5595_v1  ;;  %v5564_v49 = vld [vmem:[%s7170_s6 + $0x8] sm:$0xff]  }
0x3a0f   :  { %5150 = vmatprep.subr.bf16.mxu1 %v5595_v1 }
0x3a12   :  { %5151 = vmatpush3.bf16.msra.mxu1 %v6582_v60  ;;  %v5565_v60 = vld [vmem:[%s7170_s6] sm:$0xff]  }
0x3a13   :  { %5152 = vmatprep.subr.bf16.mxu1 %v5595_v1  ;;  %v3889_v58 = vld [vmem:[#allocation3] sm:$0x3] }
0x3a14   :  { %v3890_v54 = vpack.c.bf16 %v3889_v58, %v3889_v58 }
0x3a16   :  { %5153 = vmatpush3.bf16.msra.mxu1 %v6589_v11 }
0x3a17   :  { %5154 = vmatprep.subr.bf16.mxu1 %v5595_v1 }
0x3a1a   :  { %5155 = vmatpush3.bf16.msra.mxu1 %v6596_v7 }
0x3a1b   :  { %5172 = vmatprep.subr.bf16.mxu1 %v5595_v1 }
0x3a1d   :  { %5157 = vmatmul.mubr.msk.bf16.vlgmr.msra.gmra.mxu1 %vm197_vm4, %v3890_v54  ;;  %v4614_v54 = vld [vmem:[%s7165_s1 + $0xe] sm:$0x3] }
0x3a1e   :  { %5173 = vmatpush3.bf16.msra.mxu1 %v5564_v49  ;;  %5176 = vmatprep.mubr.msk.bf16.mxu1 %vm5596_vm0, %v5595_v1 }
0x3a1f   :  { %5174 = vmatprep.subr.bf16.mxu1 %v5595_v1 }
0x3a22   :  { %5175 = vmatpush3.bf16.msra.mxu1 %v5565_v60 }
0x3a23   :  { %5192 = vmatprep.subr.bf16.mxu1 %v5595_v1 }
0x3acd   :  { %v6919_v11 = vpop.f32.mrf.mxu1 }
0x3acf   :  { %v5138_v7 = vpop.f32.mrf.mxu1 }
0x3ad1   :  { %v3763_v52 = vpop.f32.mrf.mxu1 }
0x3ad3   :  { %v5139_v44 = vpop.f32.mrf.mxu1 }
0x3add   :  { %v3928_v9 = vpop.f32.mrf.mxu1 }
0x3ade   :  { %v3929_v3 = vadd.f32 %v6612_v48, %v3928_v9  ;;  %v4155_v48 = vpack.c.bf16 %v6886_v27, %v6886_v27 }
0x3adf   :  { %v5158_v51 = vpop.f32.mrf.mxu1 }
0x3ae0   :  { %5486 = vtanh.f32 %v3929_v3  ;;  %v4612_v63 = vmul.f32 -1.442695, %v3929_v3 }
0x3ae1   :  { %v3931_v2 = vpop.f32.mrf.mxu1 }
0x3ae2   :  { %5488 = vpow2.f32 %v4612_v63 }
0x3ae3   :  { %v5159_v62 = vpop.f32.mrf.mxu1 }
0x3aed   :  { %v5487_v42 = vpop.eup %5486 }
0x3aee   :  { %3943 = vrot.lane.b32.xlu0 %v5487_v42, %s5598_s22 }
0x3aef   :  { %v5489_v5 = vpop.eup %5488 }
0x3af0   :  { %v3937_v10 = vadd.f32 1.0, %v5489_v5 }
0x3af2   :  { %5490 = vrcp.f32 %v3937_v10 }
0x3aff   :  { %v5491_v28 = vpop.eup %5490 }
0x3b00   :  { %v3941_v13 = vmul.f32 %v5491_v28, %v6831_v53 }
0x3b60   :  { %v3944_v4 = vpop.permute.xlu0 %3943 }
0x3b61   :  { %v3946_v22 = vmul.f32 %v5491_v28, %v3944_v4 }
0x3b63   :  { %3948 = vrot.lane.b32.xlu1 %v3946_v22, %s5599_s23 }
0x3b67   :  { %4157 = vrot.lane.b32.xlu1 %v4155_v48, %s5599_s23 }
0x3bd5   :  { %v3949_v56 = vpop.permute.xlu1 %3948 }
0x3bd6   :  { %v6928_v0 = vadd.f32 %v3949_v56, %v3941_v13 }
0x3bd8   :  { %5492 = vtanh.f32 %v6928_v0 }
0x3bd9   :  { %v4158_v14 = vpop.permute.xlu1 %4157 }
0x3bda   :  { %5177 = vmatmul.mubr.msk.bf16.vlgmr.msra.gmra.mxu1 %vm88_vm3, %v4158_v14 }
0x3bdb   :  { %5193 = vmatpush3.bf16.msra.mxu1 %v6725_v45  ;;  %5200 = vmatprep.mubr.msk.bf16.mxu1 %vm5596_vm0, %v5595_v1 }
0x3bdc   :  { %5194 = vmatprep.subr.bf16.mxu1 %v5595_v1 }
0x3bdf   :  { %5195 = vmatpush3.bf16.msra.mxu1 %v6734_v23 }
0x3be0   :  { %5196 = vmatprep.subr.bf16.mxu1 %v5595_v1 }
0x3be3   :  { %5197 = vmatpush3.bf16.msra.mxu1 %v6741_v18 }
0x3be4   :  { %5198 = vmatprep.subr.bf16.mxu1 %v5595_v1 }
0x3be5   :  { %v5493_v53 = vpop.eup %5492 }
0x3be6   :  { %3954 = vrot.lane.b32.xlu0 %v5493_v53, %s5598_s22 }
0x3be7   :  { %5199 = vmatpush3.bf16.msra.mxu1 %v6749_v26 }
0x3c58   :  { %v3955_v55 = vpop.permute.xlu0 %3954 }
0x3c59   :  { %v6942_v45 = vmul.f32 %v5491_v28, %v3955_v55 }
0x3c5b   :  { %v3965_v6 = vrot.slane %v6942_v45, %v6133_v8 }
0x3c5d   :  { %v3966_v38 = vcombine.high %v3965_v6, %v3965_v6  ;;  %v3973_v23 = vrot.slane %v3965_v6, %v6133_v8 }
0x3c5f   :  { %v3980_v27 = vrot.slane %v3966_v38, %v6133_v8  ;;  %v3984_v18 = vrot.slane %v3973_v23, %v6158_v15 }
0x3c61   :  { %3989 = vrot.lane.b32.xlu0 %v3984_v18, %s5599_s23  ;;  %v3988_v57 = vrot.slane %v3980_v27, %v6158_v15 }
0x3c63   :  { %3991 = vrot.lane.b32.xlu1 %v3988_v57, %s5599_s23 }
0x3c9a   :  { %v4196_v26 = vpop.f32.mrf.mxu1 }
0x3c9b   :  { %v4202_v49 = vadd.f32 %v4614_v54, %v4196_v26  ;;  %v5566_v54 = vld [vmem:[%s7171_s7 + $0x18] sm:$0xff]  }
0x3c9c   :  { %v5178_v21 = vpop.f32.mrf.mxu1 }
0x3c9d   :  { %5494 = vtanh.f32 %v4202_v49  ;;  %v4616_v7 = vmul.f32 -1.442695, %v4202_v49  ;;  %v5568_v49 = vld [vmem:[%s7171_s7 + $0x8] sm:$0xff]  }
0x3c9e   :  { %v4199_v33 = vpop.f32.mrf.mxu1 }
0x3c9f   :  { %5496 = vpow2.f32 %v4616_v7  ;;  %v5569_v7 = vld [vmem:[%s7171_s7] sm:$0xff]  }
0x3ca0   :  { %v5179_v47 = vpop.f32.mrf.mxu1 }
0x3caa   :  { %v5495_v60 = vpop.eup %5494 }
0x3cac   :  { %v5497_v3 = vpop.eup %5496 }
0x3cad   :  { %v4206_v51 = vadd.f32 1.0, %v5497_v3 }
0x3cd3   :  { %v3990_v43 = vpop.permute.xlu0 %3989 }
0x3cd4   :  { %v3995_v41 = vmul.f32 %v6674_v25, %v3990_v43 }
0x3cd5   :  { %v3992_v29 = vpop.permute.xlu1 %3991 }
0x3cd6   :  { %v3996_v36 = vmul.f32 %v6671_v24, %v3992_v29  ;;  %v3997_v30 = vsel %vm88_vm3, %v3995_v41, 0.0 }
0x3cd7   :  { %3998 = vadd.xlane.f32.xlu0 %v3997_v30 }
0x3cd8   :  { %v4000_v32 = vsel %vm88_vm3, %v3996_v36, 0.0 }
0x3cd9   :  { %4001 = vadd.xlane.f32.xlu1 %v4000_v32 }
0x3d60   :  { %v3999_v46 = vpop.xlane.xlu0 %3998 }
0x3d61   :  { %v4008_v12 = vrot.slane %v3999_v46, %v6291_v61 }
0x3d62   :  { %v4002_v37 = vpop.xlane.xlu1 %4001 }
0x3d63   :  { %v4012_v35 = vrot.slane %v4002_v37, %v6291_v61 }
0x3d65   :  { %v4013_v50 = vsel %vm1899_vm6, %v4012_v35, %v4008_v12 }
0x3d66   :  { %v4015_v39 = vsel %vm6298_vm8, %v4013_v50, -1e+30 }
0x3d67   :  { %v4016_v58 = vsel %vm1903_vm7, %v4015_v39, -inf }
0x3d68   :  { %4017 = vmax.xlane.f32.xlu0 %v4016_v58 }
0x3d7e   :  { %4212 = vrot.lane.b32.xlu0 %v5495_v60, %s5598_s22 }
0x3df1   :  { %v4018_v52 = vpop.xlane.xlu0 %4017 }
0x3df2   :  { %v4019_v44 = vsub.f32 %v4015_v39, %v4018_v52 }
0x3df4   :  { %v4020_v9 = vmul.f32 1.442695, %v4019_v44 }
0x3df5   :  { %v4213_v42 = vpop.permute.xlu0 %4212 }
0x3df6   :  { %5498 = vpow2.f32 %v4020_v9 }
0x3df7   :  { %5500 = vrcp.f32 %v4206_v51 }
0x3e03   :  { %v5499_v2 = vpop.eup %5498 }
0x3e04   :  { %v4022_v62 = vsel %vm1903_vm7, %v5499_v2, 0.0  ;;  %v5501_v63 = vpop.eup %5500 }
0x3e05   :  { %4023 = vadd.xlane.f32.xlu1 %v4022_v62  ;;  %v4215_v5 = vmul.f32 %v5501_v63, %v4213_v42  ;;  %v4210_v28 = vmul.f32 %v5501_v63, %v6873_v59  ;;  %v5570_v62 = vld [vmem:[%s7172_s8] ss:$0 sm:$0xff] }
0x3e16   :  { %4217 = vrot.lane.b32.xlu1 %v4215_v5, %s5599_s23 }
0x3e8e   :  { %v4024_v10 = vpop.xlane.xlu1 %4023 }
0x3e8f   :  { %5502 = vrcp.f32 %v4024_v10 }
0x3e92   :  { %v4218_v4 = vpop.permute.xlu1 %4217 }
0x3e93   :  { %v4220_v22 = vadd.f32 %v4218_v4, %v4210_v28 }
0x3e95   :  { %5504 = vtanh.f32 %v4220_v22 }
0x3e9c   :  { %v5503_v48 = vpop.eup %5502 }
0x3e9d   :  { %v4026_v13 = vmul.f32 %v5503_v48, %v5499_v2 }
0x3e9f   :  { %v4030_v56 = vrot.slane %v4026_v13, %v6158_v15  ;;  %v4037_v14 = vrot.slane %v4026_v13, %v6315_v34 }
0x3ea1   :  { %4032 = vbcast.lane.b32.xlu0 %v4030_v56, 256  ;;  %4039 = vbcast.lane.b32.xlu1 %v4037_v14, 256 }
0x3ea2   :  { %v5505_v53 = vpop.eup %5504 }
0x3ea5   :  { %4057 = vrot.lane.b32.xlu1 %v6942_v45, %s5599_s23  ;;  %4223 = vrot.lane.b32.xlu0 %v5505_v53, %s5598_s22 }
0x3f13   :  { %v4033_v55 = vpop.permute.xlu0 %4032  ;;  %v4040_v6 = vpop.permute.xlu1 %4039 }
0x3f14   :  { %v4041_v59 = vmul.f32 %v6674_v25, %v4033_v55  ;;  %v4042_v38 = vmul.f32 %v6671_v24, %v4040_v6 }
0x3f16   :  { %v4043_v23 = vsel %vm88_vm3, %v4041_v59, 0.0  ;;  %v4050_v27 = vsel %vm88_vm3, %v4042_v38, 0.0 }
0x3f17   :  { %v4044_v18 = vrot.slane %v4043_v23, 4  ;;  %v4051_v57 = vrot.slane %v4050_v27, 4  ;;  %v4058_v26 = vpop.permute.xlu1 %4057  ;;  %v4224_v21 = vpop.permute.xlu0 %4223 }
0x3f18   :  { %4060 = vst.msk [vmem:[#allocation3] sm:$0x3] %vm161_vm1, %v4058_v26  ;;  %v4226_v33 = vmul.f32 %v5501_v63, %v4224_v21 }
0x3f19   :  { %v4045_v47 = vadd.f32 %v4044_v18, %v4043_v23  ;;  %v4052_v43 = vadd.f32 %v4051_v57, %v4050_v27 }
0x3f1a   :  { %4228 = vrot.lane.b32.xlu1 %v4226_v33, %s5599_s23  ;;  %v5571_v33 = vld [vmem:[#allocation2] sm:$0xff] }
0x3f1b   :  { %v4046_v41 = vrot.slane %v4045_v47, 2  ;;  %v4053_v29 = vrot.slane %v4052_v43, 2 }
0x3f1d   :  { %v4047_v25 = vadd.f32 %v4046_v41, %v4045_v47  ;;  %v4054_v36 = vadd.f32 %v4053_v29, %v4052_v43  ;;  %v5572_v41 = vld [vmem:[#allocation2 + $0x8] sm:$0xff] }
0x3f1f   :  { %v4048_v24 = vrot.slane %v4047_v25, 1  ;;  %v4055_v30 = vrot.slane %v4054_v36, 1 }
0x3f21   :  { %v4049_v32 = vadd.f32 %v4048_v24, %v4047_v25  ;;  %v4056_v46 = vadd.f32 %v4055_v30, %v4054_v36 }
0x3f23   :  { %v4063_v37 = vsel %vm1899_vm6, %v4056_v46, %v4049_v32 }
0x3f24   :  { %4064 = vrot.lane.b32.xlu0 %v4063_v37, %s5599_s23 }
0x3f28   :  { %4232 = vrot.lane.b32.xlu0 %v6942_v45, %s5598_s22  ;;  %v5567_v45 = vld [vmem:[%s7171_s7 + $0x10] sm:$0xff]  }
0x3f8c   :  { %v4229_v35 = vpop.permute.xlu1 %4228 }
0x3f96   :  { %v4065_v12 = vpop.permute.xlu0 %4064 }
0x3f97   :  { %4067 = vst.msk [vmem:[#allocation3] sm:$0x3] %vm163_vm2, %v4065_v12 }
0x3f9a   :  { %v4233_v39 = vpop.permute.xlu0 %4232 }
0x3f9e   :  { %v4068_v50 = vld [vmem:[#allocation3] sm:$0x3] }
0x3f9f   :  { %v4069_v58 = vpack.c.bf16 %v4068_v50, %v4068_v50  ;;  %4231 = vst.msk [vmem:[#allocation3] sm:$0x3] %vm161_vm1, %v4229_v35 }
0x3fa0   :  { %4235 = vst.msk [vmem:[#allocation3] sm:$0x3] %vm163_vm2, %v4233_v39 }
0x3fa1   :  { %5169 = vmatmul.mubr.msk.bf16.vlgmr.msra.gmra.mxu0 %vm197_vm4, %v4069_v58 }
0x3fa2   :  { %5181 = vmatpush3.bf16.msra.mxu0 %v5566_v54  ;;  %5188 = vmatprep.mubr.msk.bf16.mxu0 %vm5596_vm0, %v5595_v1 }
0x3fa3   :  { %5182 = vmatprep.subr.bf16.mxu0 %v5595_v1 }
0x3fa6   :  { %5183 = vmatpush3.bf16.msra.mxu0 %v5567_v45 }
0x3fa7   :  { %5184 = vmatprep.subr.bf16.mxu0 %v5595_v1  ;;  %v4236_v60 = vld [vmem:[#allocation3] sm:$0x3] }
0x3fa8   :  { %v4237_v52 = vpack.c.bf16 %v4236_v60, %v4236_v60 }
0x3faa   :  { %5185 = vmatpush3.bf16.msra.mxu0 %v5568_v49 }
0x3fab   :  { %5186 = vmatprep.subr.bf16.mxu0 %v5595_v1 }
0x3fae   :  { %5187 = vmatpush3.bf16.msra.mxu0 %v5569_v7 }
0x3fb1   :  { %5189 = vmatmul.mubr.msk.bf16.vlgmr.msra.gmra.mxu0 %vm197_vm4, %v4237_v52  ;;  %v7037_v52 = vld [vmem:[%s7174_s10] ss:$0 sm:$0xff]  ;;  %s5601_s10 = smov [#allocation4]  }
0x4061   :  { %v7006_v44 = vpop.f32.mrf.mxu0 }
0x4063   :  { %v5170_v9 = vpop.f32.mrf.mxu0 }
0x4064   :  { %v7041_v9 = vadd.f32 %v7037_v52, %v6391_v17  ;;  %v7057_v17 = vadd.f32 %v7037_v52, %v6822_v16 }
0x4065   :  { %v4110_v3 = vpop.f32.mrf.mxu0 }
0x4066   :  { %v7045_v3 = vadd.f32 %v7037_v52, %v6607_v31 }
0x4067   :  { %v5171_v51 = vpop.f32.mrf.mxu0 }
0x4068   :  { %v2725_v51 = vsel %vm161_vm1, %v7045_v3, -inf }
0x4071   :  { %v4275_v2 = vpop.f32.mrf.mxu0 }
0x4072   :  { %v4276_v1 = vadd.f32 %v5570_v62, %v4275_v2  ;;  %v7063_v2 = vadd.f32 %v7037_v52, %v7006_v44 }
0x4073   :  { %v5190_v42 = vpop.f32.mrf.mxu0 }
0x4074   :  { %5506 = vtanh.f32 %v4276_v1  ;;  %v4618_v28 = vmul.f32 -1.442695, %v4276_v1  ;;  %v4113_v62 = vsel %vm161_vm1, %v7063_v2, -inf }
0x4075   :  { %v4278_v63 = vpop.f32.mrf.mxu0 }
0x4076   :  { %5508 = vpow2.f32 %v4618_v28 }
0x4077   :  { %v5191_v5 = vpop.f32.mrf.mxu0 }
0x4081   :  { %v5507_v10 = vpop.eup %5506 }
0x4082   :  { %4290 = vrot.lane.b32.xlu1 %v5507_v10, %s5598_s22 }
0x4083   :  { %v5509_v4 = vpop.eup %5508 }
0x4084   :  { %v4284_v22 = vadd.f32 1.0, %v5509_v4 }
0x4086   :  { %5510 = vrcp.f32 %v4284_v22 }
0x4093   :  { %v5511_v48 = vpop.eup %5510 }
0x4094   :  { %v4288_v14 = vmul.f32 %v5511_v48, %v6928_v0 }
0x40f4   :  { %v4291_v13 = vpop.permute.xlu1 %4290 }
0x40f5   :  { %v4293_v56 = vmul.f32 %v5511_v48, %v4291_v13 }
0x40f7   :  { %4295 = vrot.lane.b32.xlu0 %v4293_v56, %s5599_s23 }
0x4169   :  { %v4296_v53 = vpop.permute.xlu0 %4295 }
0x416a   :  { %v4298_v55 = vadd.f32 %v4296_v53, %v4288_v14 }
0x416c   :  { %5512 = vtanh.f32 %v4298_v55 }
0x4179   :  { %v5513_v6 = vpop.eup %5512 }
0x417a   :  { %4301 = vrot.lane.b32.xlu1 %v5513_v6, %s5598_s22  ;;  %s4505_s22 = sshll.u32 %s5601_s10, 4  ;;  %s4506_s22 = int_to_ptr.vmem [resolvable:$true] %s4505_s22 }
0x417b   :  { %p5578_p1 = scmp.lt.s32.totalorder %s4506_s22, %s4506_s22 }
0x41ec   :  { %v4302_v59 = vpop.permute.xlu1 %4301 }
0x41ed   :  { %v4304_v38 = vmul.f32 %v5511_v48, %v4302_v59 }
0x41ef   :  { %v4312_v23 = vrot.slane %v4304_v38, %v6133_v8 }
0x41f1   :  { %v4313_v27 = vcombine.high %v4312_v23, %v4312_v23  ;;  %v4320_v18 = vrot.slane %v4312_v23, %v6133_v8 }
0x41f3   :  { %v4327_v57 = vrot.slane %v4313_v27, %v6133_v8  ;;  %v4331_v26 = vrot.slane %v4320_v18, %v6158_v15  ;;  %v7076_v27 = vadd.f32 %v7037_v52, %v6494_v40  ;;  %v7080_v18 = vadd.f32 %v7037_v52, %v6919_v11 }
0x41f5   :  { %4336 = vrot.lane.b32.xlu0 %v4331_v26, %s5599_s23  ;;  %v4335_v0 = vrot.slane %v4327_v57, %v6158_v15  ;;  %v2378_v57 = vsel %vm161_vm1, %v7076_v27, -inf }
0x41f7   :  { %4338 = vrot.lane.b32.xlu1 %v4335_v0, %s5599_s23 }
0x4267   :  { %v4337_v21 = vpop.permute.xlu0 %4336 }
0x4268   :  { %v4342_v47 = vmul.f32 %v5571_v33, %v4337_v21  ;;  %v3766_v21 = vsel %vm161_vm1, %v7080_v18, -inf }
0x4269   :  { %v4339_v43 = vpop.permute.xlu1 %4338 }
0x426a   :  { %v4343_v29 = vmul.f32 %v5572_v41, %v4339_v43  ;;  %v4344_v25 = vsel %vm88_vm3, %v4342_v47, 0.0 }
0x426b   :  { %4345 = vadd.xlane.f32.xlu0 %v4344_v25 }
0x426c   :  { %v4347_v36 = vsel %vm88_vm3, %v4343_v29, 0.0 }
0x426d   :  { %4348 = vadd.xlane.f32.xlu1 %v4347_v36 }
0x42f4   :  { %v4346_v24 = vpop.xlane.xlu0 %4345 }
0x42f5   :  { %v4355_v32 = vrot.slane %v4346_v24, %v6291_v61 }
0x42f6   :  { %v4349_v30 = vpop.xlane.xlu1 %4348 }
0x42f7   :  { %v4359_v46 = vrot.slane %v4349_v30, %v6291_v61 }
0x42f9   :  { %v4360_v37 = vsel %vm1899_vm6, %v4359_v46, %v4355_v32 }
0x42fa   :  { %v4362_v12 = vsel %vm6298_vm8, %v4360_v37, -1e+30 }
0x42fb   :  { %v4363_v35 = vsel %vm1903_vm7, %v4362_v12, -inf }
0x42fc   :  { %4364 = vmax.xlane.f32.xlu0 %v4363_v35 }
0x4385   :  { %v4365_v50 = vpop.xlane.xlu0 %4364 }
0x4386   :  { %v4366_v39 = vsub.f32 %v4362_v12, %v4365_v50 }
0x4388   :  { %v4367_v58 = vmul.f32 1.442695, %v4366_v39 }
0x438a   :  { %5514 = vpow2.f32 %v4367_v58 }
0x4397   :  { %v5515_v54 = vpop.eup %5514 }
0x4398   :  { %v4369_v45 = vsel %vm1903_vm7, %v5515_v54, 0.0 }
0x4399   :  { %4370 = vadd.xlane.f32.xlu0 %v4369_v45 }
0x4422   :  { %v4371_v49 = vpop.xlane.xlu0 %4370 }
0x4423   :  { %5516 = vrcp.f32 %v4371_v49 }
0x4430   :  { %v5517_v60 = vpop.eup %5516 }
0x4431   :  { %v4373_v61 = vmul.f32 %v5517_v60, %v5515_v54 }
0x4433   :  { %v4384_v7 = vrot.slane %v4373_v61, %v6315_v34  ;;  %v4377_v20 = vrot.slane %v4373_v61, %v6158_v15  ;;  %v2031_v15 = vsel %vm161_vm1, %v7041_v9, -inf  ;;  %v7051_v34 = vadd.f32 %v7037_v52, %v6709_v19 }
0x4434   :  { %v3419_v19 = vsel %vm161_vm1, %v7057_v17, -inf }
0x4435   :  { %4386 = vbcast.lane.b32.xlu1 %v4384_v7, 256  ;;  %4379 = vbcast.lane.b32.xlu0 %v4377_v20, 256  ;;  %v3072_v31 = vsel %vm161_vm1, %v7051_v34, -inf }
0x4439   :  { %4404 = vrot.lane.b32.xlu1 %v4304_v38, %s5599_s23 }
0x4454   :  { %2032 = vmax.xlane.f32.xlu0 %v2031_v15 }
0x4458   :  { %2726 = vmax.xlane.f32.xlu0 %v2725_v51 }
0x445c   :  { %3073 = vmax.xlane.f32.xlu0 %v3072_v31 }
0x4460   :  { %3420 = vmax.xlane.f32.xlu0 %v3419_v19 }
0x4464   :  { %4114 = vmax.xlane.f32.xlu0 %v4113_v62 }
0x44a7   :  { %v4387_v1 = vpop.permute.xlu1 %4386  ;;  %v4380_v42 = vpop.permute.xlu0 %4379 }
0x44a8   :  { %v4389_v16 = vmul.f32 %v5572_v41, %v4387_v1  ;;  %v4388_v63 = vmul.f32 %v5571_v33, %v4380_v42 }
0x44aa   :  { %v4397_v5 = vsel %vm88_vm3, %v4389_v16, 0.0  ;;  %v4390_v10 = vsel %vm88_vm3, %v4388_v63, 0.0 }
0x44ab   :  { %v4398_v28 = vrot.slane %v4397_v5, 4  ;;  %v4391_v4 = vrot.slane %v4390_v10, 4  ;;  %v4405_v44 = vpop.permute.xlu1 %4404 }
0x44ac   :  { %4407 = vst.msk [vmem:[#allocation3] sm:$0x3] %vm161_vm1, %v4405_v44 }
0x44ad   :  { %v4399_v22 = vadd.f32 %v4398_v28, %v4397_v5  ;;  %v4392_v48 = vadd.f32 %v4391_v4, %v4390_v10 }
0x44af   :  { %v4400_v13 = vrot.slane %v4399_v22, 2  ;;  %v4393_v56 = vrot.slane %v4392_v48, 2 }
0x44b1   :  { %v4401_v14 = vadd.f32 %v4400_v13, %v4399_v22  ;;  %v4394_v53 = vadd.f32 %v4393_v56, %v4392_v48 }
0x44b3   :  { %v4402_v55 = vrot.slane %v4401_v14, 1  ;;  %v4395_v6 = vrot.slane %v4394_v53, 1 }
0x44b5   :  { %v4403_v59 = vadd.f32 %v4402_v55, %v4401_v14  ;;  %v4396_v38 = vadd.f32 %v4395_v6, %v4394_v53 }
0x44b7   :  { %v4410_v23 = vsel %vm1899_vm6, %v4403_v59, %v4396_v38 }
0x44b8   :  { %4411 = vrot.lane.b32.xlu1 %v4410_v23, %s5599_s23  ;;  %s5573_s23 = scalar_lea.vmem %s4506_s22, 256 }
0x44b9   :  { %p5574_p0 = scmp.ne.s32.totalorder %s4506_s22, %s5573_s23  ;;  %p5579_p2 = scmp.lt.s32.totalorder %s5573_s23, %s5573_s23 }
0x44bb   :  { %p5580_p3 = por %p5579_p2, %p5578_p1 }
0x44bd   :  { %p5581_p4 = pnand %p5580_p3, %p5574_p0 }
0x44dc   :  { %2379 = vmax.xlane.f32.xlu1 %v2378_v57 }
0x44dd   :  { %v2033_v26 = vpop.xlane.xlu0 %2032 }
0x44de   :  { %v2034_v0 = vsub.f32 %v7041_v9, %v2033_v26 }
0x44e0   :  { %v2035_v33 = vmul.f32 1.442695, %v2034_v0  ;;  %3767 = vmax.xlane.f32.xlu1 %v3766_v21 }
0x44e1   :  { %v2727_v47 = vpop.xlane.xlu0 %2726 }
0x44e2   :  { %5518 = vpow2.f32 %v2035_v33  ;;  %v2728_v40 = vsub.f32 %v7045_v3, %v2727_v47 }
0x44e4   :  { %v2729_v43 = vmul.f32 1.442695, %v2728_v40 }
0x44e5   :  { %v7088_v41 = vpop.xlane.xlu0 %3073 }
0x44e6   :  { %5520 = vpow2.f32 %v2729_v43 }
0x44e9   :  { %v3421_v11 = vpop.xlane.xlu0 %3420 }
0x44ea   :  { %v3422_v29 = vsub.f32 %v7057_v17, %v3421_v11 }
0x44ec   :  { %v3423_v25 = vmul.f32 1.442695, %v3422_v29 }
0x44ed   :  { %v4115_v36 = vpop.xlane.xlu0 %4114 }
0x44ee   :  { %5522 = vpow2.f32 %v3423_v25  ;;  %v4116_v24 = vsub.f32 %v7063_v2, %v4115_v36 }
0x44ef   :  { %v5519_v30 = vpop.eup %5518 }
0x44f0   :  { %v4117_v32 = vmul.f32 1.442695, %v4116_v24  ;;  %v2037_v46 = vsel %vm161_vm1, %v5519_v30, 0.0 }
0x44f1   :  { %2038 = vadd.xlane.f32.xlu0 %v2037_v46 }
0x44f2   :  { %5524 = vpow2.f32 %v4117_v32 }
0x44f3   :  { %v5521_v37 = vpop.eup %5520 }
0x44f4   :  { %v2731_v12 = vsel %vm161_vm1, %v5521_v37, 0.0 }
0x44f5   :  { %2732 = vadd.xlane.f32.xlu0 %v2731_v12 }
0x44fb   :  { %v5523_v35 = vpop.eup %5522 }
0x44fc   :  { %v3425_v50 = vsel %vm161_vm1, %v5523_v35, 0.0 }
0x44fd   :  { %3426 = vadd.xlane.f32.xlu0 %v3425_v50 }
0x44ff   :  { %v5525_v39 = vpop.eup %5524 }
0x4500   :  { %v4119_v58 = vsel %vm161_vm1, %v5525_v39, 0.0 }
0x4501   :  { %4120 = vadd.xlane.f32.xlu0 %v4119_v58 }
0x452a   :  { %v4412_v54 = vpop.permute.xlu1 %4411 }
0x452b   :  { %4414 = vst.msk [vmem:[#allocation3] sm:$0x3] %vm163_vm2, %v4412_v54 }
0x4532   :  { %v4415_v45 = vld [vmem:[#allocation3] sm:$0x3] }
0x4533   :  { %v4416_v49 = vpack.c.bf16 %v4415_v45, %v4415_v45 }
0x4535   :  { %5201 = vmatmul.mubr.msk.bf16.vlgmr.msra.gmra.mxu1 %vm197_vm4, %v4416_v49 }
0x4565   :  { %v2380_v33 = vpop.xlane.xlu1 %2379 }
0x4569   :  { %v3768_v43 = vpop.xlane.xlu1 %3767 }
0x456a   :  { %v3769_v29 = vsub.f32 %v7080_v18, %v3768_v43 }
0x456c   :  { %v3770_v25 = vmul.f32 1.442695, %v3769_v29 }
0x457a   :  { %v2039_v60 = vpop.xlane.xlu0 %2038 }
0x457b   :  { %5526 = vlog2.f32 %v2039_v60 }
0x457e   :  { %v2733_v61 = vpop.xlane.xlu0 %2732 }
0x457f   :  { %5528 = vlog2.f32 %v2733_v61 }
0x4586   :  { %v3427_v7 = vpop.xlane.xlu0 %3426 }
0x4587   :  { %5530 = vlog2.f32 %v3427_v7 }
0x4588   :  { %v5527_v20 = vpop.eup %5526 }
0x4589   :  { %v2041_v15 = vmul.f32 0.6931472, %v5527_v20 }
0x458a   :  { %v4121_v51 = vpop.xlane.xlu0 %4120 }
0x458b   :  { %v2042_v31 = vadd.f32 %v2041_v15, %v2033_v26  ;;  %5532 = vlog2.f32 %v4121_v51 }
0x458c   :  { %v5529_v19 = vpop.eup %5528 }
0x458d   :  { %v2043_v62 = vsub.f32 %v7041_v9, %v2042_v31  ;;  %v2735_v1 = vmul.f32 0.6931472, %v5529_v19 }
0x458f   :  { %v2051_v42 = vrot.slane %v2043_v62, %v6133_v8  ;;  %v2736_v16 = vadd.f32 %v2735_v1, %v2727_v47  ;;  %v3075_v47 = vsub.f32 %v7051_v34, %v7088_v41 }
0x4591   :  { %v2052_v63 = vcombine.high %v2051_v42, %v2051_v42  ;;  %v2059_v5 = vrot.slane %v2051_v42, %v6133_v8  ;;  %v2737_v10 = vsub.f32 %v7045_v3, %v2736_v16 }
0x4593   :  { %v2066_v28 = vrot.slane %v2052_v63, %v6133_v8  ;;  %2069 = vst.msk [vmem:[#allocation4] sm:$0x1] %vm302_vm5, %v2059_v5  ;;  %v2745_v4 = vrot.slane %v2737_v10, %v6133_v8 }
0x4594   :  { %v5531_v44 = vpop.eup %5530 }
0x4595   :  { %2070 = vst.msk [vmem:[#allocation4 + $0x8] sm:$0x1] %vm302_vm5, %v2066_v28  ;;  %v2746_v22 = vcombine.high %v2745_v4, %v2745_v4  ;;  %v2753_v9 = vrot.slane %v2745_v4, %v6133_v8  ;;  %v3429_v48 = vmul.f32 0.6931472, %v5531_v44 }
0x4597   :  { %v2760_v13 = vrot.slane %v2746_v22, %v6133_v8  ;;  %2763 = vst.msk [vmem:[#allocation4 + $0x2] sm:$0x1] %vm302_vm5, %v2753_v9  ;;  %v3430_v56 = vadd.f32 %v3429_v48, %v3421_v11  ;;  %v3076_v11 = vmul.f32 1.442695, %v3075_v47 }
0x4598   :  { %v5533_v14 = vpop.eup %5532 }
0x4599   :  { %2764 = vst.msk [vmem:[#allocation4 + $0xa] sm:$0x1] %vm302_vm5, %v2760_v13  ;;  %v3431_v3 = vsub.f32 %v7057_v17, %v3430_v56  ;;  %v4123_v53 = vmul.f32 0.6931472, %v5533_v14 }
0x459b   :  { %v3439_v55 = vrot.slane %v3431_v3, %v6133_v8  ;;  %v4124_v6 = vadd.f32 %v4123_v53, %v4115_v36 }
0x459d   :  { %v3440_v59 = vcombine.high %v3439_v55, %v3439_v55  ;;  %v3447_v38 = vrot.slane %v3439_v55, %v6133_v8  ;;  %v4125_v23 = vsub.f32 %v7063_v2, %v4124_v6  ;;  %v2381_v2 = vsub.f32 %v7076_v27, %v2380_v33 }
0x459f   :  { %v3454_v57 = vrot.slane %v3440_v59, %v6133_v8  ;;  %3457 = vst.msk [vmem:[#allocation4 + $0x4] sm:$0x1] %vm302_vm5, %v3447_v38  ;;  %v4133_v26 = vrot.slane %v4125_v23, %v6133_v8  ;;  %v2382_v40 = vmul.f32 1.442695, %v2381_v2 }
0x45a1   :  { %3458 = vst.msk [vmem:[#allocation4 + $0xc] sm:$0x1] %vm302_vm5, %v3454_v57  ;;  %v4134_v0 = vcombine.high %v4133_v26, %v4133_v26  ;;  %v4141_v17 = vrot.slane %v4133_v26, %v6133_v8  ;;  %5534 = vpow2.f32 %v2382_v40 }
0x45a2   :  { %5536 = vpow2.f32 %v3076_v11 }
0x45a3   :  { %v4148_v21 = vrot.slane %v4134_v0, %v6133_v8  ;;  %4151 = vst.msk [vmem:[#allocation4 + $0x6] sm:$0x1] %vm302_vm5, %v4141_v17  ;;  %5538 = vpow2.f32 %v3770_v25 }
0x45a5   :  { %4152 = vst.msk [vmem:[#allocation4 + $0xe] sm:$0x1] %vm302_vm5, %v4148_v21 }
0x45ae   :  { %v5535_v46 = vpop.eup %5534 }
0x45af   :  { %v2384_v35 = vsel %vm161_vm1, %v5535_v46, 0.0  ;;  %v5537_v50 = vpop.eup %5536 }
0x45b0   :  { %v3078_v39 = vsel %vm161_vm1, %v5537_v50, 0.0  ;;  %v5539_v58 = vpop.eup %5538 }
0x45b1   :  { %v3772_v54 = vsel %vm161_vm1, %v5539_v58, 0.0 }
0x45f5   :  { %v4454_v36 = vpop.f32.mrf.mxu1 }
0x45f6   :  { %v7127_v24 = vadd.f32 %v7037_v52, %v4454_v36 }
0x45f7   :  { %v5202_v30 = vpop.f32.mrf.mxu1 }
0x45f8   :  { %v4460_v32 = vsel %vm161_vm1, %v7127_v24, -inf }
0x45f9   :  { %4461 = vmax.xlane.f32.xlu1 %v4460_v32  ;;  %v4457_v37 = vpop.f32.mrf.mxu1 }
0x45fb   :  { %v5203_v12 = vpop.f32.mrf.mxu1 }
0x45fd   :  { %2385 = vadd.xlane.f32.xlu1 %v2384_v35 }
0x4601   :  { %3079 = vadd.xlane.f32.xlu1 %v3078_v39 }
0x4605   :  { %3773 = vadd.xlane.f32.xlu1 %v3772_v54 }
0x4682   :  { %v4462_v52 = vpop.xlane.xlu1 %4461 }
0x4683   :  { %v4463_v45 = vsub.f32 %v7127_v24, %v4462_v52 }
0x4685   :  { %v4464_v49 = vmul.f32 1.442695, %v4463_v45 }
0x4686   :  { %v2386_v60 = vpop.xlane.xlu1 %2385 }
0x4687   :  { %5540 = vpow2.f32 %v4464_v49 }
0x4688   :  { %5542 = vlog2.f32 %v2386_v60 }
0x468a   :  { %v3080_v61 = vpop.xlane.xlu1 %3079 }
0x468b   :  { %5544 = vlog2.f32 %v3080_v61 }
0x468e   :  { %v3774_v7 = vpop.xlane.xlu1 %3773 }
0x468f   :  { %5546 = vlog2.f32 %v3774_v7 }
0x4694   :  { %v5541_v20 = vpop.eup %5540 }
0x4695   :  { %v5543_v15 = vpop.eup %5542  ;;  %v4466_v51 = vsel %vm161_vm1, %v5541_v20, 0.0 }
0x4696   :  { %v2388_v31 = vmul.f32 0.6931472, %v5543_v15  ;;  %4467 = vadd.xlane.f32.xlu1 %v4466_v51 }
0x4698   :  { %v5545_v19 = vpop.eup %5544  ;;  %v2389_v62 = vadd.f32 %v2388_v31, %v2380_v33 }
0x4699   :  { %v3082_v1 = vmul.f32 0.6931472, %v5545_v19 }
0x469a   :  { %v2390_v42 = vsub.f32 %v7076_v27, %v2389_v62 }
0x469b   :  { %v3083_v16 = vadd.f32 %v3082_v1, %v7088_v41 }
0x469c   :  { %v5547_v63 = vpop.eup %5546  ;;  %v2398_v5 = vrot.slane %v2390_v42, %v6133_v8 }
0x469d   :  { %v3084_v10 = vsub.f32 %v7051_v34, %v3083_v16  ;;  %v3776_v28 = vmul.f32 0.6931472, %v5547_v63 }
0x469e   :  { %v2399_v4 = vcombine.high %v2398_v5, %v2398_v5  ;;  %v2406_v44 = vrot.slane %v2398_v5, %v6133_v8 }
0x469f   :  { %v3092_v22 = vrot.slane %v3084_v10, %v6133_v8  ;;  %v3777_v9 = vadd.f32 %v3776_v28, %v3768_v43 }
0x46a0   :  { %v2413_v48 = vrot.slane %v2399_v4, %v6133_v8  ;;  %2416 = vst.msk [vmem:[#allocation4 + $0x1] sm:$0x1] %vm302_vm5, %v2406_v44 }
0x46a1   :  { %v3093_v13 = vcombine.high %v3092_v22, %v3092_v22  ;;  %v3100_v27 = vrot.slane %v3092_v22, %v6133_v8  ;;  %v3778_v41 = vsub.f32 %v7080_v18, %v3777_v9 }
0x46a2   :  { %2417 = vst.msk [vmem:[#allocation4 + $0x9] sm:$0x1] %vm302_vm5, %v2413_v48 }
0x46a3   :  { %v3107_v34 = vrot.slane %v3093_v13, %v6133_v8  ;;  %3110 = vst.msk [vmem:[#allocation4 + $0x3] sm:$0x1] %vm302_vm5, %v3100_v27  ;;  %v3786_v56 = vrot.slane %v3778_v41, %v6133_v8 }
0x46a5   :  { %3111 = vst.msk [vmem:[#allocation4 + $0xb] sm:$0x1] %vm302_vm5, %v3107_v34  ;;  %v3787_v14 = vcombine.high %v3786_v56, %v3786_v56  ;;  %v3794_v3 = vrot.slane %v3786_v56, %v6133_v8 }
0x46a7   :  { %v3801_v53 = vrot.slane %v3787_v14, %v6133_v8  ;;  %3804 = vst.msk [vmem:[#allocation4 + $0x5] sm:$0x1] %vm302_vm5, %v3794_v3 }
0x46a9   :  { %3805 = vst.msk [vmem:[#allocation4 + $0xd] sm:$0x1] %vm302_vm5, %v3801_v53 }
0x471f   :  { %v4468_v18 = vpop.xlane.xlu1 %4467 }
0x4720   :  { %5548 = vlog2.f32 %v4468_v18 }
0x472d   :  { %v5549_v55 = vpop.eup %5548 }
0x472e   :  { %v4470_v6 = vmul.f32 0.6931472, %v5549_v55 }
0x4730   :  { %v4471_v59 = vadd.f32 %v4470_v6, %v4462_v52 }
0x4732   :  { %v4472_v38 = vsub.f32 %v7127_v24, %v4471_v59 }
0x4734   :  { %v4480_v23 = vrot.slane %v4472_v38, %v6133_v8 }
0x4736   :  { %v4481_v57 = vcombine.high %v4480_v23, %v4480_v23  ;;  %v4488_v26 = vrot.slane %v4480_v23, %v6133_v8 }
0x4738   :  { %v4495_v0 = vrot.slane %v4481_v57, %v6133_v8  ;;  %4498 = vst.msk [vmem:[#allocation4 + $0x7] sm:$0x1] %vm302_vm5, %v4488_v26 }
0x473a   :  { %4499 = vst.msk [vmem:[#allocation4 + $0xf] sm:$0x1] %vm302_vm5, %v4495_v0 }
0x473b   :  { %5584 = shalt.err (!%p5581_p4)
}
0x473c   :  { %s5602_s16 = smov 128   ;;  %s5603_s17 = smov 8  }
0x473d   :  { %4511 = dma.vmem_to_hbm [thread:$0]  %s4506_s22, 256, %s7175_s11, [#allocation5], %s5602_s16, %s5602_s16, %s5603_s17  }
0x473e   :  { %5593 = dma.done.wait [#allocation5], 256  }
0x473f   :  { %5594 = vsyncadd [#allocation5], 4294967040 }
0x4740   :  { %4515 = vsyncpa [#allocation5], 1 }

</bundles_post_ra>
